<compile_context>
chip_gen: v6e
topology: v6e:2x2x1
jax: 0.10.0
libtpu: 0.0.40
codegen_flags: <defaults>
</compile_context>

<pallas_src>
import functools
import math

import jax
import jax.numpy as jnp
from jax import lax
from jax.experimental import pallas as pl
from jax.experimental.pallas import tpu as pltpu

_EPS_ADJ = 1e-9
_MASK_SCALE = -1e9


def _plga_kernel(*refs, head_block, inv_sqrt_dk, has_mask, pack_outputs):
    n_in = 5 if has_mask else 4
    hin_ref, hk_ref, hv_ref, amet_ref = refs[:4]
    mask_ref = refs[4] if has_mask else None
    w_ref, b_ref, pw_ref, a_ref, ba_ref = refs[n_in:n_in + 5]
    hout_ref, aw_ref, avap_ref, ep_ref = refs[n_in + 5:n_in + 9]

    hp = lax.Precision.HIGHEST
    bf16 = jnp.bfloat16
    # Pre-scaled additive mask tile, loaded once per grid step.
    mask_add = mask_ref[0, 0] if has_mask else None            # [S, S]

    hout_parts, aw_parts, avap_parts, ep_parts = [], [], [], []

    # Statically unrolled loop over the heads handled by this grid step.
    for h in range(head_block):
        W, b = w_ref[h], b_ref[h]                              # [D, D]
        pw, a_vec, ba = pw_ref[h], a_ref[h], ba_ref[h]         # [D, D]
        Amet = amet_ref[0, h]                                  # [D, D]
        Hin, Hk, Hv = hin_ref[0, h], hk_ref[0, h], hv_ref[0, h]  # [S, D]

        # --- Metric-tensor transform: AW = iSwiGLU(W @ A + b) + eps (f32) ---
        WA = jnp.dot(W, Amet, precision=hp,
                     preferred_element_type=jnp.float32) + b
        gate = WA * jax.nn.sigmoid(WA)                         # silu(WA)
        AW = WA * gate + _EPS_ADJ                              # > 0 by construction

        # --- Power-law coupling: avAp = a @ AW**pw + ba ---
        Ap = jnp.exp(pw * jnp.log(AW))                         # AW > 0 -> EUP path
        avAp = jnp.dot(a_vec, Ap, precision=hp,
                       preferred_element_type=jnp.float32) + ba

        # --- Attention energies (bf16 on the MXU, f32 accumulation) ---
        # 1/sqrt(dk) folded into the DxD tensor instead of the SxS energy.
        G = (avAp * inv_sqrt_dk).astype(bf16)
        WHiWHj = jnp.dot(Hin.astype(bf16), G,
                         preferred_element_type=jnp.float32)   # [S, D]
        Ep = lax.dot_general(                                  # [S, S] = scaled Q.G.K^T
            WHiWHj.astype(bf16), Hk.astype(bf16),
            dimension_numbers=(((1,), (1,)), ((), ())),        # contract last dims (A @ B^T)
            preferred_element_type=jnp.float32)

        # --- Softmax over keys ---
        E = Ep + mask_add if has_mask else Ep
        E = jnp.exp(E - jnp.max(E, axis=-1, keepdims=True))
        E = E * pl.reciprocal(jnp.sum(E, axis=-1, keepdims=True), approx=True)

        Hout = jnp.dot(E.astype(bf16), Hv.astype(bf16),
                       preferred_element_type=jnp.float32)     # [S, D]

        if pack_outputs:
            hout_parts.append(Hout)
            aw_parts.append(AW)
            avap_parts.append(avAp)
            ep_parts.append(Ep)
        else:
            hout_ref[0, h] = Hout.astype(hout_ref.dtype)
            aw_ref[0, h] = AW.astype(aw_ref.dtype)
            avap_ref[0, h] = avAp.astype(avap_ref.dtype)
            ep_ref[0, h] = Ep.astype(ep_ref.dtype)

    if pack_outputs:
        def _pack(parts):
            return parts[0] if len(parts) == 1 else jnp.concatenate(parts, axis=-1)
        # Lane-dense stores: heads packed along the last (lane) axis.
        hout_ref[0] = _pack(hout_parts).astype(hout_ref.dtype)
        aw_ref[0] = _pack(aw_parts).astype(aw_ref.dtype)
        avap_ref[0] = _pack(avap_parts).astype(avap_ref.dtype)
        ep_ref[0] = _pack(ep_parts).astype(ep_ref.dtype)


def _auto_head_block(H, S, D, has_mask):
    """Largest divisor of H whose per-step working set stays within a
    conservative VMEM budget (fits default scoped VMEM on v5e/v6e/v7x)."""
    per_head = 4 * (4 * S * D + 8 * D * D + S * S)   # f32 bytes (ins + outs + params)
    fixed = 4 * S * S if has_mask else 0
    budget = 16 * 1024 * 1024
    hb = 1
    for cand in range(1, H + 1):
        if H % cand:
            continue
        if 2 * (cand * per_head + fixed) <= budget:   # x2 for double buffering
            hb = cand
    return hb


def plga_forward(Hin, Hk, Hv, A, mask, params, head_block=None, pack_outputs=True):
    """Pallas implementation of plga_layer.forward (Gcache=None path)."""
    B, H, S, D = Hin.shape
    W, b, pw, a_vec, ba = (params["W"], params["b"], params["pw"],
                           params["a"], params["ba"])

    has_mask = mask is not None
    if head_block is None:
        head_block = _auto_head_block(H, S, D, has_mask)
    assert H % head_block == 0
    n_hgrp = H // head_block

    # --- mask: never materialise [B,H,S,S]; keep one pre-scaled [*,1,S,S] tile ---
    mask_arr = None
    mask_batched = False
    if has_mask:
        m = jnp.asarray(mask, jnp.float32) * _MASK_SCALE        # additive, pre-scaled
        m = m.reshape((1,) * (4 - m.ndim) + m.shape)
        assert m.shape[1] == 1, "per-head masks are not supported"  # TODO(synk)
        mask_batched = m.shape[0] != 1
        mask_arr = jnp.broadcast_to(m, (B if mask_batched else 1, 1, S, S))

    # Packed (lane-dense) outputs need full-extent or 128-aligned trailing block
    # dims; decide statically (no trace-time fallback needed).
    if n_hgrp > 1 and ((head_block * D) % 128 or (head_block * S) % 128):
        pack_outputs = False

    # Grid order: heads outermost when there are several head groups (per-head
    # param blocks keep a constant index across the inner batch loop -> no
    # re-DMA); batch outermost otherwise (parallel leading axis for megacore).
    heads_outer = n_hgrp > 1
    if heads_outer:
        grid = (n_hgrp, B)

        def _im(fn):
            return lambda hg, bb: fn(hg, bb)
    else:
        grid = (B, n_hgrp)

        def _im(fn):
            return lambda bb, hg: fn(hg, bb)

    hspec = pl.BlockSpec((1, head_block, S, D), _im(lambda hg, bb: (bb, hg, 0, 0)))
    aspec = pl.BlockSpec((1, head_block, D, D), _im(lambda hg, bb: (bb, hg, 0, 0)))
    pspec = pl.BlockSpec((head_block, D, D), _im(lambda hg, bb: (hg, 0, 0)))

    in_specs = [hspec, hspec, hspec, aspec]
    inputs = [Hin, Hk, Hv, A]
    if has_mask:
        if mask_batched:
            in_specs.append(
                pl.BlockSpec((1, 1, S, S), _im(lambda hg, bb: (bb, 0, 0, 0))))
        else:
            in_specs.append(
                pl.BlockSpec((1, 1, S, S), _im(lambda hg, bb: (0, 0, 0, 0))))
        inputs.append(mask_arr)
    in_specs += [pspec] * 5
    inputs += [W, b, pw, a_vec, ba]

    if pack_outputs:
        out_shapes = (
            jax.ShapeDtypeStruct((B, S, H * D), jnp.float32),  # Hout (heads on lanes)
            jax.ShapeDtypeStruct((B, D, H * D), jnp.float32),  # AW   (A_LM)
            jax.ShapeDtypeStruct((B, D, H * D), jnp.float32),  # avAp (G_LM)
            jax.ShapeDtypeStruct((B, S, H * S), jnp.float32),  # Ep (pre-mask, scaled)
        )
        out_specs = [
            pl.BlockSpec((1, S, head_block * D), _im(lambda hg, bb: (bb, 0, hg))),
            pl.BlockSpec((1, D, head_block * D), _im(lambda hg, bb: (bb, 0, hg))),
            pl.BlockSpec((1, D, head_block * D), _im(lambda hg, bb: (bb, 0, hg))),
            pl.BlockSpec((1, S, head_block * S), _im(lambda hg, bb: (bb, 0, hg))),
        ]
    else:
        out_shapes = (
            jax.ShapeDtypeStruct((B, H, S, D), jnp.float32),
            jax.ShapeDtypeStruct((B, H, D, D), jnp.float32),
            jax.ShapeDtypeStruct((B, H, D, D), jnp.float32),
            jax.ShapeDtypeStruct((B, H, S, S), jnp.float32),
        )
        out_specs = [
            pl.BlockSpec((1, head_block, S, D), _im(lambda hg, bb: (bb, hg, 0, 0))),
            pl.BlockSpec((1, head_block, D, D), _im(lambda hg, bb: (bb, hg, 0, 0))),
            pl.BlockSpec((1, head_block, D, D), _im(lambda hg, bb: (bb, hg, 0, 0))),
            pl.BlockSpec((1, head_block, S, S), _im(lambda hg, bb: (bb, hg, 0, 0))),
        ]

    kernel = functools.partial(
        _plga_kernel, head_block=head_block,
        inv_sqrt_dk=1.0 / math.sqrt(D), has_mask=has_mask,
        pack_outputs=pack_outputs)

    outs = pl.pallas_call(
        kernel,
        out_shape=out_shapes,
        grid_spec=pltpu.PrefetchScalarGridSpec(
            num_scalar_prefetch=0,
            grid=grid,
            in_specs=in_specs,
            out_specs=out_specs,
        ),
        compiler_params=pltpu.CompilerParams(
            dimension_semantics=("parallel", "parallel")),
    )(*inputs)

    if pack_outputs:
        Hout_p, AW_p, avAp_p, Ep_p = outs
        Hout = Hout_p.reshape(B, S, H, D).transpose(0, 2, 1, 3)
        AW = AW_p.reshape(B, D, H, D).transpose(0, 2, 1, 3)
        avAp = avAp_p.reshape(B, D, H, D).transpose(0, 2, 1, 3)
        Ep = Ep_p.reshape(B, S, H, S).transpose(0, 2, 1, 3)
    else:
        Hout, AW, avAp, Ep = outs
    return Hout, [AW, pw, a_vec, ba, avAp, Ep]


def plga_reference(Hin, Hk, Hv, A, mask, params):
    """Pure-JAX (f32, HIGHEST precision) reference mirroring the PyTorch module."""
    hp = lax.Precision.HIGHEST
    W, b, pw, a_vec, ba = (params["W"], params["b"], params["pw"],
                           params["a"], params["ba"])
    B = Hin.shape[0]
    We = jnp.broadcast_to(W[None], (B,) + W.shape)
    ae = jnp.broadcast_to(a_vec[None], (B,) + a_vec.shape)
    pwe = jnp.broadcast_to(pw[None], (B,) + pw.shape)

    WA = jnp.matmul(We, A, precision=hp) + b
    gate = WA * jax.nn.sigmoid(WA)
    AW = WA * gate + _EPS_ADJ
    Ap = jnp.power(AW, pwe)
    avAp = jnp.matmul(ae, Ap, precision=hp) + ba

    Hkt = jnp.swapaxes(Hk, -1, -2)
    WHiWHj = jnp.matmul(Hin, avAp, precision=hp)
    Ep = jnp.matmul(WHiWHj, Hkt, precision=hp)
    Ep = Ep / jnp.sqrt(jnp.float32(Hin.shape[-1]))
    E = Ep + mask * _MASK_SCALE if mask is not None else Ep
    E = jax.nn.softmax(E, axis=-1)
    Hout = jnp.matmul(E, Hv, precision=hp)
    return Hout, [AW, pw, a_vec, ba, avAp, Ep]


def init_params(key, F_heads, F_hidden):
    """Deterministic init matching torch shapes: [F_heads, F_hidden, F_hidden].
    W / pw / a: xavier-normal-like; b / ba: zeros."""
    kW, kpw, ka = jax.random.split(key, 3)
    shape = (F_heads, F_hidden, F_hidden)
    # PyTorch xavier_normal_ on 3D: fan_in = D*D, fan_out = H*D
    fan_in = F_hidden * F_hidden
    fan_out = F_heads * F_hidden
    std = math.sqrt(2.0 / (fan_in + fan_out))
    return {
        "W": jax.random.normal(kW, shape, jnp.float32) * std,
        "pw": jax.random.normal(kpw, shape, jnp.float32) * std,
        "a": jax.random.normal(ka, shape, jnp.float32) * std,
        "b": jnp.zeros(shape, jnp.float32),
        "ba": jnp.zeros(shape, jnp.float32),
    }


if __name__ == "__main__":
    key = jax.random.PRNGKey(0)
    B, H, S, D = 2, 4, 8, 32   # batch, heads, seq, depth (F_hidden = D)

    k1, k2, k3, k4, k5 = jax.random.split(key, 5)
    Hin = jax.random.normal(k1, (B, H, S, D), jnp.float32)
    Hk = jax.random.normal(k2, (B, H, S, D), jnp.float32)
    Hv = jax.random.normal(k3, (B, H, S, D), jnp.float32)
    A = jax.random.normal(k4, (B, H, D, D), jnp.float32) * 0.1

    # causal (look-ahead) mask: 1 where masked, broadcastable to [B, H, S, S]
    mask = (1.0 - jnp.tril(jnp.ones((S, S), jnp.float32)))[None, None]

    params = init_params(k5, F_heads=H, F_hidden=D)

    Hout, att = plga_forward(Hin, Hk, Hv, A, mask, params)
    Hout = jax.block_until_ready(Hout)

    ref_Hout, ref_att = plga_reference(Hin, Hk, Hv, A, mask, params)

    assert Hout.shape == (B, H, S, D)
    # DxD metric-tensor path runs in f32 HIGHEST -> tight tolerance.
    assert jnp.allclose(att[0], ref_att[0], rtol=1e-3, atol=1e-3), "AW mismatch"
    assert jnp.allclose(att[4], ref_att[4], rtol=1e-3, atol=1e-3), "avAp mismatch"
    # Sequence-sized matmuls run in bf16 on the MXU -> looser tolerance vs the
    # full-f32 HIGHEST reference.
    assert jnp.allclose(att[5], ref_att[5], rtol=5e-2, atol=5e-2), "Ep mismatch"
    assert jnp.allclose(Hout, ref_Hout, rtol=5e-2, atol=5e-2), "Hout mismatch"

    print("KERNEL_OK")
</pallas_src>

<mosaic_0001>
module attributes {stable_mosaic.version = 11 : i64} {
  func.func @_plga_kernel(%arg0: i32, %arg1: i32, %arg2: memref<1x4x8x32xf32, #tpu.memory_space<vmem>>, %arg3: memref<1x4x8x32xf32, #tpu.memory_space<vmem>>, %arg4: memref<1x4x8x32xf32, #tpu.memory_space<vmem>>, %arg5: memref<1x4x32x32xf32, #tpu.memory_space<vmem>>, %arg6: memref<1x1x8x8xf32, #tpu.memory_space<vmem>>, %arg7: memref<4x32x32xf32, #tpu.memory_space<vmem>>, %arg8: memref<4x32x32xf32, #tpu.memory_space<vmem>>, %arg9: memref<4x32x32xf32, #tpu.memory_space<vmem>>, %arg10: memref<4x32x32xf32, #tpu.memory_space<vmem>>, %arg11: memref<4x32x32xf32, #tpu.memory_space<vmem>>, %arg12: memref<1x8x128xf32, #tpu.memory_space<vmem>>, %arg13: memref<1x32x128xf32, #tpu.memory_space<vmem>>, %arg14: memref<1x32x128xf32, #tpu.memory_space<vmem>>, %arg15: memref<1x8x32xf32, #tpu.memory_space<vmem>>) attributes {dimension_semantics = [#tpu.dimension_semantics<parallel>, #tpu.dimension_semantics<parallel>], iteration_bounds = array<i64: 2, 1>, scalar_prefetch = 0 : i64, scratch_operands = 0 : i64, tpu.core_type = #tpu.core_type<tc>, window_params = [{transform_indices = @transform_0, window_bounds = array<i64: 1, 4, 8, 32>}, {transform_indices = @transform_1, window_bounds = array<i64: 1, 4, 8, 32>}, {transform_indices = @transform_2, window_bounds = array<i64: 1, 4, 8, 32>}, {transform_indices = @transform_3, window_bounds = array<i64: 1, 4, 32, 32>}, {pipeline_mode = #tpu.pipeline_mode<synchronous>, transform_indices = @transform_4, window_bounds = array<i64: 1, 1, 8, 8>}, {transform_indices = @transform_5, window_bounds = array<i64: 4, 32, 32>}, {transform_indices = @transform_6, window_bounds = array<i64: 4, 32, 32>}, {transform_indices = @transform_7, window_bounds = array<i64: 4, 32, 32>}, {transform_indices = @transform_8, window_bounds = array<i64: 4, 32, 32>}, {transform_indices = @transform_9, window_bounds = array<i64: 4, 32, 32>}, {transform_indices = @transform_10, window_bounds = array<i64: 1, 8, 128>}, {transform_indices = @transform_11, window_bounds = array<i64: 1, 32, 128>}, {transform_indices = @transform_12, window_bounds = array<i64: 1, 32, 128>}, {transform_indices = @transform_13, window_bounds = array<i64: 1, 8, 32>}]} {
    %c0 = arith.constant 0 : index
    %c0_0 = arith.constant 0 : index
    %c0_1 = arith.constant 0 : index
    %c0_2 = arith.constant 0 : index
    %0 = vector.load %arg6[%c0, %c0_0, %c0_1, %c0_2] : memref<1x1x8x8xf32, #tpu.memory_space<vmem>>, vector<1x1x8x8xf32>
    %1 = vector.shape_cast %0 : vector<1x1x8x8xf32> to vector<8x8xf32>
    %c0_3 = arith.constant 0 : index
    %c0_4 = arith.constant 0 : index
    %c0_5 = arith.constant 0 : index
    %2 = vector.load %arg7[%c0_3, %c0_4, %c0_5] : memref<4x32x32xf32, #tpu.memory_space<vmem>>, vector<1x32x32xf32>
    %3 = vector.shape_cast %2 : vector<1x32x32xf32> to vector<32x32xf32>
    %c0_6 = arith.constant 0 : index
    %c0_7 = arith.constant 0 : index
    %c0_8 = arith.constant 0 : index
    %4 = vector.load %arg8[%c0_6, %c0_7, %c0_8] : memref<4x32x32xf32, #tpu.memory_space<vmem>>, vector<1x32x32xf32>
    %5 = vector.shape_cast %4 : vector<1x32x32xf32> to vector<32x32xf32>
    %c0_9 = arith.constant 0 : index
    %c0_10 = arith.constant 0 : index
    %c0_11 = arith.constant 0 : index
    %6 = vector.load %arg9[%c0_9, %c0_10, %c0_11] : memref<4x32x32xf32, #tpu.memory_space<vmem>>, vector<1x32x32xf32>
    %7 = vector.shape_cast %6 : vector<1x32x32xf32> to vector<32x32xf32>
    %c0_12 = arith.constant 0 : index
    %c0_13 = arith.constant 0 : index
    %c0_14 = arith.constant 0 : index
    %8 = vector.load %arg10[%c0_12, %c0_13, %c0_14] : memref<4x32x32xf32, #tpu.memory_space<vmem>>, vector<1x32x32xf32>
    %9 = vector.shape_cast %8 : vector<1x32x32xf32> to vector<32x32xf32>
    %c0_15 = arith.constant 0 : index
    %c0_16 = arith.constant 0 : index
    %c0_17 = arith.constant 0 : index
    %10 = vector.load %arg11[%c0_15, %c0_16, %c0_17] : memref<4x32x32xf32, #tpu.memory_space<vmem>>, vector<1x32x32xf32>
    %11 = vector.shape_cast %10 : vector<1x32x32xf32> to vector<32x32xf32>
    %c0_18 = arith.constant 0 : index
    %c0_19 = arith.constant 0 : index
    %c0_20 = arith.constant 0 : index
    %c0_21 = arith.constant 0 : index
    %12 = vector.load %arg5[%c0_18, %c0_19, %c0_20, %c0_21] : memref<1x4x32x32xf32, #tpu.memory_space<vmem>>, vector<1x1x32x32xf32>
    %13 = vector.shape_cast %12 : vector<1x1x32x32xf32> to vector<32x32xf32>
    %c0_22 = arith.constant 0 : index
    %c0_23 = arith.constant 0 : index
    %c0_24 = arith.constant 0 : index
    %c0_25 = arith.constant 0 : index
    %14 = vector.load %arg2[%c0_22, %c0_23, %c0_24, %c0_25] : memref<1x4x8x32xf32, #tpu.memory_space<vmem>>, vector<1x1x8x32xf32>
    %15 = vector.shape_cast %14 : vector<1x1x8x32xf32> to vector<8x32xf32>
    %c0_26 = arith.constant 0 : index
    %c0_27 = arith.constant 0 : index
    %c0_28 = arith.constant 0 : index
    %c0_29 = arith.constant 0 : index
    %16 = vector.load %arg3[%c0_26, %c0_27, %c0_28, %c0_29] : memref<1x4x8x32xf32, #tpu.memory_space<vmem>>, vector<1x1x8x32xf32>
    %17 = vector.shape_cast %16 : vector<1x1x8x32xf32> to vector<8x32xf32>
    %c0_30 = arith.constant 0 : index
    %c0_31 = arith.constant 0 : index
    %c0_32 = arith.constant 0 : index
    %c0_33 = arith.constant 0 : index
    %18 = vector.load %arg4[%c0_30, %c0_31, %c0_32, %c0_33] : memref<1x4x8x32xf32, #tpu.memory_space<vmem>>, vector<1x1x8x32xf32>
    %19 = vector.shape_cast %18 : vector<1x1x8x32xf32> to vector<8x32xf32>
    %cst = arith.constant dense<0.000000e+00> : vector<32x32xf32>
    %20 = tpu.matmul %3, %13, %cst {dimension_numbers = #tpu.dot_dimension_numbers<[1], [0], [0], [1], [0, 0, 1, 1], [], []>, precision = #tpu.contract_precision<fp32>} : vector<32x32xf32>, vector<32x32xf32>, vector<32x32xf32> -> vector<32x32xf32>
    %21 = arith.addf %20, %5 : vector<32x32xf32>
    %22 = arith.negf %21 : vector<32x32xf32>
    %23 = math.exp %22 : vector<32x32xf32>
    %cst_34 = arith.constant 1.000000e+00 : f32
    %24 = vector.broadcast %cst_34 : f32 to vector<32x32xf32>
    %25 = arith.addf %24, %23 : vector<32x32xf32>
    %26 = arith.divf %24, %25 : vector<32x32xf32>
    %27 = arith.mulf %21, %26 : vector<32x32xf32>
    %28 = arith.mulf %21, %27 : vector<32x32xf32>
    %cst_35 = arith.constant 9.99999971E-10 : f32
    %29 = vector.broadcast %cst_35 : f32 to vector<32x32xf32>
    %30 = arith.addf %28, %29 : vector<32x32xf32>
    %31 = math.log %30 : vector<32x32xf32>
    %32 = arith.mulf %7, %31 : vector<32x32xf32>
    %33 = math.exp %32 : vector<32x32xf32>
    %cst_36 = arith.constant dense<0.000000e+00> : vector<32x32xf32>
    %34 = tpu.matmul %9, %33, %cst_36 {dimension_numbers = #tpu.dot_dimension_numbers<[1], [0], [0], [1], [0, 0, 1, 1], [], []>, precision = #tpu.contract_precision<fp32>} : vector<32x32xf32>, vector<32x32xf32>, vector<32x32xf32> -> vector<32x32xf32>
    %35 = arith.addf %34, %11 : vector<32x32xf32>
    %cst_37 = arith.constant 0.176776692 : f32
    %36 = vector.broadcast %cst_37 : f32 to vector<32x32xf32>
    %37 = arith.mulf %35, %36 : vector<32x32xf32>
    %38 = arith.truncf %37 : vector<32x32xf32> to vector<32x32xbf16>
    %39 = arith.truncf %15 : vector<8x32xf32> to vector<8x32xbf16>
    %cst_38 = arith.constant dense<0.000000e+00> : vector<8x32xf32>
    %40 = tpu.matmul %39, %38, %cst_38 {dimension_numbers = #tpu.dot_dimension_numbers<[1], [0], [0], [1], [0, 0, 1, 1], [], []>} : vector<8x32xbf16>, vector<32x32xbf16>, vector<8x32xf32> -> vector<8x32xf32>
    %41 = arith.truncf %40 : vector<8x32xf32> to vector<8x32xbf16>
    %42 = arith.truncf %17 : vector<8x32xf32> to vector<8x32xbf16>
    %cst_39 = arith.constant dense<0.000000e+00> : vector<8x8xf32>
    %43 = tpu.matmul %41, %42, %cst_39 {dimension_numbers = #tpu.dot_dimension_numbers<[1], [1], [0], [0], [0, 0, 1, 0], [], []>} : vector<8x32xbf16>, vector<8x32xbf16>, vector<8x8xf32> -> vector<8x8xf32>
    %44 = arith.addf %43, %1 : vector<8x8xf32>
    %cst_40 = arith.constant dense<0xFF800000> : vector<8xf32>
    %45 = vector.multi_reduction <maximumf>, %44, %cst_40 [1] : vector<8x8xf32> to vector<8xf32>
    %46 = vector.shape_cast %45 : vector<8xf32> to vector<8x1xf32>
    %47 = vector.broadcast %46 : vector<8x1xf32> to vector<8x8xf32>
    %48 = arith.subf %44, %47 : vector<8x8xf32>
    %49 = math.exp %48 : vector<8x8xf32>
    %cst_41 = arith.constant dense<0.000000e+00> : vector<8xf32>
    %50 = vector.multi_reduction <add>, %49, %cst_41 [1] : vector<8x8xf32> to vector<8xf32>
    %51 = vector.shape_cast %50 : vector<8xf32> to vector<8x1xf32>
    %52 = tpu.reciprocal %51 {approx = true} : vector<8x1xf32> -> vector<8x1xf32>
    %53 = vector.broadcast %52 : vector<8x1xf32> to vector<8x8xf32>
    %54 = arith.mulf %49, %53 : vector<8x8xf32>
    %55 = arith.truncf %54 : vector<8x8xf32> to vector<8x8xbf16>
    %56 = arith.truncf %19 : vector<8x32xf32> to vector<8x32xbf16>
    %cst_42 = arith.constant dense<0.000000e+00> : vector<8x32xf32>
    %57 = tpu.matmul %55, %56, %cst_42 {dimension_numbers = #tpu.dot_dimension_numbers<[1], [0], [0], [1], [0, 0, 1, 1], [], []>} : vector<8x8xbf16>, vector<8x32xbf16>, vector<8x32xf32> -> vector<8x32xf32>
    %c1 = arith.constant 1 : index
    %c0_43 = arith.constant 0 : index
    %c0_44 = arith.constant 0 : index
    %58 = vector.load %arg7[%c1, %c0_43, %c0_44] : memref<4x32x32xf32, #tpu.memory_space<vmem>>, vector<1x32x32xf32>
    %59 = vector.shape_cast %58 : vector<1x32x32xf32> to vector<32x32xf32>
    %c1_45 = arith.constant 1 : index
    %c0_46 = arith.constant 0 : index
    %c0_47 = arith.constant 0 : index
    %60 = vector.load %arg8[%c1_45, %c0_46, %c0_47] : memref<4x32x32xf32, #tpu.memory_space<vmem>>, vector<1x32x32xf32>
    %61 = vector.shape_cast %60 : vector<1x32x32xf32> to vector<32x32xf32>
    %c1_48 = arith.constant 1 : index
    %c0_49 = arith.constant 0 : index
    %c0_50 = arith.constant 0 : index
    %62 = vector.load %arg9[%c1_48, %c0_49, %c0_50] : memref<4x32x32xf32, #tpu.memory_space<vmem>>, vector<1x32x32xf32>
    %63 = vector.shape_cast %62 : vector<1x32x32xf32> to vector<32x32xf32>
    %c1_51 = arith.constant 1 : index
    %c0_52 = arith.constant 0 : index
    %c0_53 = arith.constant 0 : index
    %64 = vector.load %arg10[%c1_51, %c0_52, %c0_53] : memref<4x32x32xf32, #tpu.memory_space<vmem>>, vector<1x32x32xf32>
    %65 = vector.shape_cast %64 : vector<1x32x32xf32> to vector<32x32xf32>
    %c1_54 = arith.constant 1 : index
    %c0_55 = arith.constant 0 : index
    %c0_56 = arith.constant 0 : index
    %66 = vector.load %arg11[%c1_54, %c0_55, %c0_56] : memref<4x32x32xf32, #tpu.memory_space<vmem>>, vector<1x32x32xf32>
    %67 = vector.shape_cast %66 : vector<1x32x32xf32> to vector<32x32xf32>
    %c0_57 = arith.constant 0 : index
    %c1_58 = arith.constant 1 : index
    %c0_59 = arith.constant 0 : index
    %c0_60 = arith.constant 0 : index
    %68 = vector.load %arg5[%c0_57, %c1_58, %c0_59, %c0_60] : memref<1x4x32x32xf32, #tpu.memory_space<vmem>>, vector<1x1x32x32xf32>
    %69 = vector.shape_cast %68 : vector<1x1x32x32xf32> to vector<32x32xf32>
    %c0_61 = arith.constant 0 : index
    %c1_62 = arith.constant 1 : index
    %c0_63 = arith.constant 0 : index
    %c0_64 = arith.constant 0 : index
    %70 = vector.load %arg2[%c0_61, %c1_62, %c0_63, %c0_64] : memref<1x4x8x32xf32, #tpu.memory_space<vmem>>, vector<1x1x8x32xf32>
    %71 = vector.shape_cast %70 : vector<1x1x8x32xf32> to vector<8x32xf32>
    %c0_65 = arith.constant 0 : index
    %c1_66 = arith.constant 1 : index
    %c0_67 = arith.constant 0 : index
    %c0_68 = arith.constant 0 : index
    %72 = vector.load %arg3[%c0_65, %c1_66, %c0_67, %c0_68] : memref<1x4x8x32xf32, #tpu.memory_space<vmem>>, vector<1x1x8x32xf32>
    %73 = vector.shape_cast %72 : vector<1x1x8x32xf32> to vector<8x32xf32>
    %c0_69 = arith.constant 0 : index
    %c1_70 = arith.constant 1 : index
    %c0_71 = arith.constant 0 : index
    %c0_72 = arith.constant 0 : index
    %74 = vector.load %arg4[%c0_69, %c1_70, %c0_71, %c0_72] : memref<1x4x8x32xf32, #tpu.memory_space<vmem>>, vector<1x1x8x32xf32>
    %75 = vector.shape_cast %74 : vector<1x1x8x32xf32> to vector<8x32xf32>
    %cst_73 = arith.constant dense<0.000000e+00> : vector<32x32xf32>
    %76 = tpu.matmul %59, %69, %cst_73 {dimension_numbers = #tpu.dot_dimension_numbers<[1], [0], [0], [1], [0, 0, 1, 1], [], []>, precision = #tpu.contract_precision<fp32>} : vector<32x32xf32>, vector<32x32xf32>, vector<32x32xf32> -> vector<32x32xf32>
    %77 = arith.addf %76, %61 : vector<32x32xf32>
    %78 = arith.negf %77 : vector<32x32xf32>
    %79 = math.exp %78 : vector<32x32xf32>
    %cst_74 = arith.constant 1.000000e+00 : f32
    %80 = vector.broadcast %cst_74 : f32 to vector<32x32xf32>
    %81 = arith.addf %80, %79 : vector<32x32xf32>
    %82 = arith.divf %80, %81 : vector<32x32xf32>
    %83 = arith.mulf %77, %82 : vector<32x32xf32>
    %84 = arith.mulf %77, %83 : vector<32x32xf32>
    %cst_75 = arith.constant 9.99999971E-10 : f32
    %85 = vector.broadcast %cst_75 : f32 to vector<32x32xf32>
    %86 = arith.addf %84, %85 : vector<32x32xf32>
    %87 = math.log %86 : vector<32x32xf32>
    %88 = arith.mulf %63, %87 : vector<32x32xf32>
    %89 = math.exp %88 : vector<32x32xf32>
    %cst_76 = arith.constant dense<0.000000e+00> : vector<32x32xf32>
    %90 = tpu.matmul %65, %89, %cst_76 {dimension_numbers = #tpu.dot_dimension_numbers<[1], [0], [0], [1], [0, 0, 1, 1], [], []>, precision = #tpu.contract_precision<fp32>} : vector<32x32xf32>, vector<32x32xf32>, vector<32x32xf32> -> vector<32x32xf32>
    %91 = arith.addf %90, %67 : vector<32x32xf32>
    %cst_77 = arith.constant 0.176776692 : f32
    %92 = vector.broadcast %cst_77 : f32 to vector<32x32xf32>
    %93 = arith.mulf %91, %92 : vector<32x32xf32>
    %94 = arith.truncf %93 : vector<32x32xf32> to vector<32x32xbf16>
    %95 = arith.truncf %71 : vector<8x32xf32> to vector<8x32xbf16>
    %cst_78 = arith.constant dense<0.000000e+00> : vector<8x32xf32>
    %96 = tpu.matmul %95, %94, %cst_78 {dimension_numbers = #tpu.dot_dimension_numbers<[1], [0], [0], [1], [0, 0, 1, 1], [], []>} : vector<8x32xbf16>, vector<32x32xbf16>, vector<8x32xf32> -> vector<8x32xf32>
    %97 = arith.truncf %96 : vector<8x32xf32> to vector<8x32xbf16>
    %98 = arith.truncf %73 : vector<8x32xf32> to vector<8x32xbf16>
    %cst_79 = arith.constant dense<0.000000e+00> : vector<8x8xf32>
    %99 = tpu.matmul %97, %98, %cst_79 {dimension_numbers = #tpu.dot_dimension_numbers<[1], [1], [0], [0], [0, 0, 1, 0], [], []>} : vector<8x32xbf16>, vector<8x32xbf16>, vector<8x8xf32> -> vector<8x8xf32>
    %100 = arith.addf %99, %1 : vector<8x8xf32>
    %cst_80 = arith.constant dense<0xFF800000> : vector<8xf32>
    %101 = vector.multi_reduction <maximumf>, %100, %cst_80 [1] : vector<8x8xf32> to vector<8xf32>
    %102 = vector.shape_cast %101 : vector<8xf32> to vector<8x1xf32>
    %103 = vector.broadcast %102 : vector<8x1xf32> to vector<8x8xf32>
    %104 = arith.subf %100, %103 : vector<8x8xf32>
    %105 = math.exp %104 : vector<8x8xf32>
    %cst_81 = arith.constant dense<0.000000e+00> : vector<8xf32>
    %106 = vector.multi_reduction <add>, %105, %cst_81 [1] : vector<8x8xf32> to vector<8xf32>
    %107 = vector.shape_cast %106 : vector<8xf32> to vector<8x1xf32>
    %108 = tpu.reciprocal %107 {approx = true} : vector<8x1xf32> -> vector<8x1xf32>
    %109 = vector.broadcast %108 : vector<8x1xf32> to vector<8x8xf32>
    %110 = arith.mulf %105, %109 : vector<8x8xf32>
    %111 = arith.truncf %110 : vector<8x8xf32> to vector<8x8xbf16>
    %112 = arith.truncf %75 : vector<8x32xf32> to vector<8x32xbf16>
    %cst_82 = arith.constant dense<0.000000e+00> : vector<8x32xf32>
    %113 = tpu.matmul %111, %112, %cst_82 {dimension_numbers = #tpu.dot_dimension_numbers<[1], [0], [0], [1], [0, 0, 1, 1], [], []>} : vector<8x8xbf16>, vector<8x32xbf16>, vector<8x32xf32> -> vector<8x32xf32>
    %c2 = arith.constant 2 : index
    %c0_83 = arith.constant 0 : index
    %c0_84 = arith.constant 0 : index
    %114 = vector.load %arg7[%c2, %c0_83, %c0_84] : memref<4x32x32xf32, #tpu.memory_space<vmem>>, vector<1x32x32xf32>
    %115 = vector.shape_cast %114 : vector<1x32x32xf32> to vector<32x32xf32>
    %c2_85 = arith.constant 2 : index
    %c0_86 = arith.constant 0 : index
    %c0_87 = arith.constant 0 : index
    %116 = vector.load %arg8[%c2_85, %c0_86, %c0_87] : memref<4x32x32xf32, #tpu.memory_space<vmem>>, vector<1x32x32xf32>
    %117 = vector.shape_cast %116 : vector<1x32x32xf32> to vector<32x32xf32>
    %c2_88 = arith.constant 2 : index
    %c0_89 = arith.constant 0 : index
    %c0_90 = arith.constant 0 : index
    %118 = vector.load %arg9[%c2_88, %c0_89, %c0_90] : memref<4x32x32xf32, #tpu.memory_space<vmem>>, vector<1x32x32xf32>
    %119 = vector.shape_cast %118 : vector<1x32x32xf32> to vector<32x32xf32>
    %c2_91 = arith.constant 2 : index
    %c0_92 = arith.constant 0 : index
    %c0_93 = arith.constant 0 : index
    %120 = vector.load %arg10[%c2_91, %c0_92, %c0_93] : memref<4x32x32xf32, #tpu.memory_space<vmem>>, vector<1x32x32xf32>
    %121 = vector.shape_cast %120 : vector<1x32x32xf32> to vector<32x32xf32>
    %c2_94 = arith.constant 2 : index
    %c0_95 = arith.constant 0 : index
    %c0_96 = arith.constant 0 : index
    %122 = vector.load %arg11[%c2_94, %c0_95, %c0_96] : memref<4x32x32xf32, #tpu.memory_space<vmem>>, vector<1x32x32xf32>
    %123 = vector.shape_cast %122 : vector<1x32x32xf32> to vector<32x32xf32>
    %c0_97 = arith.constant 0 : index
    %c2_98 = arith.constant 2 : index
    %c0_99 = arith.constant 0 : index
    %c0_100 = arith.constant 0 : index
    %124 = vector.load %arg5[%c0_97, %c2_98, %c0_99, %c0_100] : memref<1x4x32x32xf32, #tpu.memory_space<vmem>>, vector<1x1x32x32xf32>
    %125 = vector.shape_cast %124 : vector<1x1x32x32xf32> to vector<32x32xf32>
    %c0_101 = arith.constant 0 : index
    %c2_102 = arith.constant 2 : index
    %c0_103 = arith.constant 0 : index
    %c0_104 = arith.constant 0 : index
    %126 = vector.load %arg2[%c0_101, %c2_102, %c0_103, %c0_104] : memref<1x4x8x32xf32, #tpu.memory_space<vmem>>, vector<1x1x8x32xf32>
    %127 = vector.shape_cast %126 : vector<1x1x8x32xf32> to vector<8x32xf32>
    %c0_105 = arith.constant 0 : index
    %c2_106 = arith.constant 2 : index
    %c0_107 = arith.constant 0 : index
    %c0_108 = arith.constant 0 : index
    %128 = vector.load %arg3[%c0_105, %c2_106, %c0_107, %c0_108] : memref<1x4x8x32xf32, #tpu.memory_space<vmem>>, vector<1x1x8x32xf32>
    %129 = vector.shape_cast %128 : vector<1x1x8x32xf32> to vector<8x32xf32>
    %c0_109 = arith.constant 0 : index
    %c2_110 = arith.constant 2 : index
    %c0_111 = arith.constant 0 : index
    %c0_112 = arith.constant 0 : index
    %130 = vector.load %arg4[%c0_109, %c2_110, %c0_111, %c0_112] : memref<1x4x8x32xf32, #tpu.memory_space<vmem>>, vector<1x1x8x32xf32>
    %131 = vector.shape_cast %130 : vector<1x1x8x32xf32> to vector<8x32xf32>
    %cst_113 = arith.constant dense<0.000000e+00> : vector<32x32xf32>
    %132 = tpu.matmul %115, %125, %cst_113 {dimension_numbers = #tpu.dot_dimension_numbers<[1], [0], [0], [1], [0, 0, 1, 1], [], []>, precision = #tpu.contract_precision<fp32>} : vector<32x32xf32>, vector<32x32xf32>, vector<32x32xf32> -> vector<32x32xf32>
    %133 = arith.addf %132, %117 : vector<32x32xf32>
    %134 = arith.negf %133 : vector<32x32xf32>
    %135 = math.exp %134 : vector<32x32xf32>
    %cst_114 = arith.constant 1.000000e+00 : f32
    %136 = vector.broadcast %cst_114 : f32 to vector<32x32xf32>
    %137 = arith.addf %136, %135 : vector<32x32xf32>
    %138 = arith.divf %136, %137 : vector<32x32xf32>
    %139 = arith.mulf %133, %138 : vector<32x32xf32>
    %140 = arith.mulf %133, %139 : vector<32x32xf32>
    %cst_115 = arith.constant 9.99999971E-10 : f32
    %141 = vector.broadcast %cst_115 : f32 to vector<32x32xf32>
    %142 = arith.addf %140, %141 : vector<32x32xf32>
    %143 = math.log %142 : vector<32x32xf32>
    %144 = arith.mulf %119, %143 : vector<32x32xf32>
    %145 = math.exp %144 : vector<32x32xf32>
    %cst_116 = arith.constant dense<0.000000e+00> : vector<32x32xf32>
    %146 = tpu.matmul %121, %145, %cst_116 {dimension_numbers = #tpu.dot_dimension_numbers<[1], [0], [0], [1], [0, 0, 1, 1], [], []>, precision = #tpu.contract_precision<fp32>} : vector<32x32xf32>, vector<32x32xf32>, vector<32x32xf32> -> vector<32x32xf32>
    %147 = arith.addf %146, %123 : vector<32x32xf32>
    %cst_117 = arith.constant 0.176776692 : f32
    %148 = vector.broadcast %cst_117 : f32 to vector<32x32xf32>
    %149 = arith.mulf %147, %148 : vector<32x32xf32>
    %150 = arith.truncf %149 : vector<32x32xf32> to vector<32x32xbf16>
    %151 = arith.truncf %127 : vector<8x32xf32> to vector<8x32xbf16>
    %cst_118 = arith.constant dense<0.000000e+00> : vector<8x32xf32>
    %152 = tpu.matmul %151, %150, %cst_118 {dimension_numbers = #tpu.dot_dimension_numbers<[1], [0], [0], [1], [0, 0, 1, 1], [], []>} : vector<8x32xbf16>, vector<32x32xbf16>, vector<8x32xf32> -> vector<8x32xf32>
    %153 = arith.truncf %152 : vector<8x32xf32> to vector<8x32xbf16>
    %154 = arith.truncf %129 : vector<8x32xf32> to vector<8x32xbf16>
    %cst_119 = arith.constant dense<0.000000e+00> : vector<8x8xf32>
    %155 = tpu.matmul %153, %154, %cst_119 {dimension_numbers = #tpu.dot_dimension_numbers<[1], [1], [0], [0], [0, 0, 1, 0], [], []>} : vector<8x32xbf16>, vector<8x32xbf16>, vector<8x8xf32> -> vector<8x8xf32>
    %156 = arith.addf %155, %1 : vector<8x8xf32>
    %cst_120 = arith.constant dense<0xFF800000> : vector<8xf32>
    %157 = vector.multi_reduction <maximumf>, %156, %cst_120 [1] : vector<8x8xf32> to vector<8xf32>
    %158 = vector.shape_cast %157 : vector<8xf32> to vector<8x1xf32>
    %159 = vector.broadcast %158 : vector<8x1xf32> to vector<8x8xf32>
    %160 = arith.subf %156, %159 : vector<8x8xf32>
    %161 = math.exp %160 : vector<8x8xf32>
    %cst_121 = arith.constant dense<0.000000e+00> : vector<8xf32>
    %162 = vector.multi_reduction <add>, %161, %cst_121 [1] : vector<8x8xf32> to vector<8xf32>
    %163 = vector.shape_cast %162 : vector<8xf32> to vector<8x1xf32>
    %164 = tpu.reciprocal %163 {approx = true} : vector<8x1xf32> -> vector<8x1xf32>
    %165 = vector.broadcast %164 : vector<8x1xf32> to vector<8x8xf32>
    %166 = arith.mulf %161, %165 : vector<8x8xf32>
    %167 = arith.truncf %166 : vector<8x8xf32> to vector<8x8xbf16>
    %168 = arith.truncf %131 : vector<8x32xf32> to vector<8x32xbf16>
    %cst_122 = arith.constant dense<0.000000e+00> : vector<8x32xf32>
    %169 = tpu.matmul %167, %168, %cst_122 {dimension_numbers = #tpu.dot_dimension_numbers<[1], [0], [0], [1], [0, 0, 1, 1], [], []>} : vector<8x8xbf16>, vector<8x32xbf16>, vector<8x32xf32> -> vector<8x32xf32>
    %c3 = arith.constant 3 : index
    %c0_123 = arith.constant 0 : index
    %c0_124 = arith.constant 0 : index
    %170 = vector.load %arg7[%c3, %c0_123, %c0_124] : memref<4x32x32xf32, #tpu.memory_space<vmem>>, vector<1x32x32xf32>
    %171 = vector.shape_cast %170 : vector<1x32x32xf32> to vector<32x32xf32>
    %c3_125 = arith.constant 3 : index
    %c0_126 = arith.constant 0 : index
    %c0_127 = arith.constant 0 : index
    %172 = vector.load %arg8[%c3_125, %c0_126, %c0_127] : memref<4x32x32xf32, #tpu.memory_space<vmem>>, vector<1x32x32xf32>
    %173 = vector.shape_cast %172 : vector<1x32x32xf32> to vector<32x32xf32>
    %c3_128 = arith.constant 3 : index
    %c0_129 = arith.constant 0 : index
    %c0_130 = arith.constant 0 : index
    %174 = vector.load %arg9[%c3_128, %c0_129, %c0_130] : memref<4x32x32xf32, #tpu.memory_space<vmem>>, vector<1x32x32xf32>
    %175 = vector.shape_cast %174 : vector<1x32x32xf32> to vector<32x32xf32>
    %c3_131 = arith.constant 3 : index
    %c0_132 = arith.constant 0 : index
    %c0_133 = arith.constant 0 : index
    %176 = vector.load %arg10[%c3_131, %c0_132, %c0_133] : memref<4x32x32xf32, #tpu.memory_space<vmem>>, vector<1x32x32xf32>
    %177 = vector.shape_cast %176 : vector<1x32x32xf32> to vector<32x32xf32>
    %c3_134 = arith.constant 3 : index
    %c0_135 = arith.constant 0 : index
    %c0_136 = arith.constant 0 : index
    %178 = vector.load %arg11[%c3_134, %c0_135, %c0_136] : memref<4x32x32xf32, #tpu.memory_space<vmem>>, vector<1x32x32xf32>
    %179 = vector.shape_cast %178 : vector<1x32x32xf32> to vector<32x32xf32>
    %c0_137 = arith.constant 0 : index
    %c3_138 = arith.constant 3 : index
    %c0_139 = arith.constant 0 : index
    %c0_140 = arith.constant 0 : index
    %180 = vector.load %arg5[%c0_137, %c3_138, %c0_139, %c0_140] : memref<1x4x32x32xf32, #tpu.memory_space<vmem>>, vector<1x1x32x32xf32>
    %181 = vector.shape_cast %180 : vector<1x1x32x32xf32> to vector<32x32xf32>
    %c0_141 = arith.constant 0 : index
    %c3_142 = arith.constant 3 : index
    %c0_143 = arith.constant 0 : index
    %c0_144 = arith.constant 0 : index
    %182 = vector.load %arg2[%c0_141, %c3_142, %c0_143, %c0_144] : memref<1x4x8x32xf32, #tpu.memory_space<vmem>>, vector<1x1x8x32xf32>
    %183 = vector.shape_cast %182 : vector<1x1x8x32xf32> to vector<8x32xf32>
    %c0_145 = arith.constant 0 : index
    %c3_146 = arith.constant 3 : index
    %c0_147 = arith.constant 0 : index
    %c0_148 = arith.constant 0 : index
    %184 = vector.load %arg3[%c0_145, %c3_146, %c0_147, %c0_148] : memref<1x4x8x32xf32, #tpu.memory_space<vmem>>, vector<1x1x8x32xf32>
    %185 = vector.shape_cast %184 : vector<1x1x8x32xf32> to vector<8x32xf32>
    %c0_149 = arith.constant 0 : index
    %c3_150 = arith.constant 3 : index
    %c0_151 = arith.constant 0 : index
    %c0_152 = arith.constant 0 : index
    %186 = vector.load %arg4[%c0_149, %c3_150, %c0_151, %c0_152] : memref<1x4x8x32xf32, #tpu.memory_space<vmem>>, vector<1x1x8x32xf32>
    %187 = vector.shape_cast %186 : vector<1x1x8x32xf32> to vector<8x32xf32>
    %cst_153 = arith.constant dense<0.000000e+00> : vector<32x32xf32>
    %188 = tpu.matmul %171, %181, %cst_153 {dimension_numbers = #tpu.dot_dimension_numbers<[1], [0], [0], [1], [0, 0, 1, 1], [], []>, precision = #tpu.contract_precision<fp32>} : vector<32x32xf32>, vector<32x32xf32>, vector<32x32xf32> -> vector<32x32xf32>
    %189 = arith.addf %188, %173 : vector<32x32xf32>
    %190 = arith.negf %189 : vector<32x32xf32>
    %191 = math.exp %190 : vector<32x32xf32>
    %cst_154 = arith.constant 1.000000e+00 : f32
    %192 = vector.broadcast %cst_154 : f32 to vector<32x32xf32>
    %193 = arith.addf %192, %191 : vector<32x32xf32>
    %194 = arith.divf %192, %193 : vector<32x32xf32>
    %195 = arith.mulf %189, %194 : vector<32x32xf32>
    %196 = arith.mulf %189, %195 : vector<32x32xf32>
    %cst_155 = arith.constant 9.99999971E-10 : f32
    %197 = vector.broadcast %cst_155 : f32 to vector<32x32xf32>
    %198 = arith.addf %196, %197 : vector<32x32xf32>
    %199 = math.log %198 : vector<32x32xf32>
    %200 = arith.mulf %175, %199 : vector<32x32xf32>
    %201 = math.exp %200 : vector<32x32xf32>
    %cst_156 = arith.constant dense<0.000000e+00> : vector<32x32xf32>
    %202 = tpu.matmul %177, %201, %cst_156 {dimension_numbers = #tpu.dot_dimension_numbers<[1], [0], [0], [1], [0, 0, 1, 1], [], []>, precision = #tpu.contract_precision<fp32>} : vector<32x32xf32>, vector<32x32xf32>, vector<32x32xf32> -> vector<32x32xf32>
    %203 = arith.addf %202, %179 : vector<32x32xf32>
    %cst_157 = arith.constant 0.176776692 : f32
    %204 = vector.broadcast %cst_157 : f32 to vector<32x32xf32>
    %205 = arith.mulf %203, %204 : vector<32x32xf32>
    %206 = arith.truncf %205 : vector<32x32xf32> to vector<32x32xbf16>
    %207 = arith.truncf %183 : vector<8x32xf32> to vector<8x32xbf16>
    %cst_158 = arith.constant dense<0.000000e+00> : vector<8x32xf32>
    %208 = tpu.matmul %207, %206, %cst_158 {dimension_numbers = #tpu.dot_dimension_numbers<[1], [0], [0], [1], [0, 0, 1, 1], [], []>} : vector<8x32xbf16>, vector<32x32xbf16>, vector<8x32xf32> -> vector<8x32xf32>
    %209 = arith.truncf %208 : vector<8x32xf32> to vector<8x32xbf16>
    %210 = arith.truncf %185 : vector<8x32xf32> to vector<8x32xbf16>
    %cst_159 = arith.constant dense<0.000000e+00> : vector<8x8xf32>
    %211 = tpu.matmul %209, %210, %cst_159 {dimension_numbers = #tpu.dot_dimension_numbers<[1], [1], [0], [0], [0, 0, 1, 0], [], []>} : vector<8x32xbf16>, vector<8x32xbf16>, vector<8x8xf32> -> vector<8x8xf32>
    %212 = arith.addf %211, %1 : vector<8x8xf32>
    %cst_160 = arith.constant dense<0xFF800000> : vector<8xf32>
    %213 = vector.multi_reduction <maximumf>, %212, %cst_160 [1] : vector<8x8xf32> to vector<8xf32>
    %214 = vector.shape_cast %213 : vector<8xf32> to vector<8x1xf32>
    %215 = vector.broadcast %214 : vector<8x1xf32> to vector<8x8xf32>
    %216 = arith.subf %212, %215 : vector<8x8xf32>
    %217 = math.exp %216 : vector<8x8xf32>
    %cst_161 = arith.constant dense<0.000000e+00> : vector<8xf32>
    %218 = vector.multi_reduction <add>, %217, %cst_161 [1] : vector<8x8xf32> to vector<8xf32>
    %219 = vector.shape_cast %218 : vector<8xf32> to vector<8x1xf32>
    %220 = tpu.reciprocal %219 {approx = true} : vector<8x1xf32> -> vector<8x1xf32>
    %221 = vector.broadcast %220 : vector<8x1xf32> to vector<8x8xf32>
    %222 = arith.mulf %217, %221 : vector<8x8xf32>
    %223 = arith.truncf %222 : vector<8x8xf32> to vector<8x8xbf16>
    %224 = arith.truncf %187 : vector<8x32xf32> to vector<8x32xbf16>
    %cst_162 = arith.constant dense<0.000000e+00> : vector<8x32xf32>
    %225 = tpu.matmul %223, %224, %cst_162 {dimension_numbers = #tpu.dot_dimension_numbers<[1], [0], [0], [1], [0, 0, 1, 1], [], []>} : vector<8x8xbf16>, vector<8x32xbf16>, vector<8x32xf32> -> vector<8x32xf32>
    %226 = tpu.concatenate %57, %113, %169, %225 in 1 : vector<8x32xf32>, vector<8x32xf32>, vector<8x32xf32>, vector<8x32xf32> -> vector<8x128xf32>
    %c0_163 = arith.constant 0 : index
    %c0_164 = arith.constant 0 : index
    %c0_165 = arith.constant 0 : index
    %227 = vector.load %arg12[%c0_163, %c0_164, %c0_165] : memref<1x8x128xf32, #tpu.memory_space<vmem>>, vector<1x8x128xf32>
    %228 = vector.shape_cast %227 : vector<1x8x128xf32> to vector<8x128xf32>
    %229 = vector.shape_cast %226 : vector<8x128xf32> to vector<1x8x128xf32>
    tpu.vector_store %arg12[%c0_163, %c0_164, %c0_165], %229 {strides = array<i32>} : memref<1x8x128xf32, #tpu.memory_space<vmem>>, vector<1x8x128xf32>,
    %230 = tpu.concatenate %30, %86, %142, %198 in 1 : vector<32x32xf32>, vector<32x32xf32>, vector<32x32xf32>, vector<32x32xf32> -> vector<32x128xf32>
    %c0_166 = arith.constant 0 : index
    %c0_167 = arith.constant 0 : index
    %c0_168 = arith.constant 0 : index
    %231 = vector.load %arg13[%c0_166, %c0_167, %c0_168] : memref<1x32x128xf32, #tpu.memory_space<vmem>>, vector<1x32x128xf32>
    %232 = vector.shape_cast %231 : vector<1x32x128xf32> to vector<32x128xf32>
    %233 = vector.shape_cast %230 : vector<32x128xf32> to vector<1x32x128xf32>
    tpu.vector_store %arg13[%c0_166, %c0_167, %c0_168], %233 {strides = array<i32>} : memref<1x32x128xf32, #tpu.memory_space<vmem>>, vector<1x32x128xf32>,
    %234 = tpu.concatenate %35, %91, %147, %203 in 1 : vector<32x32xf32>, vector<32x32xf32>, vector<32x32xf32>, vector<32x32xf32> -> vector<32x128xf32>
    %c0_169 = arith.constant 0 : index
    %c0_170 = arith.constant 0 : index
    %c0_171 = arith.constant 0 : index
    %235 = vector.load %arg14[%c0_169, %c0_170, %c0_171] : memref<1x32x128xf32, #tpu.memory_space<vmem>>, vector<1x32x128xf32>
    %236 = vector.shape_cast %235 : vector<1x32x128xf32> to vector<32x128xf32>
    %237 = vector.shape_cast %234 : vector<32x128xf32> to vector<1x32x128xf32>
    tpu.vector_store %arg14[%c0_169, %c0_170, %c0_171], %237 {strides = array<i32>} : memref<1x32x128xf32, #tpu.memory_space<vmem>>, vector<1x32x128xf32>,
    %238 = tpu.concatenate %43, %99, %155, %211 in 1 : vector<8x8xf32>, vector<8x8xf32>, vector<8x8xf32>, vector<8x8xf32> -> vector<8x32xf32>
    %c0_172 = arith.constant 0 : index
    %c0_173 = arith.constant 0 : index
    %c0_174 = arith.constant 0 : index
    %239 = vector.load %arg15[%c0_172, %c0_173, %c0_174] : memref<1x8x32xf32, #tpu.memory_space<vmem>>, vector<1x8x32xf32>
    %240 = vector.shape_cast %239 : vector<1x8x32xf32> to vector<8x32xf32>
    %241 = vector.shape_cast %238 : vector<8x32xf32> to vector<1x8x32xf32>
    tpu.vector_store %arg15[%c0_172, %c0_173, %c0_174], %241 {strides = array<i32>} : memref<1x8x32xf32, #tpu.memory_space<vmem>>, vector<1x8x32xf32>,
    return
  }
  func.func @transform_0(%arg0: i32, %arg1: i32) -> (i32, i32, i32, i32) {
    %c0_i32 = arith.constant 0 : i32
    %c0_i32_0 = arith.constant 0 : i32
    %c0_i32_1 = arith.constant 0 : i32
    return %arg0, %arg1, %c0_i32, %c0_i32_0 : i32, i32, i32, i32
  }
  func.func @transform_1(%arg0: i32, %arg1: i32) -> (i32, i32, i32, i32) {
    %c0_i32 = arith.constant 0 : i32
    %c0_i32_0 = arith.constant 0 : i32
    %c0_i32_1 = arith.constant 0 : i32
    return %arg0, %arg1, %c0_i32, %c0_i32_0 : i32, i32, i32, i32
  }
  func.func @transform_2(%arg0: i32, %arg1: i32) -> (i32, i32, i32, i32) {
    %c0_i32 = arith.constant 0 : i32
    %c0_i32_0 = arith.constant 0 : i32
    %c0_i32_1 = arith.constant 0 : i32
    return %arg0, %arg1, %c0_i32, %c0_i32_0 : i32, i32, i32, i32
  }
  func.func @transform_3(%arg0: i32, %arg1: i32) -> (i32, i32, i32, i32) {
    %c0_i32 = arith.constant 0 : i32
    %c0_i32_0 = arith.constant 0 : i32
    %c0_i32_1 = arith.constant 0 : i32
    return %arg0, %arg1, %c0_i32, %c0_i32_0 : i32, i32, i32, i32
  }
  func.func @transform_4(%arg0: i32, %arg1: i32) -> (i32, i32, i32, i32) {
    %c0_i32 = arith.constant 0 : i32
    %c0_i32_0 = arith.constant 0 : i32
    %c0_i32_1 = arith.constant 0 : i32
    %c0_i32_2 = arith.constant 0 : i32
    %c0_i32_3 = arith.constant 0 : i32
    return %c0_i32, %c0_i32_0, %c0_i32_1, %c0_i32_2 : i32, i32, i32, i32
  }
  func.func @transform_5(%arg0: i32, %arg1: i32) -> (i32, i32, i32) {
    %c0_i32 = arith.constant 0 : i32
    %c0_i32_0 = arith.constant 0 : i32
    %c0_i32_1 = arith.constant 0 : i32
    return %arg1, %c0_i32, %c0_i32_0 : i32, i32, i32
  }
  func.func @transform_6(%arg0: i32, %arg1: i32) -> (i32, i32, i32) {
    %c0_i32 = arith.constant 0 : i32
    %c0_i32_0 = arith.constant 0 : i32
    %c0_i32_1 = arith.constant 0 : i32
    return %arg1, %c0_i32, %c0_i32_0 : i32, i32, i32
  }
  func.func @transform_7(%arg0: i32, %arg1: i32) -> (i32, i32, i32) {
    %c0_i32 = arith.constant 0 : i32
    %c0_i32_0 = arith.constant 0 : i32
    %c0_i32_1 = arith.constant 0 : i32
    return %arg1, %c0_i32, %c0_i32_0 : i32, i32, i32
  }
  func.func @transform_8(%arg0: i32, %arg1: i32) -> (i32, i32, i32) {
    %c0_i32 = arith.constant 0 : i32
    %c0_i32_0 = arith.constant 0 : i32
    %c0_i32_1 = arith.constant 0 : i32
    return %arg1, %c0_i32, %c0_i32_0 : i32, i32, i32
  }
  func.func @transform_9(%arg0: i32, %arg1: i32) -> (i32, i32, i32) {
    %c0_i32 = arith.constant 0 : i32
    %c0_i32_0 = arith.constant 0 : i32
    %c0_i32_1 = arith.constant 0 : i32
    return %arg1, %c0_i32, %c0_i32_0 : i32, i32, i32
  }
  func.func @transform_10(%arg0: i32, %arg1: i32) -> (i32, i32, i32) {
    %c0_i32 = arith.constant 0 : i32
    %c0_i32_0 = arith.constant 0 : i32
    return %arg0, %c0_i32, %arg1 : i32, i32, i32
  }
  func.func @transform_11(%arg0: i32, %arg1: i32) -> (i32, i32, i32) {
    %c0_i32 = arith.constant 0 : i32
    %c0_i32_0 = arith.constant 0 : i32
    return %arg0, %c0_i32, %arg1 : i32, i32, i32
  }
  func.func @transform_12(%arg0: i32, %arg1: i32) -> (i32, i32, i32) {
    %c0_i32 = arith.constant 0 : i32
    %c0_i32_0 = arith.constant 0 : i32
    return %arg0, %c0_i32, %arg1 : i32, i32, i32
  }
  func.func @transform_13(%arg0: i32, %arg1: i32) -> (i32, i32, i32) {
    %c0_i32 = arith.constant 0 : i32
    %c0_i32_0 = arith.constant 0 : i32
    return %arg0, %c0_i32, %arg1 : i32, i32, i32
  }
}

</mosaic_0001>

<bundles_post_ra>
// kernel: tpu_custom_call.1
= control target key start
LH: loop header
LB: loop body
LE: loop exit
PB: predicated region body
PF: predicated region fallthrough
CT: control target
= control target key end

     0   :  { %s11097_s0 = inlined_call_operand.hbm [shape: f32[2,4,8,32], index: 0, kind: input, shape index: {}]   ;;  %s11098_s1 = inlined_call_operand.hbm [shape: f32[2,4,8,32], index: 1, kind: input, shape index: {}]   ;;  %s11099_s2 = inlined_call_operand.hbm [shape: f32[2,4,8,32], index: 2, kind: input, shape index: {}]   ;;  %s11100_s3 = inlined_call_operand.hbm [shape: f32[2,4,32,32], index: 3, kind: input, shape index: {}]   ;;  %s11101_s4 = inlined_call_operand.hbm [shape: f32[1,1,8,8], index: 4, kind: input, shape index: {}]   ;;  %s11102_s5 = inlined_call_operand.hbm [shape: f32[4,32,32], index: 5, kind: input, shape index: {}]   ;;  %s11103_s6 = inlined_call_operand.hbm [shape: f32[4,32,32], index: 6, kind: input, shape index: {}]   ;;  %s11104_s7 = inlined_call_operand.hbm [shape: f32[4,32,32], index: 7, kind: input, shape index: {}]   ;;  %s11105_s8 = inlined_call_operand.hbm [shape: f32[4,32,32], index: 8, kind: input, shape index: {}]   ;;  %s11106_s9 = inlined_call_operand.hbm [shape: f32[4,32,32], index: 9, kind: input, shape index: {}]   ;;  %s11107_s10 = inlined_call_operand.hbm [shape: f32[2,8,128], index: 10, kind: output, shape index: {0}]   ;;  %s11108_s11 = inlined_call_operand.hbm [shape: f32[2,32,128], index: 11, kind: output, shape index: {1}]   ;;  %s11109_s12 = inlined_call_operand.hbm [shape: f32[2,32,128], index: 12, kind: output, shape index: {2}]   ;;  %s11110_s13 = inlined_call_operand.hbm [shape: f32[2,8,32], index: 13, kind: output, shape index: {3}]  }
   0x1   :  { %11150 = sst [smem:[#allocation50_spill]] %s11097_s0 }
   0x2   :  { %11151 = sst [smem:[#allocation51_spill]] %s11098_s1 }
   0x3   :  { %11152 = sst [smem:[#allocation52_spill]] %s11101_s4 }
   0x4   :  { %11153 = sst [smem:[#allocation53_spill]] %s11102_s5 }
   0x5   :  { %11154 = sst [smem:[#allocation54_spill]] %s11104_s7 }
   0x6   :  { %11155 = sst [smem:[#allocation55_spill]] %s11107_s10 }
   0x7   :  { %11156 = sst [smem:[#allocation56_spill]] %s11108_s11 }
   0x8   :  { %11157 = sst [smem:[#allocation57_spill]] %s11109_s12 }
   0x9   :  { %11158 = sst [smem:[#allocation58_spill]] %s11110_s13 }
   0xa   :  { %19 = vsyncpa [#allocation3], 0 }
   0xb   :  { %21 = vsyncpa [#allocation3 + $0x1], 0 }
   0xc   :  { %22 = vsyncpa [#allocation6], 0 }
   0xd   :  { %24 = vsyncpa [#allocation6 + $0x1], 0 }
   0xe   :  { %25 = vsyncpa [#allocation9], 0 }
   0xf   :  { %27 = vsyncpa [#allocation9 + $0x1], 0 }
  0x10   :  { %28 = vsyncpa [#allocation12], 0 }
  0x11   :  { %29 = vsyncpa [#allocation15], 0 }
  0x12   :  { %30 = vsyncpa [#allocation18], 0 }
  0x13   :  { %31 = vsyncpa [#allocation4], 0 }
  0x14   :  { %33 = vsyncpa [#allocation4 + $0x1], 0 }
  0x15   :  { %34 = vsyncpa [#allocation21], 0 }
  0x16   :  { %36 = vsyncpa [#allocation21 + $0x1], 0 }
  0x17   :  { %37 = vsyncpa [#allocation24], 0 }
  0x18   :  { %39 = vsyncpa [#allocation24 + $0x1], 0  ;;  %s9480_s25 = smov 0   ;;  %s9482_s26 = smov 0  }
  0x19   :  { %s9484_s27 = smov 0   ;;  %s9486_s28 = smov 0  }
  0x1a   :  { %s9488_s29 = smov 0   ;;  %s9490_s30 = smov 0  }
  0x1b LB: > { %11159 = sst [smem:[#allocation35_spill]] %s9363_s25  ;;  %s9511_s14 = sadd.s32 4294967295, %s9383_s30   ;;  %s9383_s30 = sphi %s9490_s30, %s45_s30   ;;  %s9379_s29 = sphi %s9488_s29, %s11238_s29   ;;  %s9375_s28 = sphi %s9486_s28, %s11237_s28   ;;  %s9371_s27 = sphi %s9484_s27, %s11233_s27   ;;  %s9367_s26 = sphi %s9482_s26, %s11236_s26   ;;  %s9363_s25 = sphi %s9480_s25, %s11235_s25  }
  0x1c   : > { %11160 = sst [smem:[#allocation36_spill]] %s9371_s27  ;;  %p7350_p0 = scmp.ge.s32.totalorder %s9383_s30, 1 }
  0x1d   : > { %11161 = sst [smem:[#allocation37_spill]] %s9375_s28  ;;  %p11111_p1 = scmp.eq.s32.totalorder %s9511_s14, 0 }
  0x1e   : > { %p437_p2 = scmp.lt.s32.totalorder %s9383_s30, 3  ;;  %s9385_s16 = smov [#allocation10]  }
  0x1f   : > { %s450_s17 = sshll.u32 %s9385_s16, 4  ;;  %s9386_s18 = smov [#allocation11]   ;;  %s451_s17 = int_to_ptr.vmem [resolvable:$true] %s450_s17 }
  0x20   : > { %p9516_p3 = pnand %p7350_p0, %p437_p2  ;;  %s464_s19 = sshll.u32 %s9386_s18, 4  ;;  %s465_s19 = int_to_ptr.vmem [resolvable:$true] %s464_s19 }
  0x21   : > { %s9387_s21 = smov [#allocation14]   ;;  %s8936_s24 = scalar_lea.vmem %s451_s17, 128 }
  0x22   : > { %s11162_s15 = scalar_select %p9516_p3, 1, 0 }
  0x23   : > { %p8656_p5 = pneg %p9516_p3  ;;  %s498_s22 = sshll.u32 %s9387_s21, 4  ;;  %s499_s22 = int_to_ptr.vmem [resolvable:$true] %s498_s22 }
  0x24   : > { %p8937_p8 = scmp.ne.s32.totalorder %s451_s17, %s8936_s24  ;;  %p8944_p11 = scmp.lt.s32.totalorder %s451_s17, %s451_s17 }
  0x25   : > { %p9525_p6 = pnand %p8656_p5, %p11111_p1  ;;  %p8945_p12 = scmp.lt.s32.totalorder %s8936_s24, %s8936_s24 }
  0x27   : > { %p9531_p7 = pneg %p9525_p6  ;;  %p8946_p13 = por %p8945_p12, %p8944_p11 }
  0x29   : > { %p8939_p9 = pnand %p8937_p8, %p9531_p7 }
  0x2b   : > { %p8940_p10 = pneg %p8939_p9 }
  0x2d   : > { %p8947_p0 = pnand %p8946_p13, %p8940_p10 }
  0x2f   : > { %8950 = shalt.err (!%p8947_p0)
}
  0x30   : > { %s11165_s4 = sld [smem:[#allocation52_spill]]  ;;  %s8962_s21 = scalar_lea.vmem %s465_s19, 2048 }
  0x31   : > { %p8963_p2 = scmp.ne.s32.totalorder %s465_s19, %s8962_s21  ;;  %p8970_p1 = scmp.lt.s32.totalorder %s465_s19, %s465_s19 }
  0x32   : > { %p8971_p8 = scmp.lt.s32.totalorder %s8962_s21, %s8962_s21 }
  0x33   : > { %p8965_p5 = pnand %p8963_p2, %p9531_p7 }
  0x34   : > { %p8972_p9 = por %p8971_p8, %p8970_p1 }
  0x35   : > { %p8966_p4 = pneg %p8965_p5 }
  0x36   : > { %8659 = dma.hbm_to_vmem [thread:$0]  (!%p9525_p6), %s11165_s4, 128, %s451_s17, [#allocation9]  }
  0x37   : > { %p8973_p3 = pnand %p8972_p9, %p8966_p4 }
  0x39   : > { %8976 = shalt.err (!%p8973_p3)
}
  0x3a   : > { %s11114_s24 = smov 128   ;;  %s11116_s12 = smov 8  }
  0x3b   : > { %s11166_s5 = sld [smem:[#allocation53_spill]]  ;;  %s8988_s18 = scalar_lea.vmem %s499_s22, 2048 }
  0x3c   : > { %p8989_p10 = scmp.ne.s32.totalorder %s499_s22, %s8988_s18  ;;  %p8996_p4 = scmp.lt.s32.totalorder %s499_s22, %s499_s22 }
  0x3d   : > { %p8997_p3 = scmp.lt.s32.totalorder %s8988_s18, %s8988_s18 }
  0x3e   : > { %p8991_p11 = pnand %p8989_p10, %p9531_p7 }
  0x3f   : > { %p8998_p12 = por %p8997_p3, %p8996_p4 }
  0x40   : > { %p8992_p1 = pneg %p8991_p11 }
  0x41   : > { %8662 = dma.hbm_to_vmem [thread:$0]  (!%p9525_p6), %s11166_s5, 2048, %s465_s19, [#allocation12], %s11114_s24, %s11114_s24, %s11116_s12  }
  0x42   : > { %p8999_p13 = pnand %p8998_p12, %p8992_p1 }
  0x44   : > { %9002 = shalt.err (!%p8999_p13)
}
  0x45   : > { %s11167_s7 = sld [smem:[#allocation54_spill]]  ;;  %s11118_s19 = sadd.s32 4294967294, %s9383_s30  }
  0x46   : > { %s57_s16 = sadd.s32 1, %s9379_s29  ;;  %s66_s17 = sadd.s32 1, %s9371_s27 }
  0x47   : > { %p59_p0 = scmp.ge.s32.totalorder %s57_s16, 2  ;;  %p73_p2 = scmp.ne.s32.totalorder %s9371_s27, %s9367_s26 }
  0x48   : > { %p74_p5 = scmp.eq.s32.totalorder %s9383_s30, 0  ;;  %p79_p8 = scmp.ne.s32.totalorder %s9367_s26, %s9363_s25 }
  0x49   : > { %s11240_s16 = smov (%p59_p0, %s57_s16), 0  ;;  %p11170_p10 = scmp.eq.s32.totalorder %s9511_s14, 0 }
  0x4a   : > { %11168 = sst [smem:[#allocation38_spill]] %s11240_s16  ;;  %p9572_p9 = por %p74_p5, %p73_p2 }
  0x4b   : > { %8668 = dma.hbm_to_vmem [thread:$0]  (!%p9525_p6), %s11167_s7, 2048, %s499_s22, [#allocation15], %s11114_s24, %s11114_s24, %s11116_s12  }
  0x4c   : > { %p9578_p11 = por %p11170_p10, %p79_p8  ;;  %s61_s18 = ssub.s32 %s9379_s29, %s11240_s16 }
  0x4d   : > { %p340_p1 = scmp.eq.s32.totalorder %s9511_s14, 1  ;;  %p64_p4 = scmp.eq.s32.totalorder %s61_s18, 0 }
  0x4e   : > { %p346_p3 = scmp.eq.s32.totalorder %s11118_s19, 1  ;;  %p8707_p13 = scmp.lt.s32.totalorder %s9383_s30, 2 }
  0x4f   : > { %p9587_p12 = por %p340_p1, %p73_p2  ;;  %s9600_s5 = sand.u32 1, %s9371_s27  }
  0x50   : > { %s9593_s24 = scalar_select %p64_p4, %s9371_s27, %s66_s17  }
  0x51   : > { %s11172_s21 = scalar_select %p9587_p12, 1, 0 }
  0x52   : > { %11174 = sst [smem:[#allocation40_spill]] %s9593_s24  ;;  %p9595_p0 = por %p346_p3, %p79_p8 }
  0x53   : > { %11173 = sst [smem:[#allocation39_spill]] %s11172_s21  ;;  %s9603_s7 = sshll.u32 %s9600_s5, 5 }
  0x54   : > { %s11175_s12 = scalar_select %p9595_p0, 1, 0 }
  0x55   : > { %s9606_s18 = sshll.u32 %s9379_s29, 9  ;;  %p9610_p2 = pnand %p8707_p13, %p9572_p9 }
  0x56   : > { %11176 = sst [smem:[#allocation41_spill]] %s11175_s12  ;;  %s11128_s17 = sand.u32 1, %s9383_s30  }
  0x57   : > { %s11178_s1 = sld [smem:[#allocation51_spill]]  ;;  %s573_s12 = scalar_lea.vmem [#allocation5], %s9603_s7 }
  0x58   : > { %s582_s25 = sshll.u32 %s573_s12, 4  ;;  %s9622_s10 = scalar_lea.sflag [#allocation6], %s11128_s17  ;;  %s583_s25 = int_to_ptr.vmem [resolvable:$true] %s582_s25 }
  0x59   : > { %p11130_p5 = pneg %p9610_p2  ;;  %s9016_s4 = scalar_lea.vmem %s583_s25, 512 }
  0x5a   : > { %p9017_p8 = scmp.ne.s32.totalorder %s583_s25, %s9016_s4  ;;  %s9390_s13 = smov [#allocation5]  }
  0x5b   : > { %s9021_s11 = sshll.u32 %s9390_s13, 4  ;;  %s9022_s11 = int_to_ptr.vmem [resolvable:$false] %s9021_s11 }
  0x5c   : > { %p9019_p9 = pnand %p9017_p8, %p11130_p5  ;;  %s9023_s21 = scalar_lea.vmem %s9022_s11, 1024 }
  0x5d   : > { %s581_s27 = scalar_lea.hbm %s11178_s1, %s9606_s18  ;;  %p9024_p1 = scmp.lt.s32.totalorder %s583_s25, %s9022_s11 }
  0x5e   : > { %p9020_p10 = pneg %p9019_p9  ;;  %p9025_p4 = scmp.lt.s32.totalorder %s9023_s21, %s9016_s4 }
  0x60   : > { %p9026_p3 = por %p9025_p4, %p9024_p1 }
  0x62   : > { %p9027_p13 = pnand %p9026_p3, %p9020_p10 }
  0x64   : > { %9030 = shalt.err (!%p9027_p13)
}
  0x65   : > { %s11179_s12 = smov 8   ;;  %s11180_s24 = smov 128  }
  0x66   : > { %8681 = dma.hbm_to_vmem [thread:$0]  (!%p9610_p2), %s581_s27, 512, %s583_s25, %s9622_s10, %s11180_s24, %s11180_s24, %s11179_s12  }
  0x67   : > { %s9391_s16 = smov [#allocation13]   ;;  %s9392_s1 = smov [#allocation16]  }
  0x68   : > { %s481_s17 = sshll.u32 %s9391_s16, 4  ;;  %s515_s13 = sshll.u32 %s9392_s1, 4  ;;  %s482_s17 = int_to_ptr.vmem [resolvable:$true] %s481_s17  ;;  %s516_s13 = int_to_ptr.vmem [resolvable:$true] %s515_s13 }
  0x69   : > { %s9042_s28 = scalar_lea.vmem %s482_s17, 2048  ;;  %p9050_p10 = scmp.lt.s32.totalorder %s482_s17, %s482_s17 }
  0x6a   : > { %p9043_p8 = scmp.ne.s32.totalorder %s482_s17, %s9042_s28  ;;  %p9051_p4 = scmp.lt.s32.totalorder %s9042_s28, %s9042_s28 }
  0x6c   : > { %p9045_p9 = pnand %p9043_p8, %p9531_p7  ;;  %p9052_p3 = por %p9051_p4, %p9050_p10 }
  0x6e   : > { %p9046_p1 = pneg %p9045_p9 }
  0x70   : > { %p9053_p13 = pnand %p9052_p3, %p9046_p1 }
  0x72   : > { %9056 = shalt.err (!%p9053_p13)
}
  0x73   : > { %8665 = dma.hbm_to_vmem [thread:$0]  (!%p9525_p6), %s11103_s6, 2048, %s482_s17, [#allocation12], %s11180_s24, %s11180_s24, %s11179_s12  }
  0x74   : > { %s9068_s1 = scalar_lea.vmem %s516_s13, 2048  ;;  %p9076_p0 = scmp.lt.s32.totalorder %s516_s13, %s516_s13 }
  0x75   : > { %p9069_p5 = scmp.ne.s32.totalorder %s516_s13, %s9068_s1  ;;  %p9077_p10 = scmp.lt.s32.totalorder %s9068_s1, %s9068_s1 }
  0x77   : > { %p9071_p8 = pnand %p9069_p5, %p9531_p7  ;;  %p9078_p1 = por %p9077_p10, %p9076_p0 }
  0x79   : > { %p9072_p9 = pneg %p9071_p8 }
  0x7b   : > { %p9079_p4 = pnand %p9078_p1, %p9072_p9 }
  0x7d   : > { %9082 = shalt.err (!%p9079_p4)
}
  0x7e   : > { %8671 = dma.hbm_to_vmem [thread:$0]  (!%p9525_p6), %s11105_s8, 2048, %s516_s13, [#allocation15], %s11180_s24, %s11180_s24, %s11179_s12  }
  0x7f   : > { %s9393_s21 = smov [#allocation17]  }
  0x80   : > { %s532_s17 = sshll.u32 %s9393_s21, 4  ;;  %s533_s17 = int_to_ptr.vmem [resolvable:$true] %s532_s17 }
  0x81   : > { %s9094_s4 = scalar_lea.vmem %s533_s17, 2048  ;;  %p9102_p13 = scmp.lt.s32.totalorder %s533_s17, %s533_s17 }
  0x82   : > { %p9095_p5 = scmp.ne.s32.totalorder %s533_s17, %s9094_s4  ;;  %p9103_p8 = scmp.lt.s32.totalorder %s9094_s4, %s9094_s4 }
  0x84   : > { %p9097_p3 = pnand %p9095_p5, %p9531_p7  ;;  %p9104_p9 = por %p9103_p8, %p9102_p13 }
  0x86   : > { %p9098_p0 = pneg %p9097_p3 }
  0x88   : > { %p9105_p10 = pnand %p9104_p9, %p9098_p0 }
  0x8a   : > { %9108 = shalt.err (!%p9105_p10)
}
  0x8b   : > { %8674 = dma.hbm_to_vmem [thread:$0]  (!%p9525_p6), %s11106_s9, 2048, %s533_s17, [#allocation18], %s11180_s24, %s11180_s24, %s11179_s12  }
  0x8c   : > { %s11181_s0 = sld [smem:[#allocation50_spill]]  ;;  %s550_s1 = scalar_lea.vmem [#allocation2], %s9603_s7 }
  0x8d   : > { %s559_s27 = sshll.u32 %s550_s1, 4  ;;  %s547_s28 = scalar_lea.sflag [#allocation3], %s9600_s5  ;;  %s560_s27 = int_to_ptr.vmem [resolvable:$true] %s559_s27 }
  0x8e   : > { %s9122_s20 = scalar_lea.vmem %s560_s27, 512  ;;  %p11182_p1 = pneg %p9610_p2 }
  0x8f   : > { %p9123_p7 = scmp.ne.s32.totalorder %s560_s27, %s9122_s20  ;;  %s9394_s21 = smov [#allocation2]  }
  0x90   : > { %s9127_s4 = sshll.u32 %s9394_s21, 4  ;;  %s9128_s4 = int_to_ptr.vmem [resolvable:$false] %s9127_s4 }
  0x91   : > { %p9125_p4 = pnand %p9123_p7, %p11182_p1  ;;  %s9129_s16 = scalar_lea.vmem %s9128_s4, 1024 }
  0x92   : > { %s558_s25 = scalar_lea.hbm %s11181_s0, %s9606_s18  ;;  %p9130_p3 = scmp.lt.s32.totalorder %s560_s27, %s9128_s4 }
  0x93   : > { %p9126_p5 = pneg %p9125_p4  ;;  %p9131_p6 = scmp.lt.s32.totalorder %s9129_s16, %s9122_s20 }
  0x95   : > { %p9132_p0 = por %p9131_p6, %p9130_p3 }
  0x97   : > { %p9133_p13 = pnand %p9132_p0, %p9126_p5 }
  0x99   : > { %9136 = shalt.err (!%p9133_p13)
}
  0x9a   : > { %8678 = dma.hbm_to_vmem [thread:$0]  (!%p9610_p2), %s558_s25, 512, %s560_s27, %s547_s28, %s11180_s24, %s11180_s24, %s11179_s12  }
  0x9b   : > { %s604_s23 = scalar_lea.hbm %s11099_s2, %s9606_s18  ;;  %s596_s11 = scalar_lea.vmem [#allocation7], %s9603_s7 }
  0x9c   : > { %s605_s1 = sshll.u32 %s596_s11, 4  ;;  %s7367_s20 = sshll.u32 %s9600_s5, 7  ;;  %s606_s1 = int_to_ptr.vmem [resolvable:$true] %s605_s1 }
  0x9d   : > { %s9150_s21 = scalar_lea.vmem %s606_s1, 512  ;;  %p11183_p9 = pmov %p11182_p1 }
  0x9e   : > { %p9151_p8 = scmp.ne.s32.totalorder %s606_s1, %s9150_s21  ;;  %s9395_s4 = smov [#allocation7]  }
  0x9f   : > { %s9155_s16 = sshll.u32 %s9395_s4, 4  ;;  %s9156_s16 = int_to_ptr.vmem [resolvable:$false] %s9155_s16 }
  0xa0   : > { %p9153_p10 = pnand %p9151_p8, %p11183_p9  ;;  %s9157_s0 = scalar_lea.vmem %s9156_s16, 1024 }
  0xa1   : > { %p9158_p1 = scmp.lt.s32.totalorder %s606_s1, %s9156_s16  ;;  %p9159_p4 = scmp.lt.s32.totalorder %s9157_s0, %s9150_s21 }
  0xa2   : > { %p9154_p7 = pneg %p9153_p10 }
  0xa3   : > { %p9160_p5 = por %p9159_p4, %p9158_p1 }
  0xa5   : > { %p9161_p3 = pnand %p9160_p5, %p9154_p7 }
  0xa7   : > { %9164 = shalt.err (!%p9161_p3)
}
  0xa8   : > { %8684 = dma.hbm_to_vmem [thread:$0]  (!%p9610_p2), %s604_s23, 512, %s606_s1, %s9622_s10, %s11180_s24, %s11180_s24, %s11179_s12  }
  0xa9   : > { %s7449_s5 = sshll.u32 %s9379_s29, 11  ;;  %s619_s27 = scalar_lea.vmem [#allocation8], %s7367_s20 }
  0xaa   : > { %s628_s25 = scalar_lea.hbm %s11100_s3, %s7449_s5  ;;  %s629_s0 = sshll.u32 %s619_s27, 4  ;;  %s630_s0 = int_to_ptr.vmem [resolvable:$true] %s629_s0 }
  0xab   : > { %s11184_s28 = sand.u32 1, %s9383_s30   ;;  %s9178_s13 = scalar_lea.vmem %s630_s0, 2048 }
  0xac   : > { %s616_s17 = scalar_lea.sflag [#allocation9], %s11184_s28  ;;  %p9179_p6 = scmp.ne.s32.totalorder %s630_s0, %s9178_s13 }
  0xad   : > { %p11185_p0 = pmov %p11183_p9  ;;  %s9396_s11 = smov [#allocation8]  }
  0xae   : > { %s9183_s21 = sshll.u32 %s9396_s11, 4  ;;  %s9184_s21 = int_to_ptr.vmem [resolvable:$false] %s9183_s21 }
  0xaf   : > { %p9181_p13 = pnand %p9179_p6, %p11185_p0  ;;  %s9185_s10 = scalar_lea.vmem %s9184_s21, 4096 }
  0xb0   : > { %p9186_p9 = scmp.lt.s32.totalorder %s630_s0, %s9184_s21  ;;  %p9187_p10 = scmp.lt.s32.totalorder %s9185_s10, %s9178_s13 }
  0xb1   : > { %p9182_p8 = pneg %p9181_p13 }
  0xb2   : > { %p9188_p7 = por %p9187_p10, %p9186_p9 }
  0xb4   : > { %p9189_p1 = pnand %p9188_p7, %p9182_p8 }
  0xb6   : > { %9192 = shalt.err (!%p9189_p1)
}
  0xb7   : > { %8687 = dma.hbm_to_vmem [thread:$0]  (!%p9610_p2), %s628_s25, 2048, %s630_s0, %s616_s17, %s11180_s24, %s11180_s24, %s11179_s12  }
  0xb8   : > { %p11186_p4 = scmp.ne.s32.totalorder %s11162_s15, 0 }
  0xba   : > { %641 = sbr.rel (%p11186_p4) target bundleno = 5594 (0x15da), region = 60 }
  0xbf   : > { %s9711_s23 = sand.u32 1, %s9367_s26  }
  0xc0   : > { %s9714_s1 = sshll.u32 %s9711_s23, 5  ;;  %s644_s20 = scalar_lea.sflag [#allocation3], %s9711_s23 }
  0xc1   : > { %s9718_s4 = scalar_lea.vmem [#allocation2], %s9714_s1 }
  0xc2   : > { %9322 = dma.done.wait (%p9578_p11), %s644_s20, 512  }
  0xc3   : > { %9324 = vsyncadd (%p9578_p11), %s644_s20, 4294966784  ;;  %s9725_s15 = sand.u32 1, %s9511_s14   ;;  %s9729_s12 = scalar_lea.vmem [#allocation5], %s9714_s1 }
  0xc4   : > { %s653_s19 = scalar_lea.sflag [#allocation6], %s9725_s15 }
  0xc5   : > { %9326 = dma.done.wait (%p9578_p11), %s653_s19, 1024  }
  0xc6   : > { %9328 = vsyncadd (%p9578_p11), %s653_s19, 4294966272  ;;  %s7374_s24 = sshll.u32 %s9711_s23, 7  ;;  %s9737_s16 = scalar_lea.vmem [#allocation7], %s9714_s1 }
  0xc7   : > { %s671_s5 = scalar_lea.sflag [#allocation9], %s9725_s15  ;;  %s9740_s7 = scalar_lea.vmem [#allocation8], %s7374_s24 }
  0xc8   : > { %9330 = dma.done.wait (%p9578_p11), %s671_s5, 2048  }
  0xc9   : > { %9332 = vsyncadd (%p9578_p11), %s671_s5, 4294965248  ;;  %p11187_p2 = scmp.eq.s32.totalorder %s9511_s14, 0 }
  0xcb   : > { %9334 = dma.done.wait (%p11187_p2), [#allocation9], 128   ;;  %p11188_p5 = pmov %p11187_p2 }
  0xcc   : > { %p11189_p3 = pmov %p11187_p2 }
  0xcd   : > { %9336 = vsyncadd (%p11188_p5), [#allocation9], 4294967168 }
  0xce   : > { %9338 = dma.done.wait (%p11189_p3), [#allocation12], 4096   ;;  %p11190_p6 = pmov %p11187_p2 }
  0xcf   : > { %p11191_p0 = pmov %p11187_p2 }
  0xd0   : > { %9340 = vsyncadd (%p11190_p6), [#allocation12], 4294963200 }
  0xd1   : > { %9342 = dma.done.wait (%p11191_p0), [#allocation15], 4096   ;;  %p11192_p13 = pmov %p11191_p0 }
  0xd2   : > { %p11193_p11 = pmov %p11191_p0 }
  0xd3   : > { %9344 = vsyncadd (%p11192_p13), [#allocation15], 4294963200 }
  0xd4   : > { %9346 = dma.done.wait (%p11193_p11), [#allocation18], 2048   ;;  %p11194_p8 = pmov %p11191_p0 }
  0xd5   : > { %vm809_vm0 = vcmask 261120   ;;  %v805_v0 = vld [vmem:[%s9740_s7 + $0x18] sm:$0xff]  ;;  %v804_v1 = vld [vmem:[%s9740_s7 + $0x10] sm:$0xff]  ;;  %v803_v2 = vld [vmem:[%s9740_s7 + $0x8] sm:$0xff]  ;;  %vm9398_vm1 = vmmov 0   ;;  %vm2217_vm2 = vcmask 64512  }
  0xd6   : > { %9348 = vsyncadd (%p11194_p8), [#allocation18], 4294965248  ;;  %v9765_v3 = vand.u32 4294901760, %v805_v0  ;;  %v9767_v4 = vand.u32 4294901760, %v804_v1  ;;  %v9769_v5 = vand.u32 4294901760, %v803_v2  ;;  %v802_v6 = vld [vmem:[%s9740_s7] sm:$0xff] }
  0xd7   : > { %v782_v7 = vld [vmem:[#allocation11] sm:$0xff]  ;;  %v783_v8 = vld [vmem:[#allocation11 + $0x8] sm:$0xff]  ;;  %v9772_v9 = vand.u32 4294901760, %v802_v6  ;;  %v784_v12 = vld [vmem:[#allocation11 + $0x10] sm:$0xff]  ;;  %vm2234_vm3 = vcmask 1043456   ;;  %s9399_s14 = smov 32  }
  0xd8   : > { %v811_v10 = vsel %vm809_vm0, %v782_v7, 0  ;;  %v814_v11 = vsel %vm809_vm0, %v783_v8, 0  ;;  %v785_v13 = vld [vmem:[#allocation11 + $0x18] sm:$0xff]  ;;  %7864 = vmatprep.subr.mxu0 %v9765_v3  ;;  %v957_v14 = vsub.f32 %v805_v0, %v9765_v3  ;;  %v964_v17 = vsub.f32 %v804_v1, %v9767_v4  ;;  %v794_v52 = vld [vmem:[#allocation16] sm:$0xff]  ;;  %s9400_s22 = smov 64   ;;  %s11148_s18 = smov 96  }
  0xd9   : > { %v9778_v15 = vand.u32 4294901760, %v811_v10  ;;  %v9780_v16 = vand.u32 4294901760, %v814_v11  ;;  %7865 = vmatpush3.msra.mxu0 %v9765_v3  ;;  %v971_v18 = vsub.f32 %v803_v2, %v9769_v5  ;;  %v817_v19 = vsel %vm809_vm0, %v784_v12, 0  ;;  %v787_v2 = vld [vmem:[#allocation13 + $0x8] sm:$0xff]  ;;  %v789_v7 = vld [vmem:[#allocation13 + $0x18] sm:$0xff]  ;;  %s10851_s25 = scalar_lea.vmem [#allocation20], %s9714_s1 }
  0xda   : > { %v820_v20 = vsel %vm809_vm0, %v785_v13, 0  ;;  %v978_v21 = vsub.f32 %v802_v6, %v9772_v9  ;;  %7866 = vmatprep.subr.mxu0 %v9767_v4  ;;  %v9789_v22 = vand.u32 4294901760, %v957_v14  ;;  %v9797_v25 = vand.u32 4294901760, %v964_v17  ;;  %v786_v6 = vld [vmem:[#allocation13] sm:$0xff]  ;;  %v788_v13 = vld [vmem:[#allocation13 + $0x10] sm:$0xff]  ;;  %s10872_s27 = scalar_lea.vmem [#allocation22], %s9714_s1 }
  0xdb   : > { %v9792_v23 = vsub.f32 %v811_v10, %v9778_v15  ;;  %v9795_v24 = vsub.f32 %v814_v11, %v9780_v16  ;;  %7886 = vmatprep.mubr.f32.mxu1 %v9778_v15  ;;  %7867 = vmatpush3.msra.mxu0 %v9767_v4  ;;  %v9801_v26 = vand.u32 4294901760, %v971_v18  ;;  %v9803_v27 = vand.u32 4294901760, %v817_v19  ;;  %s9402_s0 = smov 8   ;;  %s9403_s28 = smov 16  }
  0xdc   : > { %v9805_v28 = vand.u32 4294901760, %v820_v20  ;;  %v9807_v29 = vand.u32 4294901760, %v978_v21  ;;  %7868 = vmatprep.subr.mxu0 %v9769_v5  ;;  %v959_v30 = vsub.f32 %v957_v14, %v9789_v22  ;;  %v966_v33 = vsub.f32 %v964_v17, %v9797_v25  ;;  %s9404_s17 = smov 24   ;;  %s11216_s13 = sld [smem:[#allocation37_spill]] }
  0xdd   : > { %v893_v31 = vand.u32 4294901760, %v9792_v23  ;;  %v903_v32 = vand.u32 4294901760, %v9795_v24  ;;  %7869 = vmatpush3.msra.mxu0 %v9769_v5  ;;  %v973_v34 = vsub.f32 %v971_v18, %v9801_v26  ;;  %v9817_v35 = vsub.f32 %v817_v19, %v9803_v27  ;;  %s11147_s11 = sshll.u32 %s9711_s23, 3  ;;  %s6992_s1 = sshll.u32 %s10851_s25, 4  ;;  %s10933_s1 = int_to_ptr.vmem [resolvable:$true] %s6992_s1 }
  0xde   : > { %v9820_v36 = vsub.f32 %v820_v20, %v9805_v28  ;;  %7870 = vmatprep.subr.mxu0 %v9772_v9  ;;  %v960_v37 = vand.u32 4294901760, %v959_v30  ;;  %v967_v40 = vand.u32 4294901760, %v966_v33  ;;  %v980_v43 = vsub.f32 %v978_v21, %v9807_v29  ;;  %s10928_s10 = scalar_lea.vmem [#allocation23], %s11147_s11  ;;  %s9193_s5 = scalar_lea.vmem %s10933_s1, 512 }
  0xdf   : > { %v894_v38 = vsub.f32 %v9792_v23, %v893_v31  ;;  %v904_v39 = vsub.f32 %v9795_v24, %v903_v32  ;;  %7871 = vmatpush3.msra.mxu0 %v9772_v9  ;;  %v913_v41 = vand.u32 4294901760, %v9817_v35  ;;  %v974_v46 = vand.u32 4294901760, %v973_v34  ;;  %p9194_p9 = scmp.ne.s32.totalorder %s10933_s1, %s9193_s5 }
  0xe0   : > { %v923_v42 = vand.u32 4294901760, %v9820_v36  ;;  %7878 = vmatprep.subr.mxu1 %v960_v37  ;;  %7892 = vmatprep.subr.mxu0 %v957_v14  ;;  %v981_v51 = vand.u32 4294901760, %v980_v43  ;;  %v1493_v53 = vsel %vm809_vm0, %v794_v52, 0  ;;  %vm6797_vm4 = vcmask 523264  }
  0xe1   : > { %v895_v44 = vand.u32 4294901760, %v894_v38  ;;  %v905_v45 = vand.u32 4294901760, %v904_v39  ;;  %7879 = vmatpush3.msra.mxu1 %v960_v37  ;;  %v914_v47 = vsub.f32 %v9817_v35, %v913_v41  ;;  %v9879_v54 = vand.u32 4294901760, %v1493_v53  ;;  %p9195_p10 = pnand %p9194_p9, %p9587_p12 }
  0xe2   : > { %v924_v48 = vsub.f32 %v9820_v36, %v923_v42  ;;  %7880 = vmatprep.subr.mxu1 %v967_v40  ;;  %vm6799_vm5 = vcmask 785408   ;;  %vm6943_vm6 = vcmask 130048   ;;  %vm6945_vm7 = vcmask 195584   ;;  %s11146_s20 = sshll.u32 %s11216_s13, 9 }
  0xe3   : > { %7872 = vmatprep.mubr.f32.mxu0 %v895_v44  ;;  %7881 = vmatpush3.msra.mxu1 %v967_v40  ;;  %v915_v49 = vand.u32 4294901760, %v914_v47  ;;  %v9882_v55 = vsub.f32 %v1493_v53, %v9879_v54  ;;  %p9196_p7 = pneg %p9195_p10 }
  0xe4   : > { %7873 = vmatmul.mubr.f32.vlgmr.msra.gmra.mxu0 %v905_v45  ;;  %v925_v50 = vand.u32 4294901760, %v924_v48  ;;  %7882 = vmatprep.subr.mxu1 %v974_v46 }
  0xe5   : > { %7893 = vmatpush3.msra.mxu0 %v957_v14  ;;  %7875 = vmatprep.mubr.f32.mxu0 %v915_v49  ;;  %v1575_v56 = vand.u32 4294901760, %v9882_v55 }
  0xe6   : > { %7894 = vmatprep.subr.mxu0 %v964_v17  ;;  %7883 = vmatpush3.msra.mxu1 %v974_v46 }
  0xe7   : > { %7895 = vmatpush3.msra.mxu0 %v964_v17  ;;  %7884 = vmatprep.subr.mxu1 %v981_v51  ;;  %v1576_v57 = vsub.f32 %v9882_v55, %v1575_v56 }
  0xe8   : > { %7876 = vmatmul.mubr.f32.gmra.mxu0 %v925_v50  ;;  %7896 = vmatprep.subr.mxu0 %v971_v18 }
  0xe9   : > { %7885 = vmatpush3.msra.mxu1 %v981_v51  ;;  %7897 = vmatpush3.msra.mxu0 %v971_v18  ;;  %v1577_v58 = vand.u32 4294901760, %v1576_v57 }
  0xea   : > { %7887 = vmatmul.mubr.f32.vlgmr.msra.gmra.mxu1 %v9780_v16  ;;  %7898 = vmatprep.subr.mxu0 %v978_v21 }
  0xeb   : > { %7906 = vmatprep.subr.mxu1 %v9765_v3  ;;  %7899 = vmatpush3.msra.mxu0 %v978_v21 }
  0xec   : > { %7900 = vmatprep.mubr.f32.mxu0 %v9792_v23  ;;  %7907 = vmatpush3.msra.mxu1 %v9765_v3 }
  0xed   : > { %7901 = vmatmul.mubr.f32.vlgmr.msra.gmra.mxu0 %v9795_v24  ;;  %7908 = vmatprep.subr.mxu1 %v9767_v4 }
  0xee   : > { %7920 = vmatprep.subr.mxu0 %v9789_v22  ;;  %7889 = vmatprep.mubr.f32.mxu1 %v9803_v27 }
  0xef   : > { %7909 = vmatpush3.msra.mxu1 %v9767_v4  ;;  %7921 = vmatpush3.msra.mxu0 %v9789_v22 }
  0xf0   : > { %7890 = vmatmul.mubr.f32.gmra.mxu1 %v9805_v28  ;;  %7910 = vmatprep.subr.mxu1 %v9769_v5 }
  0xf1   : > { %7922 = vmatprep.subr.mxu0 %v9797_v25  ;;  %7903 = vmatprep.mubr.f32.mxu0 %v9817_v35 }
  0xf2   : > { %7911 = vmatpush3.msra.mxu1 %v9769_v5  ;;  %7923 = vmatpush3.msra.mxu0 %v9797_v25 }
  0xf3   : > { %7912 = vmatprep.subr.mxu1 %v9772_v9  ;;  %7904 = vmatmul.mubr.f32.gmra.mxu0 %v9820_v36 }
  0xf4   : > { %7924 = vmatprep.subr.mxu0 %v9801_v26  ;;  %7913 = vmatpush3.msra.mxu1 %v9772_v9 }
  0xf5   : > { %7914 = vmatprep.mubr.f32.mxu1 %v893_v31  ;;  %7925 = vmatpush3.msra.mxu0 %v9801_v26 }
  0xf6   : > { %7915 = vmatmul.mubr.f32.vlgmr.msra.gmra.mxu1 %v903_v32  ;;  %7926 = vmatprep.subr.mxu0 %v9807_v29 }
  0xf7   : > { %7934 = vmatprep.subr.mxu1 %v9765_v3  ;;  %7927 = vmatpush3.msra.mxu0 %v9807_v29 }
  0xf8   : > { %7928 = vmatprep.mubr.f32.mxu0 %v9778_v15  ;;  %7935 = vmatpush3.msra.mxu1 %v9765_v3 }
  0xf9   : > { %7929 = vmatmul.mubr.f32.vlgmr.msra.gmra.mxu0 %v9780_v16  ;;  %7936 = vmatprep.subr.mxu1 %v9767_v4 }
  0xfa   : > { %7917 = vmatprep.mubr.f32.mxu1 %v913_v41  ;;  %7937 = vmatpush3.msra.mxu1 %v9767_v4 }
  0xfb   : > { %7931 = vmatprep.mubr.f32.mxu0 %v9803_v27  ;;  %7918 = vmatmul.mubr.f32.gmra.mxu1 %v923_v42 }
  0xfc   : > { %7938 = vmatprep.subr.mxu1 %v9769_v5  ;;  %7942 = vmatprep.mubr.f32.mxu1 %v9778_v15 }
  0xfd   : > { %7939 = vmatpush3.msra.mxu1 %v9769_v5  ;;  %7932 = vmatmul.mubr.f32.gmra.mxu0 %v9805_v28 }
  0xfe   : > { %7940 = vmatprep.subr.mxu1 %v9772_v9  ;;  %7956 = vmatprep.mubr.f32.mxu0 %v1577_v58 }
  0xff   : > { %7941 = vmatpush3.msra.mxu1 %v9772_v9 }
 0x100   : > { %7943 = vmatmul.mubr.f32.vlgmr.msra.gmra.mxu1 %v9780_v16 }
 0x101   : > { %7945 = vmatprep.mubr.f32.mxu1 %v9803_v27 }
 0x104   : > { %7946 = vmatmul.mubr.f32.gmra.mxu1 %v9805_v28 }
 0x105   : > { %7970 = vmatprep.mubr.f32.mxu1 %v9879_v54 }
 0x1a4   : > { %v7874_v59 = vpop.f32.mrf.mxu0 }
 0x1a5   : > { %v908_v5 = vadd.f32 %v7874_v59, %v787_v2 }
 0x1a6   : > { %v897_v60 = vpop.f32.mrf.mxu0 }
 0x1a7   : > { %v898_v10 = vadd.f32 %v897_v60, %v786_v6 }
 0x1a8   : > { %v7877_v61 = vpop.f32.mrf.mxu0 }
 0x1a9   : > { %v928_v11 = vadd.f32 %v7877_v61, %v789_v7 }
 0x1aa   : > { %v917_v62 = vpop.f32.mrf.mxu0  ;;  %v7888_v63 = vpop.f32.mrf.mxu1 }
 0x1ab   : > { %v1025_v12 = vadd.f32 %v7888_v63, %v908_v5  ;;  %v918_v18 = vadd.f32 %v917_v62, %v788_v13 }
 0x1ac   : > { %v1018_v0 = vpop.f32.mrf.mxu1 }
 0x1ad   : > { %v7902_v1 = vpop.f32.mrf.mxu0  ;;  %v1019_v16 = vadd.f32 %v1018_v0, %v898_v10 }
 0x1ae   : > { %v1124_v19 = vadd.f32 %v7902_v1, %v1025_v12 }
 0x1af   : > { %v1116_v4 = vpop.f32.mrf.mxu0 }
 0x1b0   : > { %v7891_v3 = vpop.f32.mrf.mxu1  ;;  %v1117_v22 = vadd.f32 %v1116_v4, %v1019_v16 }
 0x1b1   : > { %v1037_v20 = vadd.f32 %v7891_v3, %v928_v11 }
 0x1b2   : > { %v1030_v8 = vpop.f32.mrf.mxu1 }
 0x1b3   : > { %v7905_v9 = vpop.f32.mrf.mxu0  ;;  %v1031_v23 = vadd.f32 %v1030_v8, %v918_v18  ;;  %v790_v18 = vld [vmem:[#allocation14] sm:$0xff] }
 0x1b4   : > { %v1138_v27 = vadd.f32 %v7905_v9, %v1037_v20 }
 0x1b5   : > { %v1130_v14 = vpop.f32.mrf.mxu0 }
 0x1b6   : > { %v7916_v15 = vpop.f32.mrf.mxu1  ;;  %v1131_v31 = vadd.f32 %v1130_v14, %v1031_v23 }
 0x1b7   : > { %v1223_v24 = vadd.f32 %v7916_v15, %v1124_v19  ;;  %v791_v15 = vld [vmem:[#allocation14 + $0x8] sm:$0xff] }
 0x1b8   : > { %v1214_v17 = vpop.f32.mrf.mxu1 }
 0x1b9   : > { %v7930_v21 = vpop.f32.mrf.mxu0  ;;  %v1215_v28 = vadd.f32 %v1214_v17, %v1117_v22  ;;  %v793_v22 = vld [vmem:[#allocation14 + $0x18] sm:$0xff] }
 0x1ba   : > { %v1328_v32 = vadd.f32 %v7930_v21, %v1223_v24 }
 0x1bb   : > { %v1321_v25 = vpop.f32.mrf.mxu0  ;;  %v7919_v26 = vpop.f32.mrf.mxu1 }
 0x1bc   : > { %v1239_v33 = vadd.f32 %v7919_v26, %v1138_v27  ;;  %v1322_v35 = vadd.f32 %v1321_v25, %v1215_v28  ;;  %v792_v27 = vld [vmem:[#allocation14 + $0x10] sm:$0xff] }
 0x1bd   : > { %v1230_v29 = vpop.f32.mrf.mxu1  ;;  %v7933_v30 = vpop.f32.mrf.mxu0 }
 0x1be   : > { %v1231_v36 = vadd.f32 %v1230_v29, %v1131_v31  ;;  %v1340_v40 = vadd.f32 %v7933_v30, %v1239_v33  ;;  %v795_v33 = vld [vmem:[#allocation16 + $0x8] sm:$0xff] }
 0x1bf   : > { %v1333_v38 = vpop.f32.mrf.mxu0 }
 0x1c0   : > { %v7944_v34 = vpop.f32.mrf.mxu1  ;;  %v1334_v44 = vadd.f32 %v1333_v38, %v1231_v36  ;;  %v796_v36 = vld [vmem:[#allocation16 + $0x10] sm:$0xff] }
 0x1c1   : > { %v1421_v37 = vadd.f32 %v7944_v34, %v1328_v32 }
 0x1c2   : > { %v1414_v39 = vpop.f32.mrf.mxu1 }
 0x1c3   : > { %v7386_v41 = vmul.f32 -1.442695, %v1421_v37  ;;  %v1415_v42 = vadd.f32 %v1414_v39, %v1322_v35  ;;  %v1496_v35 = vsel %vm809_vm0, %v795_v33, 0  ;;  %v1499_v39 = vsel %vm809_vm0, %v796_v36, 0  ;;  %v799_v36 = vld [vmem:[#allocation17 + $0x8] sm:$0xff] }
 0x1c4   : > { %v7947_v43 = vpop.f32.mrf.mxu1  ;;  %v9902_v38 = vand.u32 4294901760, %v1496_v35 }
 0x1c5   : > { %8780 = vpow2.f32 %v7386_v41  ;;  %v7385_v45 = vmul.f32 -1.442695, %v1415_v42  ;;  %v1433_v46 = vadd.f32 %v7947_v43, %v1340_v40  ;;  %v9906_v41 = vand.u32 4294901760, %v1499_v39 }
 0x1c6   : > { %v1426_v47 = vpop.f32.mrf.mxu1  ;;  %v9909_v43 = vsub.f32 %v1496_v35, %v9902_v38 }
 0x1c7   : > { %8782 = vpow2.f32 %v7385_v45  ;;  %v7388_v48 = vmul.f32 -1.442695, %v1433_v46  ;;  %v1427_v49 = vadd.f32 %v1426_v47, %v1334_v44  ;;  %v9916_v47 = vsub.f32 %v1499_v39, %v9906_v41 }
 0x1c9   : > { %8784 = vpow2.f32 %v7388_v48  ;;  %v7387_v50 = vmul.f32 -1.442695, %v1427_v49 }
 0x1cb   : > { %8786 = vpow2.f32 %v7387_v50  ;;  %v1585_v50 = vand.u32 4294901760, %v9909_v43 }
 0x1d2   : > { %v8781_v51 = vpop.eup %8780 }
 0x1d3   : > { %v1449_v52 = vadd.f32 1.0, %v8781_v51 }
 0x1d4   : > { %v8783_v53 = vpop.eup %8782 }
 0x1d5   : > { %8788 = vrcp.f32 %v1449_v52  ;;  %v1448_v57 = vadd.f32 1.0, %v8783_v53 }
 0x1d6   : > { %v8785_v58 = vpop.eup %8784 }
 0x1d7   : > { %8790 = vrcp.f32 %v1448_v57  ;;  %v1451_v59 = vadd.f32 1.0, %v8785_v58 }
 0x1d8   : > { %v8787_v60 = vpop.eup %8786 }
 0x1d9   : > { %8792 = vrcp.f32 %v1451_v59  ;;  %v1450_v61 = vadd.f32 1.0, %v8787_v60  ;;  %v1595_v60 = vand.u32 4294901760, %v9916_v47 }
 0x1db   : > { %8794 = vrcp.f32 %v1450_v61  ;;  %v1586_v61 = vsub.f32 %v9909_v43, %v1585_v50 }
 0x1e2   : > { %v8789_v62 = vpop.eup %8788 }
 0x1e3   : > { %v1461_v63 = vmul.f32 %v8789_v62, %v1421_v37 }
 0x1e4   : > { %v8791_v0 = vpop.eup %8790 }
 0x1e5   : > { %v1465_v1 = vmul.f32 %v1461_v63, %v1421_v37  ;;  %v1460_v2 = vmul.f32 %v8791_v0, %v1415_v42  ;;  %v797_v37 = vld [vmem:[#allocation16 + $0x18] sm:$0xff] }
 0x1e6   : > { %v8793_v3 = vpop.eup %8792  ;;  %v1502_v40 = vsel %vm809_vm0, %v797_v37, 0  ;;  %v798_v37 = vld [vmem:[#allocation17] sm:$0xff] }
 0x1e7   : > { %v9889_v4 = vadd.f32 1e-09, %v1465_v1  ;;  %v1464_v5 = vmul.f32 %v1460_v2, %v1415_v42  ;;  %v1463_v6 = vmul.f32 %v8793_v3, %v1433_v46  ;;  %v9911_v44 = vand.u32 4294901760, %v1502_v40 }
 0x1e8   : > { %v8795_v7 = vpop.eup %8794 }
 0x1e9   : > { %11195 = vst [vmem:[#allocation42_spill] sm:$0xff] %v9889_v4  ;;  %8796 = vlog2.f32 %v9889_v4  ;;  %v9892_v8 = vadd.f32 1e-09, %v1464_v5  ;;  %v1467_v9 = vmul.f32 %v1463_v6, %v1433_v46  ;;  %v1462_v10 = vmul.f32 %v8795_v7, %v1427_v49 }
 0x1ea   : > { %v9924_v52 = vsub.f32 %v1502_v40, %v9911_v44  ;;  %v1596_v6 = vsub.f32 %v9916_v47, %v1595_v60  ;;  %v1587_v7 = vand.u32 4294901760, %v1586_v61 }
 0x1eb   : > { %11196 = vst [vmem:[#allocation43_spill] sm:$0xff] %v9892_v8  ;;  %8798 = vlog2.f32 %v9892_v8  ;;  %v9895_v11 = vadd.f32 1e-09, %v1467_v9  ;;  %v1466_v12 = vmul.f32 %v1462_v10, %v1427_v49 }
 0x1ec   : > { %v1605_v1 = vand.u32 4294901760, %v9924_v52 }
 0x1ed   : > { %8800 = vlog2.f32 %v9895_v11  ;;  %v9898_v13 = vadd.f32 1e-09, %v1466_v12 }
 0x1ef   : > { %11197 = vst [vmem:[#allocation44_spill] sm:$0xff] %v9898_v13  ;;  %8802 = vlog2.f32 %v9898_v13 }
 0x1f6   : > { %v8797_v14 = vpop.eup %8796 }
 0x1f7   : > { %v1475_v16 = vmul.f32 0.6931472, %v8797_v14  ;;  %v1606_v14 = vsub.f32 %v9924_v52, %v1605_v1 }
 0x1f8   : > { %v8799_v17 = vpop.eup %8798 }
 0x1f9   : > { %v1481_v19 = vmul.f32 %v1475_v16, %v791_v15  ;;  %v1473_v20 = vmul.f32 0.6931472, %v8799_v17  ;;  %v1597_v17 = vand.u32 4294901760, %v1596_v6 }
 0x1fa   : > { %v8801_v21 = vpop.eup %8800 }
 0x1fb   : > { %v1486_v23 = vmul.f32 1.442695, %v1481_v19  ;;  %v1480_v24 = vmul.f32 %v1473_v20, %v790_v18  ;;  %v1479_v25 = vmul.f32 0.6931472, %v8801_v21  ;;  %v1607_v19 = vand.u32 4294901760, %v1606_v14 }
 0x1fc   : > { %v8803_v26 = vpop.eup %8802 }
 0x1fd   : > { %8804 = vpow2.f32 %v1486_v23  ;;  %v1484_v28 = vmul.f32 1.442695, %v1480_v24  ;;  %v1483_v29 = vmul.f32 %v1479_v25, %v793_v22  ;;  %v1477_v30 = vmul.f32 0.6931472, %v8803_v26 }
 0x1ff   : > { %8806 = vpow2.f32 %v1484_v28  ;;  %v1490_v31 = vmul.f32 1.442695, %v1483_v29  ;;  %v1482_v32 = vmul.f32 %v1477_v30, %v792_v27 }
 0x201   : > { %8808 = vpow2.f32 %v1490_v31  ;;  %v1488_v34 = vmul.f32 1.442695, %v1482_v32  ;;  %v801_v32 = vld [vmem:[#allocation17 + $0x18] sm:$0xff] }
 0x203   : > { %8810 = vpow2.f32 %v1488_v34 }
 0x20a   : > { %v8805_v42 = vpop.eup %8804 }
 0x20b   : > { %v9913_v46 = vand.u32 4294901760, %v8805_v42 }
 0x20c   : > { %v8807_v45 = vpop.eup %8806 }
 0x20d   : > { %v9918_v49 = vand.u32 4294901760, %v8807_v45  ;;  %v1653_v57 = vsub.f32 %v8805_v42, %v9913_v46 }
 0x20e   : > { %v8809_v48 = vpop.eup %8808 }
 0x20f   : > { %v9921_v51 = vand.u32 4294901760, %v8809_v48  ;;  %v1660_v62 = vsub.f32 %v8807_v45, %v9918_v49  ;;  %v1654_v2 = vand.u32 4294901760, %v1653_v57 }
 0x210   : > { %v8811_v53 = vpop.eup %8810 }
 0x211   : > { %7948 = vmatprep.subr.mxu0 %v9921_v51  ;;  %v9928_v58 = vand.u32 4294901760, %v8811_v53  ;;  %v1639_v59 = vsub.f32 %v8809_v48, %v9921_v51  ;;  %v1661_v9 = vand.u32 4294901760, %v1660_v62  ;;  %v1655_v15 = vsub.f32 %v1653_v57, %v1654_v2 }
 0x212   : > { %7949 = vmatpush3.msra.mxu0 %v9921_v51 }
 0x213   : > { %7950 = vmatprep.subr.mxu0 %v9928_v58  ;;  %v1640_v63 = vand.u32 4294901760, %v1639_v59  ;;  %v1646_v0 = vsub.f32 %v8811_v53, %v9928_v58  ;;  %v1662_v18 = vsub.f32 %v1660_v62, %v1661_v9  ;;  %v1656_v20 = vand.u32 4294901760, %v1655_v15 }
 0x214   : > { %7951 = vmatpush3.msra.mxu0 %v9928_v58 }
 0x215   : > { %7952 = vmatprep.subr.mxu0 %v9913_v46  ;;  %v1641_v3 = vsub.f32 %v1639_v59, %v1640_v63  ;;  %v1647_v5 = vand.u32 4294901760, %v1646_v0  ;;  %v1663_v21 = vand.u32 4294901760, %v1662_v18 }
 0x216   : > { %7953 = vmatpush3.msra.mxu0 %v9913_v46 }
 0x217   : > { %7954 = vmatprep.subr.mxu0 %v9918_v49  ;;  %v1642_v10 = vand.u32 4294901760, %v1641_v3  ;;  %v1648_v12 = vsub.f32 %v1646_v0, %v1647_v5 }
 0x218   : > { %7955 = vmatpush3.msra.mxu0 %v9918_v49 }
 0x219   : > { %7962 = vmatprep.subr.mxu1 %v1642_v10  ;;  %7976 = vmatprep.subr.mxu0 %v1639_v59  ;;  %v1649_v16 = vand.u32 4294901760, %v1648_v12 }
 0x21a   : > { %7957 = vmatmul.mubr.f32.vlgmr.msra.gmra.mxu0 %v1587_v7  ;;  %7963 = vmatpush3.msra.mxu1 %v1642_v10 }
 0x21b   : > { %7977 = vmatpush3.msra.mxu0 %v1639_v59  ;;  %7964 = vmatprep.subr.mxu1 %v1649_v16 }
 0x21c   : > { %7978 = vmatprep.subr.mxu0 %v1646_v0  ;;  %7965 = vmatpush3.msra.mxu1 %v1649_v16 }
 0x21d   : > { %7979 = vmatpush3.msra.mxu0 %v1646_v0  ;;  %7959 = vmatprep.mubr.f32.mxu0 %v1597_v17 }
 0x21e   : > { %7966 = vmatprep.subr.mxu1 %v1656_v20  ;;  %7980 = vmatprep.subr.mxu0 %v1653_v57 }
 0x21f   : > { %7960 = vmatmul.mubr.f32.gmra.mxu0 %v1607_v19  ;;  %7967 = vmatpush3.msra.mxu1 %v1656_v20 }
 0x220   : > { %7981 = vmatpush3.msra.mxu0 %v1653_v57  ;;  %7968 = vmatprep.subr.mxu1 %v1663_v21 }
 0x221   : > { %7982 = vmatprep.subr.mxu0 %v1660_v62  ;;  %7969 = vmatpush3.msra.mxu1 %v1663_v21 }
 0x222   : > { %7983 = vmatpush3.msra.mxu0 %v1660_v62  ;;  %7971 = vmatmul.mubr.f32.vlgmr.msra.gmra.mxu1 %v9902_v38 }
 0x223   : > { %7984 = vmatprep.mubr.f32.mxu0 %v9882_v55  ;;  %7990 = vmatprep.subr.mxu1 %v9921_v51  ;;  %v11131_v55 = vmov 0.0  }
 0x224   : > { %8004 = vmatprep.subr.mxu0 %v1640_v63  ;;  %7985 = vmatmul.mubr.f32.vlgmr.msra.gmra.mxu0 %v9909_v43 }
 0x225   : > { %7991 = vmatpush3.msra.mxu1 %v9921_v51  ;;  %8005 = vmatpush3.msra.mxu0 %v1640_v63 }
 0x226   : > { %7992 = vmatprep.subr.mxu1 %v9928_v58  ;;  %8006 = vmatprep.subr.mxu0 %v1647_v5 }
 0x227   : > { %7973 = vmatprep.mubr.f32.mxu1 %v9906_v41  ;;  %7993 = vmatpush3.msra.mxu1 %v9928_v58 }
 0x228   : > { %8007 = vmatpush3.msra.mxu0 %v1647_v5  ;;  %7974 = vmatmul.mubr.f32.gmra.mxu1 %v9911_v44 }
 0x229   : > { %7994 = vmatprep.subr.mxu1 %v9913_v46  ;;  %8008 = vmatprep.subr.mxu0 %v1654_v2 }
 0x22a   : > { %7987 = vmatprep.mubr.f32.mxu0 %v9916_v47  ;;  %7995 = vmatpush3.msra.mxu1 %v9913_v46 }
 0x22b   : > { %8009 = vmatpush3.msra.mxu0 %v1654_v2  ;;  %7996 = vmatprep.subr.mxu1 %v9918_v49 }
 0x22c   : > { %7988 = vmatmul.mubr.f32.gmra.mxu0 %v9924_v52  ;;  %8010 = vmatprep.subr.mxu0 %v1661_v9 }
 0x22d   : > { %7997 = vmatpush3.msra.mxu1 %v9918_v49  ;;  %7998 = vmatprep.mubr.f32.mxu1 %v1575_v56 }
 0x22e   : > { %8011 = vmatpush3.msra.mxu0 %v1661_v9  ;;  %7999 = vmatmul.mubr.f32.vlgmr.msra.gmra.mxu1 %v1585_v50 }
 0x22f   : > { %8018 = vmatprep.subr.mxu1 %v9921_v51  ;;  %8012 = vmatprep.mubr.f32.mxu0 %v9879_v54 }
 0x230   : > { %8019 = vmatpush3.msra.mxu1 %v9921_v51  ;;  %8013 = vmatmul.mubr.f32.vlgmr.msra.gmra.mxu0 %v9902_v38 }
 0x231   : > { %8020 = vmatprep.subr.mxu1 %v9928_v58  ;;  %8001 = vmatprep.mubr.f32.mxu1 %v1595_v60 }
 0x232   : > { %8021 = vmatpush3.msra.mxu1 %v9928_v58  ;;  %8015 = vmatprep.mubr.f32.mxu0 %v9906_v41 }
 0x233   : > { %8002 = vmatmul.mubr.f32.gmra.mxu1 %v1605_v1  ;;  %8022 = vmatprep.subr.mxu1 %v9913_v46 }
 0x234   : > { %8023 = vmatpush3.msra.mxu1 %v9913_v46  ;;  %8016 = vmatmul.mubr.f32.gmra.mxu0 %v9911_v44 }
 0x235   : > { %8024 = vmatprep.subr.mxu1 %v9918_v49  ;;  %8026 = vmatprep.mubr.f32.mxu1 %v9879_v54  ;;  %v807_v54 = vld [vmem:[%s9729_s12] sm:$0xff] }
 0x236   : > { %8025 = vmatpush3.msra.mxu1 %v9918_v49  ;;  %8032 = vmatprep.subr.bf16.mxu0 %v11131_v55  ;;  %v2169_v56 = vpack.c.bf16 %v807_v54, %v807_v54 }
 0x237   : > { %8027 = vmatmul.mubr.f32.vlgmr.msra.gmra.mxu1 %v9902_v38  ;;  %8040 = vmatprep.subr.bf16.mxu1 %v11131_v55  ;;  %v800_v38 = vld [vmem:[#allocation17 + $0x10] sm:$0xff] }
 0x238   : > { %8029 = vmatprep.mubr.f32.mxu1 %v9906_v41  ;;  %8036 = vmatprep.mubr.msk.bf16.mxu0 %vm9398_vm1, %v11131_v55  ;;  %v2174_v22 = vsel %vm809_vm0, %v2169_v56, 0  ;;  %v806_v56 = vld [vmem:[%s9718_s4] sm:$0xff] }
 0x239   : > { %8041 = vmatpush3.bf16.xpose.msra.mxu1 %v2174_v22 }
 0x23b   : > { %8030 = vmatmul.mubr.f32.gmra.mxu1 %v9911_v44 }
 0x23c   : > { %8042 = vmatprep.mubr.msk.bf16.mxu1 %vm9398_vm1, %v11131_v55 }
 0x2da   : > { %v7958_v23 = vpop.f32.mrf.mxu0 }
 0x2db   : > { %v1590_v41 = vadd.f32 %v7958_v23, %v799_v36  ;;  %v2124_v23 = vpack.c.bf16 %v806_v56, %v806_v56 }
 0x2dc   : > { %v1579_v24 = vpop.f32.mrf.mxu0 }
 0x2dd   : > { %v1580_v42 = vadd.f32 %v1579_v24, %v798_v37 }
 0x2df   : > { %v7961_v25 = vpop.f32.mrf.mxu0 }
 0x2e0   : > { %v1610_v34 = vadd.f32 %v7961_v25, %v801_v32 }
 0x2e1   : > { %v1599_v26 = vpop.f32.mrf.mxu0 }
 0x2e2   : > { %v7972_v27 = vpop.f32.mrf.mxu1  ;;  %v1600_v43 = vadd.f32 %v1599_v26, %v800_v38 }
 0x2e3   : > { %v1707_v51 = vadd.f32 %v7972_v27, %v1590_v41  ;;  %v808_v41 = vld [vmem:[%s9737_s16] sm:$0xff] }
 0x2e4   : > { %v1700_v28 = vpop.f32.mrf.mxu1  ;;  %v7986_v29 = vpop.f32.mrf.mxu0 }
 0x2e5   : > { %v1701_v47 = vadd.f32 %v1700_v28, %v1580_v42  ;;  %v1806_v62 = vadd.f32 %v7986_v29, %v1707_v51  ;;  %v10017_v29 = vld [vmem:[#allocation10] sm:$0xff]  ;;  %v7395_v42 = vld [vmem:[%s9740_s7 + $0x38] sm:$0xff] }
 0x2e6   : > { %v1798_v31 = vpop.f32.mrf.mxu0 }
 0x2e7   : > { %v1799_v58 = vadd.f32 %v1798_v31, %v1701_v47 }
 0x2e8   : > { %v7975_v30 = vpop.f32.mrf.mxu1 }
 0x2e9   : > { %v1719_v44 = vadd.f32 %v7975_v30, %v1610_v34 }
 0x2ea   : > { %v1712_v33 = vpop.f32.mrf.mxu1 }
 0x2eb   : > { %v1713_v48 = vadd.f32 %v1712_v33, %v1600_v43  ;;  %v7394_v43 = vld [vmem:[%s9740_s7 + $0x30] sm:$0xff] }
 0x2ec   : > { %v7989_v35 = vpop.f32.mrf.mxu0 }
 0x2ed   : > { %v1820_v52 = vadd.f32 %v7989_v35, %v1719_v44  ;;  %v2230_v44 = vpack.c.bf16 %v808_v41, %v808_v41 }
 0x2ee   : > { %v1812_v39 = vpop.f32.mrf.mxu0  ;;  %v8000_v40 = vpop.f32.mrf.mxu1 }
 0x2ef   : > { %v1813_v59 = vadd.f32 %v1812_v39, %v1713_v48  ;;  %v1905_v3 = vadd.f32 %v8000_v40, %v1806_v62  ;;  %v2236_v47 = vsel %vm2234_vm3, %v2230_v44, 0  ;;  %v10036_v48 = vand.u32 4294901760, %v7394_v43 }
 0x2f0   : > { %v1896_v45 = vpop.f32.mrf.mxu1  ;;  %v8014_v46 = vpop.f32.mrf.mxu0 }
 0x2f1   : > { %v1897_v63 = vadd.f32 %v1896_v45, %v1799_v58  ;;  %v2010_v14 = vadd.f32 %v8014_v46, %v1905_v3  ;;  %v10031_v45 = vand.u32 4294901760, %v7395_v42  ;;  %v7393_v46 = vld [vmem:[%s9740_s7 + $0x28] sm:$0xff]  ;;  %v7392_v3 = vld [vmem:[%s9740_s7 + $0x20] sm:$0xff] }
 0x2f2   : > { %v2003_v49 = vpop.f32.mrf.mxu0 }
 0x2f3   : > { %v8003_v50 = vpop.f32.mrf.mxu1  ;;  %v2004_v7 = vadd.f32 %v2003_v49, %v1897_v63  ;;  %8052 = vmatprep.subr.mxu1 %v10031_v45  ;;  %v10040_v49 = vand.u32 4294901760, %v7393_v46  ;;  %v2461_v58 = vsub.f32 %v7395_v42, %v10031_v45 }
 0x2f4   : > { %v8017_v57 = vpop.f32.mrf.mxu0  ;;  %v1921_v60 = vadd.f32 %v8003_v50, %v1820_v52  ;;  %v2279_v50 = vld [vmem:[#allocation11 + $0x20] sm:$0xff]  ;;  %v2280_v52 = vld [vmem:[#allocation11 + $0x28] sm:$0xff] }
 0x2f5   : > { %v1912_v53 = vpop.f32.mrf.mxu1  ;;  %v2315_v51 = vsel %vm809_vm0, %v2279_v50, 0  ;;  %v2462_v62 = vand.u32 4294901760, %v2461_v58 }
 0x2f6   : > { %v1913_v0 = vadd.f32 %v1912_v53, %v1813_v59  ;;  %v2015_v1 = vpop.f32.mrf.mxu0  ;;  %v2022_v5 = vadd.f32 %v8017_v57, %v1921_v60  ;;  %v10046_v53 = vand.u32 4294901760, %v2315_v51  ;;  %v2318_v57 = vsel %vm809_vm0, %v2280_v52, 0 }
 0x2f7   : > { %v8028_v61 = vpop.f32.mrf.mxu1  ;;  %v10050_v59 = vand.u32 4294901760, %v2318_v57 }
 0x2f8   : > { %v2016_v9 = vadd.f32 %v2015_v1, %v1913_v0  ;;  %v10004_v17 = vadd.f32 %v8028_v61, %v2010_v14  ;;  %v10053_v60 = vsub.f32 %v2315_v51, %v10046_v53  ;;  %v2281_v61 = vld [vmem:[#allocation11 + $0x30] sm:$0xff]  ;;  %v10059_v0 = vsub.f32 %v7394_v43, %v10036_v48 }
 0x2f9   : > { %v2096_v2 = vpop.f32.mrf.mxu1  ;;  %v10056_v63 = vsub.f32 %v2318_v57, %v10050_v59  ;;  %v2321_v1 = vsel %vm809_vm0, %v2281_v61, 0 }
 0x2fa   : > { %v10000_v15 = vadd.f32 %v2096_v2, %v2004_v7  ;;  %v2119_v54 = vmul.f32 0.17677669, %v10004_v17  ;;  %v2282_v2 = vld [vmem:[#allocation11 + $0x38] sm:$0xff] }
 0x2fb   : > { %v8031_v6 = vpop.f32.mrf.mxu1  ;;  %v2324_v7 = vsel %vm809_vm0, %v2282_v2, 0  ;;  %v2407_v14 = vand.u32 4294901760, %v10056_v63  ;;  %v2285_v2 = vld [vmem:[#allocation13 + $0x28] sm:$0xff] }
 0x2fc   : > { %v9998_v10 = vadd.f32 %v8031_v6, %v2022_v5  ;;  %11198 = vst [vmem:[#allocation45_spill] sm:$0xff] %v10000_v15  ;;  %v2118_v20 = vmul.f32 0.17677669, %v10000_v15  ;;  %v2397_v5 = vand.u32 4294901760, %v10053_v60  ;;  %v10064_v6 = vand.u32 4294901760, %v2321_v1 }
 0x2fd   : > { %v2108_v12 = vpop.f32.mrf.mxu1 }
 0x2fe   : > { %v10002_v16 = vadd.f32 %v2108_v12, %v2016_v9  ;;  %v2121_v18 = vmul.f32 0.17677669, %v9998_v10  ;;  %v2122_v22 = vpack.c.bf16 %v2119_v54, %v2118_v20  ;;  %v10067_v9 = vand.u32 4294901760, %v7392_v3 }
 0x2ff   : > { %v2463_v12 = vsub.f32 %v2461_v58, %v2462_v62  ;;  %v2475_v20 = vsub.f32 %v7393_v46, %v10040_v49  ;;  %v10078_v54 = vand.u32 4294901760, %v2324_v7 }
 0x300   : > { %11199 = vst [vmem:[#allocation46_spill] sm:$0xff] %v10002_v16  ;;  %v2120_v19 = vmul.f32 0.17677669, %v10002_v16 }
 0x301   : > { %v2464_v56 = vand.u32 4294901760, %v2463_v12  ;;  %v2287_v12 = vld [vmem:[#allocation13 + $0x38] sm:$0xff] }
 0x302   : > { %v2123_v21 = vpack.c.bf16 %v2121_v18, %v2120_v19  ;;  %v2469_v18 = vand.u32 4294901760, %v10059_v0  ;;  %v2398_v19 = vsub.f32 %v10053_v60, %v2397_v5 }
 0x304   : > { %8033 = vmatpush3.bf16.msra.mxu0 %v2123_v21  ;;  %v10076_v21 = vsub.f32 %v2321_v1, %v10064_v6 }
 0x305   : > { %8034 = vmatprep.subr.bf16.mxu0 %v11131_v55 }
 0x308   : > { %8035 = vmatpush3.bf16.msra.mxu0 %v2122_v22  ;;  %v2408_v22 = vsub.f32 %v10056_v63, %v2407_v14 }
 0x309   : > { %8046 = vmatprep.subr.bf16.mxu0 %v11131_v55 }
 0x30b   : > { %8037 = vmatmul.mubr.msk.bf16.vlgmr.msra.gmra.mxu0 %vm809_vm0, %v2124_v23  ;;  %v2470_v23 = vsub.f32 %v10059_v0, %v2469_v18 }
 0x30c   : > { %8048 = vmatprep.mubr.msk.bf16.mxu0 %vm9398_vm1, %v11131_v55  ;;  %8047 = vmatpush3.bf16.msra.mxu0 %v2236_v47 }
 0x30d   : > { %8066 = vmatprep.subr.mxu0 %v2464_v56  ;;  %v2471_v46 = vand.u32 4294901760, %v2470_v23 }
 0x3cb   : > { %v2162_v24 = vpop.f32.mrf.mxu0 }
 0x3cc   : > { %v2168_v25 = vpack.c.bf16 %v2162_v24, %v2162_v24  ;;  %v2482_v24 = vsub.f32 %v7392_v3, %v10067_v9 }
 0x3cd   : > { %v8038_v26 = vpop.f32.mrf.mxu0 }
 0x3ce   : > { %8043 = vmatmul.mubr.msk.bf16.vlgmr.msra.gmra.mxu1 %vm809_vm0, %v2168_v25  ;;  %v2399_v25 = vand.u32 4294901760, %v2398_v19  ;;  %v2476_v26 = vand.u32 4294901760, %v2475_v20 }
 0x3cf   : > { %v2165_v27 = vpop.f32.mrf.mxu0  ;;  %8053 = vmatpush3.msra.mxu1 %v10031_v45 }
 0x3d0   : > { %8054 = vmatprep.subr.mxu1 %v10036_v48  ;;  %v2417_v27 = vand.u32 4294901760, %v10076_v21  ;;  %8060 = vmatprep.mubr.f32.mxu1 %v2399_v25 }
 0x3d1   : > { %v8039_v28 = vpop.f32.mrf.mxu0  ;;  %8055 = vmatpush3.msra.mxu1 %v10036_v48 }
 0x3d2   : > { %8056 = vmatprep.subr.mxu1 %v10040_v49  ;;  %v10089_v28 = vsub.f32 %v2324_v7, %v10078_v54 }
 0x3d3   : > { %8057 = vmatpush3.msra.mxu1 %v10040_v49 }
 0x3d4   : > { %8058 = vmatprep.subr.mxu1 %v10067_v9 }
 0x3d5   : > { %8059 = vmatpush3.msra.mxu1 %v10067_v9 }
 0x3d6   : > { %8080 = vmatprep.subr.mxu1 %v2461_v58 }
 0x48e   : > { %v10019_v30 = vpop.f32.mrf.mxu1 }
 0x48f   : > { %11200 = vst [vmem:[#allocation47_spill] sm:$0xff] %v10019_v30  ;;  %v2216_v31 = vadd.f32 %v10019_v30, %v10017_v29 }
 0x490   : > { %v8044_v32 = vpop.f32.mrf.mxu1 }
 0x491   : > { %v2218_v33 = vsel %vm2217_vm2, %v2216_v31, -inf  ;;  %v2483_v32 = vand.u32 4294901760, %v2482_v24 }
 0x492   : > { %v2213_v34 = vpop.f32.mrf.mxu1  ;;  %2219 = vmax.xlane.f32.xlu0 %v2218_v33  ;;  %v2477_v33 = vsub.f32 %v2475_v20, %v2476_v26 }
 0x493   : > { %v2418_v34 = vsub.f32 %v10076_v21, %v2417_v27 }
 0x494   : > { %v8045_v35 = vpop.f32.mrf.mxu1  ;;  %v2478_v47 = vand.u32 4294901760, %v2477_v33 }
 0x495   : > { %v2427_v35 = vand.u32 4294901760, %v10089_v28 }
 0x51b   : > { %v2220_v36 = vpop.xlane.xlu0 %2219 }
 0x51c   : > { %v2221_v37 = vsub.f32 %v2216_v31, %v2220_v36  ;;  %v2409_v31 = vand.u32 4294901760, %v2408_v22  ;;  %v2484_v36 = vsub.f32 %v2482_v24, %v2483_v32 }
 0x51e   : > { %v2222_v38 = vmul.f32 1.442695, %v2221_v37  ;;  %8061 = vmatmul.mubr.f32.vlgmr.msra.gmra.mxu1 %v2409_v31  ;;  %v2419_v37 = vand.u32 4294901760, %v2418_v34  ;;  %v2485_v50 = vand.u32 4294901760, %v2484_v36 }
 0x51f   : > { %8081 = vmatpush3.msra.mxu1 %v2461_v58 }
 0x520   : > { %8812 = vpow2.f32 %v2222_v38  ;;  %v2428_v38 = vsub.f32 %v10089_v28, %v2427_v35  ;;  %8082 = vmatprep.subr.mxu1 %v10059_v0  ;;  %8063 = vmatprep.mubr.f32.mxu1 %v2419_v37 }
 0x521   : > { %8083 = vmatpush3.msra.mxu1 %v10059_v0 }
 0x522   : > { %8084 = vmatprep.subr.mxu1 %v2475_v20 }
 0x523   : > { %8085 = vmatpush3.msra.mxu1 %v2475_v20 }
 0x524   : > { %8086 = vmatprep.subr.mxu1 %v2482_v24 }
 0x525   : > { %8087 = vmatpush3.msra.mxu1 %v2482_v24 }
 0x526   : > { %8108 = vmatprep.subr.mxu1 %v2462_v62 }
 0x52d   : > { %v10024_v39 = vpop.eup %8812 }
 0x52e   : > { %v2224_v40 = vsel %vm2217_vm2, %v10024_v39, 0.0 }
 0x52f   : > { %2225 = vadd.xlane.f32.xlu0 %v2224_v40  ;;  %v2429_v40 = vand.u32 4294901760, %v2428_v38 }
 0x531   : > { %8064 = vmatmul.mubr.f32.gmra.mxu1 %v2429_v40 }
 0x532   : > { %8088 = vmatprep.mubr.f32.mxu1 %v10053_v60 }
 0x535   : > { %8089 = vmatmul.mubr.f32.vlgmr.msra.gmra.mxu1 %v10056_v63 }
 0x536   : > { %8109 = vmatpush3.msra.mxu1 %v2462_v62  ;;  %8091 = vmatprep.mubr.f32.mxu1 %v10076_v21 }
 0x537   : > { %8110 = vmatprep.subr.mxu1 %v2469_v18 }
 0x538   : > { %8111 = vmatpush3.msra.mxu1 %v2469_v18 }
 0x539   : > { %8092 = vmatmul.mubr.f32.gmra.mxu1 %v10089_v28  ;;  %8112 = vmatprep.subr.mxu1 %v2476_v26 }
 0x53a   : > { %8113 = vmatpush3.msra.mxu1 %v2476_v26  ;;  %8116 = vmatprep.mubr.f32.mxu1 %v10046_v53 }
 0x53b   : > { %8114 = vmatprep.subr.mxu1 %v2483_v32 }
 0x53c   : > { %8115 = vmatpush3.msra.mxu1 %v2483_v32 }
 0x53d   : > { %8117 = vmatmul.mubr.f32.vlgmr.msra.gmra.mxu1 %v10050_v59 }
 0x53e   : > { %8119 = vmatprep.mubr.f32.mxu1 %v10064_v6 }
 0x541   : > { %8120 = vmatmul.mubr.f32.gmra.mxu1 %v10078_v54 }
 0x5b8   : > { %v2226_v41 = vpop.xlane.xlu0 %2225 }
 0x5b9   : > { %8814 = vrcp.f32 %v2226_v41 }
 0x5c6   : > { %v8815_v42 = vpop.eup %8814 }
 0x5c7   : > { %v2228_v43 = vmul.f32 %v8815_v42, %v10024_v39  ;;  %v2294_v39 = vld [vmem:[#allocation16 + $0x20] sm:$0xff] }
 0x5c9   : > { %v2229_v44 = vpack.c.bf16 %v2228_v43, %v2228_v43 }
 0x5cb   : > { %8049 = vmatmul.mubr.msk.bf16.vlgmr.msra.gmra.mxu0 %vm2217_vm2, %v2229_v44 }
 0x5cc   : > { %8067 = vmatpush3.msra.mxu0 %v2464_v56  ;;  %8074 = vmatprep.mubr.f32.mxu0 %v10046_v53  ;;  %v2286_v56 = vld [vmem:[#allocation13 + $0x30] sm:$0xff] }
 0x5cd   : > { %8068 = vmatprep.subr.mxu0 %v2471_v46 }
 0x5ce   : > { %8069 = vmatpush3.msra.mxu0 %v2471_v46 }
 0x5cf   : > { %8070 = vmatprep.subr.mxu0 %v2478_v47 }
 0x5d0   : > { %8071 = vmatpush3.msra.mxu0 %v2478_v47 }
 0x5d1   : > { %8072 = vmatprep.subr.mxu0 %v2485_v50 }
 0x5d2   : > { %8073 = vmatpush3.msra.mxu0 %v2485_v50 }
 0x5d3   : > { %8075 = vmatmul.mubr.f32.vlgmr.msra.gmra.mxu0 %v10050_v59  ;;  %8094 = vmatprep.subr.mxu0 %v10031_v45 }
 0x5d4   : > { %8095 = vmatpush3.msra.mxu0 %v10031_v45  ;;  %8077 = vmatprep.mubr.f32.mxu0 %v10064_v6 }
 0x5d5   : > { %8096 = vmatprep.subr.mxu0 %v10036_v48 }
 0x5d6   : > { %8097 = vmatpush3.msra.mxu0 %v10036_v48 }
 0x5d7   : > { %8078 = vmatmul.mubr.f32.gmra.mxu0 %v10078_v54  ;;  %8098 = vmatprep.subr.mxu0 %v10040_v49 }
 0x5d8   : > { %8099 = vmatpush3.msra.mxu0 %v10040_v49  ;;  %8102 = vmatprep.mubr.f32.mxu0 %v2397_v5 }
 0x5d9   : > { %8100 = vmatprep.subr.mxu0 %v10067_v9 }
 0x5da   : > { %8101 = vmatpush3.msra.mxu0 %v10067_v9 }
 0x5db   : > { %8103 = vmatmul.mubr.f32.vlgmr.msra.gmra.mxu0 %v2407_v14  ;;  %8122 = vmatprep.subr.mxu0 %v10031_v45 }
 0x5dc   : > { %8123 = vmatpush3.msra.mxu0 %v10031_v45  ;;  %8105 = vmatprep.mubr.f32.mxu0 %v2417_v27  ;;  %v2997_v45 = vsel %vm809_vm0, %v2294_v39, 0 }
 0x5dd   : > { %8124 = vmatprep.subr.mxu0 %v10036_v48 }
 0x5de   : > { %8125 = vmatpush3.msra.mxu0 %v10036_v48  ;;  %v10143_v48 = vand.u32 4294901760, %v2997_v45 }
 0x5df   : > { %8106 = vmatmul.mubr.f32.gmra.mxu0 %v2427_v35  ;;  %8126 = vmatprep.subr.mxu0 %v10040_v49 }
 0x5e0   : > { %8127 = vmatpush3.msra.mxu0 %v10040_v49  ;;  %8130 = vmatprep.mubr.f32.mxu0 %v10046_v53  ;;  %v10146_v51 = vsub.f32 %v2997_v45, %v10143_v48  ;;  %v8062_v53 = vpop.f32.mrf.mxu1 }
 0x5e1   : > { %8128 = vmatprep.subr.mxu0 %v10067_v9  ;;  %v2412_v7 = vadd.f32 %v8062_v53, %v2285_v2 }
 0x5e2   : > { %8129 = vmatpush3.msra.mxu0 %v10067_v9  ;;  %v3079_v49 = vand.u32 4294901760, %v10146_v51  ;;  %v2401_v58 = vpop.f32.mrf.mxu1  ;;  %v2284_v9 = vld [vmem:[#allocation13 + $0x20] sm:$0xff] }
 0x5e3   : > { %8131 = vmatmul.mubr.f32.vlgmr.msra.gmra.mxu0 %v10050_v59  ;;  %v2402_v20 = vadd.f32 %v2401_v58, %v2284_v9 }
 0x5e4   : > { %8133 = vmatprep.mubr.f32.mxu0 %v10064_v6  ;;  %v3080_v52 = vsub.f32 %v10146_v51, %v3079_v49 }
 0x5e6   : > { %v3081_v57 = vand.u32 4294901760, %v3080_v52 }
 0x5e7   : > { %8134 = vmatmul.mubr.f32.gmra.mxu0 %v10078_v54 }
 0x5e8   : > { %8158 = vmatprep.mubr.f32.mxu0 %v10143_v48  ;;  %8144 = vmatprep.mubr.f32.mxu1 %v3081_v57 }
 0x5f1   : > { %v8065_v59 = vpop.f32.mrf.mxu1 }
 0x5f2   : > { %v2432_v21 = vadd.f32 %v8065_v59, %v2287_v12 }
 0x5f3   : > { %v2421_v60 = vpop.f32.mrf.mxu1 }
 0x5f4   : > { %v2422_v26 = vadd.f32 %v2421_v60, %v2286_v56 }
 0x5f5   : > { %v8090_v61 = vpop.f32.mrf.mxu1 }
 0x5f7   : > { %v2620_v0 = vpop.f32.mrf.mxu1 }
 0x5f9   : > { %v8093_v5 = vpop.f32.mrf.mxu1 }
 0x5fb   : > { %v2634_v18 = vpop.f32.mrf.mxu1 }
 0x5fd   : > { %v8118_v23 = vpop.f32.mrf.mxu1 }
 0x5ff   : > { %v2825_v32 = vpop.f32.mrf.mxu1 }
 0x601   : > { %v8121_v41 = vpop.f32.mrf.mxu1 }
 0x603   : > { %v2837_v45 = vpop.f32.mrf.mxu1 }
 0x68b   : > { %v10153_v62 = vpop.f32.mrf.mxu0 }
 0x68d   : > { %v8050_v63 = vpop.f32.mrf.mxu0 }
 0x68f   : > { %v2275_v1 = vpop.f32.mrf.mxu0 }
 0x691   : > { %v8051_v3 = vpop.f32.mrf.mxu0 }
 0x693   : > { %v8076_v6 = vpop.f32.mrf.mxu0 }
 0x694   : > { %v2529_v54 = vadd.f32 %v8076_v6, %v2412_v7 }
 0x695   : > { %v2522_v14 = vpop.f32.mrf.mxu0 }
 0x696   : > { %v2523_v24 = vadd.f32 %v2522_v14, %v2402_v20  ;;  %v2628_v27 = vadd.f32 %v8090_v61, %v2529_v54 }
 0x697   : > { %v8079_v19 = vpop.f32.mrf.mxu0 }
 0x698   : > { %v2541_v28 = vadd.f32 %v8079_v19, %v2432_v21  ;;  %v2621_v33 = vadd.f32 %v2620_v0, %v2523_v24 }
 0x699   : > { %v2534_v22 = vpop.f32.mrf.mxu0 }
 0x69a   : > { %v2535_v34 = vadd.f32 %v2534_v22, %v2422_v26  ;;  %v2642_v37 = vadd.f32 %v8093_v5, %v2541_v28 }
 0x69b   : > { %v8104_v25 = vpop.f32.mrf.mxu0 }
 0x69c   : > { %v2727_v35 = vadd.f32 %v8104_v25, %v2628_v27  ;;  %v2635_v42 = vadd.f32 %v2634_v18, %v2535_v34 }
 0x69d   : > { %v2718_v31 = vpop.f32.mrf.mxu0 }
 0x69e   : > { %v2719_v38 = vadd.f32 %v2718_v31, %v2621_v33  ;;  %v2832_v43 = vadd.f32 %v8118_v23, %v2727_v35 }
 0x69f   : > { %v8107_v36 = vpop.f32.mrf.mxu0 }
 0x6a0   : > { %v2743_v44 = vadd.f32 %v8107_v36, %v2642_v37  ;;  %v2826_v47 = vadd.f32 %v2825_v32, %v2719_v38  ;;  %v2290_v37 = vld [vmem:[#allocation14 + $0x28] sm:$0xff] }
 0x6a1   : > { %v2734_v40 = vpop.f32.mrf.mxu0 }
 0x6a2   : > { %v2735_v50 = vadd.f32 %v2734_v40, %v2635_v42  ;;  %v2844_v53 = vadd.f32 %v8121_v41, %v2743_v44  ;;  %v2289_v41 = vld [vmem:[#allocation14 + $0x20] sm:$0xff] }
 0x6a3   : > { %v8132_v46 = vpop.f32.mrf.mxu0 }
 0x6a4   : > { %v2925_v39 = vadd.f32 %v8132_v46, %v2832_v43  ;;  %v2838_v60 = vadd.f32 %v2837_v45, %v2735_v50  ;;  %v2292_v46 = vld [vmem:[#allocation14 + $0x38] sm:$0xff] }
 0x6a5   : > { %v2918_v52 = vpop.f32.mrf.mxu0 }
 0x6a6   : > { %v7400_v57 = vmul.f32 -1.442695, %v2925_v39  ;;  %v2919_v58 = vadd.f32 %v2918_v52, %v2826_v47  ;;  %v2291_v52 = vld [vmem:[#allocation14 + $0x30] sm:$0xff] }
 0x6a7   : > { %v8135_v59 = vpop.f32.mrf.mxu0 }
 0x6a8   : > { %8816 = vpow2.f32 %v7400_v57  ;;  %v7399_v61 = vmul.f32 -1.442695, %v2919_v58  ;;  %v2937_v63 = vadd.f32 %v8135_v59, %v2844_v53 }
 0x6a9   : > { %v2930_v0 = vpop.f32.mrf.mxu0 }
 0x6aa   : > { %8818 = vpow2.f32 %v7399_v61  ;;  %v7402_v1 = vmul.f32 -1.442695, %v2937_v63  ;;  %v2931_v2 = vadd.f32 %v2930_v0, %v2838_v60  ;;  %v2295_v61 = vld [vmem:[#allocation16 + $0x28] sm:$0xff] }
 0x6ab   : > { %v3000_v0 = vsel %vm809_vm0, %v2295_v61, 0 }
 0x6ac   : > { %8820 = vpow2.f32 %v7402_v1  ;;  %v7401_v3 = vmul.f32 -1.442695, %v2931_v2  ;;  %v2296_v1 = vld [vmem:[#allocation16 + $0x30] sm:$0xff] }
 0x6ae   : > { %8822 = vpow2.f32 %v7401_v3  ;;  %v10168_v3 = vand.u32 4294901760, %v3000_v0 }
 0x6b5   : > { %v8817_v5 = vpop.eup %8816 }
 0x6b6   : > { %v2953_v6 = vadd.f32 1.0, %v8817_v5  ;;  %v3003_v5 = vsel %vm809_vm0, %v2296_v1, 0 }
 0x6b7   : > { %v8819_v7 = vpop.eup %8818 }
 0x6b8   : > { %8824 = vrcp.f32 %v2953_v6  ;;  %v2952_v9 = vadd.f32 1.0, %v8819_v7  ;;  %v10172_v7 = vand.u32 4294901760, %v3003_v5 }
 0x6b9   : > { %v8821_v12 = vpop.eup %8820 }
 0x6ba   : > { %8826 = vrcp.f32 %v2952_v9  ;;  %v2955_v14 = vadd.f32 1.0, %v8821_v12  ;;  %v10175_v12 = vsub.f32 %v3000_v0, %v10168_v3 }
 0x6bb   : > { %v8823_v18 = vpop.eup %8822 }
 0x6bc   : > { %8828 = vrcp.f32 %v2955_v14  ;;  %v2954_v19 = vadd.f32 1.0, %v8823_v18 }
 0x6be   : > { %8830 = vrcp.f32 %v2954_v19 }
 0x6c5   : > { %v8825_v20 = vpop.eup %8824 }
 0x6c6   : > { %v2965_v21 = vmul.f32 %v8825_v20, %v2925_v39  ;;  %v10182_v20 = vsub.f32 %v3003_v5, %v10172_v7 }
 0x6c7   : > { %v8827_v54 = vpop.eup %8826 }
 0x6c8   : > { %v2969_v56 = vmul.f32 %v2965_v21, %v2925_v39  ;;  %v2964_v22 = vmul.f32 %v8827_v54, %v2919_v58 }
 0x6c9   : > { %v8829_v23 = vpop.eup %8828 }
 0x6ca   : > { %v10155_v24 = vadd.f32 1e-09, %v2969_v56  ;;  %v2968_v25 = vmul.f32 %v2964_v22, %v2919_v58  ;;  %v2967_v26 = vmul.f32 %v8829_v23, %v2937_v63  ;;  %v3089_v56 = vand.u32 4294901760, %v10175_v12 }
 0x6cb   : > { %v8831_v27 = vpop.eup %8830 }
 0x6cc   : > { %8832 = vlog2.f32 %v10155_v24  ;;  %v10158_v28 = vadd.f32 1e-09, %v2968_v25  ;;  %v2971_v31 = vmul.f32 %v2967_v26, %v2937_v63  ;;  %v2966_v32 = vmul.f32 %v8831_v27, %v2931_v2 }
 0x6ce   : > { %8834 = vlog2.f32 %v10158_v28  ;;  %v10161_v33 = vadd.f32 1e-09, %v2971_v31  ;;  %v2970_v34 = vmul.f32 %v2966_v32, %v2931_v2  ;;  %v2297_v2 = vld [vmem:[#allocation16 + $0x38] sm:$0xff]  ;;  %v3099_v32 = vand.u32 4294901760, %v10182_v20 }
 0x6cf   : > { %v3006_v6 = vsel %vm809_vm0, %v2297_v2, 0 }
 0x6d0   : > { %8836 = vlog2.f32 %v10161_v33  ;;  %v10164_v35 = vadd.f32 1e-09, %v2970_v34  ;;  %v10177_v14 = vand.u32 4294901760, %v3006_v6  ;;  %v3090_v34 = vsub.f32 %v10175_v12, %v3089_v56 }
 0x6d2   : > { %8838 = vlog2.f32 %v10164_v35  ;;  %v10190_v23 = vsub.f32 %v3006_v6, %v10177_v14 }
 0x6d9   : > { %v8833_v36 = vpop.eup %8832 }
 0x6da   : > { %v2979_v38 = vmul.f32 0.6931472, %v8833_v36 }
 0x6db   : > { %v8835_v40 = vpop.eup %8834 }
 0x6dc   : > { %v2985_v42 = vmul.f32 %v2979_v38, %v2290_v37  ;;  %v2977_v43 = vmul.f32 0.6931472, %v8835_v40  ;;  %v3109_v40 = vand.u32 4294901760, %v10190_v23 }
 0x6dd   : > { %v8837_v44 = vpop.eup %8836 }
 0x6de   : > { %v2990_v47 = vmul.f32 1.442695, %v2985_v42  ;;  %v2984_v50 = vmul.f32 %v2977_v43, %v2289_v41  ;;  %v2983_v39 = vmul.f32 0.6931472, %v8837_v44  ;;  %v3100_v44 = vsub.f32 %v10182_v20, %v3099_v32 }
 0x6df   : > { %v8839_v45 = vpop.eup %8838 }
 0x6e0   : > { %8840 = vpow2.f32 %v2990_v47  ;;  %v2988_v53 = vmul.f32 1.442695, %v2984_v50  ;;  %v2987_v57 = vmul.f32 %v2983_v39, %v2292_v46  ;;  %v2981_v58 = vmul.f32 0.6931472, %v8839_v45 }
 0x6e1   : > { %v3091_v46 = vand.u32 4294901760, %v3090_v34  ;;  %v3110_v45 = vsub.f32 %v10190_v23, %v3109_v40 }
 0x6e2   : > { %8842 = vpow2.f32 %v2988_v53  ;;  %v2994_v59 = vmul.f32 1.442695, %v2987_v57  ;;  %v2986_v60 = vmul.f32 %v2981_v58, %v2291_v52  ;;  %v3101_v57 = vand.u32 4294901760, %v3100_v44 }
 0x6e4   : > { %8844 = vpow2.f32 %v2994_v59  ;;  %v2992_v63 = vmul.f32 1.442695, %v2986_v60  ;;  %v3111_v59 = vand.u32 4294901760, %v3110_v45 }
 0x6e6   : > { %8846 = vpow2.f32 %v2992_v63 }
 0x6ed   : > { %v8841_v9 = vpop.eup %8840 }
 0x6ee   : > { %v10179_v19 = vand.u32 4294901760, %v8841_v9 }
 0x6ef   : > { %v8843_v18 = vpop.eup %8842 }
 0x6f0   : > { %v10184_v54 = vand.u32 4294901760, %v8843_v18  ;;  %v3157_v26 = vsub.f32 %v8841_v9, %v10179_v19 }
 0x6f1   : > { %v8845_v21 = vpop.eup %8844 }
 0x6f2   : > { %v10187_v22 = vand.u32 4294901760, %v8845_v21  ;;  %v3164_v36 = vsub.f32 %v8843_v18, %v10184_v54  ;;  %v3158_v41 = vand.u32 4294901760, %v3157_v26 }
 0x6f3   : > { %v8847_v25 = vpop.eup %8846 }
 0x6f4   : > { %8136 = vmatprep.subr.mxu1 %v10187_v22  ;;  %v10194_v27 = vand.u32 4294901760, %v8847_v25  ;;  %v3143_v31 = vsub.f32 %v8845_v21, %v10187_v22  ;;  %v3165_v47 = vand.u32 4294901760, %v3164_v36  ;;  %v3159_v52 = vsub.f32 %v3157_v26, %v3158_v41  ;;  %v2299_v21 = vld [vmem:[#allocation17 + $0x20] sm:$0xff] }
 0x6f5   : > { %8137 = vmatpush3.msra.mxu1 %v10187_v22 }
 0x6f6   : > { %8138 = vmatprep.subr.mxu1 %v10194_v27  ;;  %v3144_v37 = vand.u32 4294901760, %v3143_v31  ;;  %v3150_v38 = vsub.f32 %v8847_v25, %v10194_v27  ;;  %v3166_v58 = vsub.f32 %v3164_v36, %v3165_v47  ;;  %v3160_v60 = vand.u32 4294901760, %v3159_v52 }
 0x6f7   : > { %8139 = vmatpush3.msra.mxu1 %v10194_v27 }
 0x6f8   : > { %8140 = vmatprep.subr.mxu1 %v10179_v19  ;;  %v3145_v42 = vsub.f32 %v3143_v31, %v3144_v37  ;;  %v3151_v43 = vand.u32 4294901760, %v3150_v38  ;;  %v3167_v61 = vand.u32 4294901760, %v3166_v58 }
 0x6f9   : > { %8141 = vmatpush3.msra.mxu1 %v10179_v19 }
 0x6fa   : > { %8142 = vmatprep.subr.mxu1 %v10184_v54  ;;  %v3146_v50 = vand.u32 4294901760, %v3145_v42  ;;  %v3152_v39 = vsub.f32 %v3150_v38, %v3151_v43 }
 0x6fb   : > { %8143 = vmatpush3.msra.mxu1 %v10184_v54 }
 0x6fc   : > { %8150 = vmatprep.subr.mxu0 %v3146_v50  ;;  %8164 = vmatprep.subr.mxu1 %v3143_v31  ;;  %v3153_v53 = vand.u32 4294901760, %v3152_v39 }
 0x6fd   : > { %8145 = vmatmul.mubr.f32.vlgmr.msra.gmra.mxu1 %v3091_v46  ;;  %8151 = vmatpush3.msra.mxu0 %v3146_v50 }
 0x6fe   : > { %8165 = vmatpush3.msra.mxu1 %v3143_v31  ;;  %8152 = vmatprep.subr.mxu0 %v3153_v53 }
 0x6ff   : > { %8166 = vmatprep.subr.mxu1 %v3150_v38  ;;  %8153 = vmatpush3.msra.mxu0 %v3153_v53 }
 0x700   : > { %8167 = vmatpush3.msra.mxu1 %v3150_v38  ;;  %8147 = vmatprep.mubr.f32.mxu1 %v3101_v57 }
 0x701   : > { %8154 = vmatprep.subr.mxu0 %v3160_v60  ;;  %8168 = vmatprep.subr.mxu1 %v3157_v26 }
 0x702   : > { %8148 = vmatmul.mubr.f32.gmra.mxu1 %v3111_v59  ;;  %8155 = vmatpush3.msra.mxu0 %v3160_v60 }
 0x703   : > { %8169 = vmatpush3.msra.mxu1 %v3157_v26  ;;  %8156 = vmatprep.subr.mxu0 %v3167_v61 }
 0x704   : > { %8170 = vmatprep.subr.mxu1 %v3164_v36  ;;  %8157 = vmatpush3.msra.mxu0 %v3167_v61 }
 0x705   : > { %8171 = vmatpush3.msra.mxu1 %v3164_v36  ;;  %8159 = vmatmul.mubr.f32.vlgmr.msra.gmra.mxu0 %v10168_v3 }
 0x706   : > { %8172 = vmatprep.mubr.f32.mxu1 %v10146_v51  ;;  %8178 = vmatprep.subr.mxu0 %v10187_v22  ;;  %v7397_v51 = vld [vmem:[%s9729_s12 + $0x8] sm:$0xff] }
 0x707   : > { %8192 = vmatprep.subr.mxu1 %v3144_v37  ;;  %8173 = vmatmul.mubr.f32.vlgmr.msra.gmra.mxu1 %v10175_v12  ;;  %v2302_v12 = vld [vmem:[#allocation17 + $0x38] sm:$0xff] }
 0x708   : > { %8179 = vmatpush3.msra.mxu0 %v10187_v22  ;;  %8193 = vmatpush3.msra.mxu1 %v3144_v37 }
 0x709   : > { %8180 = vmatprep.subr.mxu0 %v10194_v27  ;;  %8194 = vmatprep.subr.mxu1 %v3151_v43 }
 0x70a   : > { %8161 = vmatprep.mubr.f32.mxu0 %v10172_v7  ;;  %8181 = vmatpush3.msra.mxu0 %v10194_v27 }
 0x70b   : > { %8195 = vmatpush3.msra.mxu1 %v3151_v43  ;;  %8162 = vmatmul.mubr.f32.gmra.mxu0 %v10177_v14 }
 0x70c   : > { %8182 = vmatprep.subr.mxu0 %v10179_v19  ;;  %8196 = vmatprep.subr.mxu1 %v3158_v41 }
 0x70d   : > { %8175 = vmatprep.mubr.f32.mxu1 %v10182_v20  ;;  %8183 = vmatpush3.msra.mxu0 %v10179_v19  ;;  %v2300_v20 = vld [vmem:[#allocation17 + $0x28] sm:$0xff] }
 0x70e   : > { %8197 = vmatpush3.msra.mxu1 %v3158_v41  ;;  %8184 = vmatprep.subr.mxu0 %v10184_v54 }
 0x70f   : > { %8176 = vmatmul.mubr.f32.gmra.mxu1 %v10190_v23  ;;  %8198 = vmatprep.subr.mxu1 %v3165_v47 }
 0x710   : > { %8185 = vmatpush3.msra.mxu0 %v10184_v54  ;;  %8186 = vmatprep.mubr.f32.mxu0 %v3079_v49 }
 0x711   : > { %8199 = vmatpush3.msra.mxu1 %v3165_v47  ;;  %8187 = vmatmul.mubr.f32.vlgmr.msra.gmra.mxu0 %v3089_v56 }
 0x712   : > { %8206 = vmatprep.subr.mxu0 %v10187_v22  ;;  %8200 = vmatprep.mubr.f32.mxu1 %v10143_v48 }
 0x713   : > { %8207 = vmatpush3.msra.mxu0 %v10187_v22  ;;  %8201 = vmatmul.mubr.f32.vlgmr.msra.gmra.mxu1 %v10168_v3 }
 0x714   : > { %8208 = vmatprep.subr.mxu0 %v10194_v27  ;;  %8189 = vmatprep.mubr.f32.mxu0 %v3099_v32 }
 0x715   : > { %8209 = vmatpush3.msra.mxu0 %v10194_v27  ;;  %8203 = vmatprep.mubr.f32.mxu1 %v10172_v7 }
 0x716   : > { %8190 = vmatmul.mubr.f32.gmra.mxu0 %v3109_v40  ;;  %8210 = vmatprep.subr.mxu0 %v10179_v19 }
 0x717   : > { %8211 = vmatpush3.msra.mxu0 %v10179_v19  ;;  %8204 = vmatmul.mubr.f32.gmra.mxu1 %v10177_v14 }
 0x718   : > { %8212 = vmatprep.subr.mxu0 %v10184_v54  ;;  %8214 = vmatprep.mubr.f32.mxu0 %v10143_v48  ;;  %v3673_v48 = vpack.c.bf16 %v7397_v51, %v7397_v51 }
 0x719   : > { %8213 = vmatpush3.msra.mxu0 %v10184_v54  ;;  %8220 = vmatprep.subr.bf16.mxu1 %v11131_v55  ;;  %v2301_v54 = vld [vmem:[#allocation17 + $0x30] sm:$0xff] }
 0x71a   : > { %8215 = vmatmul.mubr.f32.vlgmr.msra.gmra.mxu0 %v10168_v3  ;;  %8224 = vmatprep.mubr.msk.bf16.mxu1 %vm9398_vm1, %v11131_v55  ;;  %v3678_v49 = vsel %vm809_vm0, %v3673_v48, 0 }
 0x71b   : > { %8217 = vmatprep.mubr.f32.mxu0 %v10172_v7  ;;  %8228 = vmatprep.subr.bf16.mxu0 %v11131_v55 }
 0x71c   : > { %8229 = vmatpush3.bf16.xpose.msra.mxu0 %v3678_v49 }
 0x71e   : > { %8218 = vmatmul.mubr.f32.gmra.mxu0 %v10177_v14 }
 0x71f   : > { %8230 = vmatprep.mubr.msk.bf16.mxu0 %vm9398_vm1, %v11131_v55 }
 0x7bd   : > { %v8146_v63 = vpop.f32.mrf.mxu1 }
 0x7be   : > { %v3094_v23 = vadd.f32 %v8146_v63, %v2300_v20 }
 0x7bf   : > { %v3083_v0 = vpop.f32.mrf.mxu1 }
 0x7c0   : > { %v3084_v25 = vadd.f32 %v3083_v0, %v2299_v21 }
 0x7c2   : > { %v8149_v1 = vpop.f32.mrf.mxu1 }
 0x7c3   : > { %v3114_v14 = vadd.f32 %v8149_v1, %v2302_v12  ;;  %v7396_v12 = vld [vmem:[%s9718_s4 + $0x8] sm:$0xff] }
 0x7c4   : > { %v3103_v2 = vpop.f32.mrf.mxu1 }
 0x7c5   : > { %v8160_v3 = vpop.f32.mrf.mxu0  ;;  %v3104_v26 = vadd.f32 %v3103_v2, %v2301_v54 }
 0x7c6   : > { %v3211_v40 = vadd.f32 %v8160_v3, %v3094_v23 }
 0x7c7   : > { %v3204_v5 = vpop.f32.mrf.mxu0  ;;  %v8174_v6 = vpop.f32.mrf.mxu1 }
 0x7c8   : > { %v3205_v34 = vadd.f32 %v3204_v5, %v3084_v25  ;;  %v3310_v39 = vadd.f32 %v8174_v6, %v3211_v40  ;;  %v7398_v40 = vld [vmem:[%s9737_s16 + $0x8] sm:$0xff] }
 0x7c9   : > { %v3302_v9 = vpop.f32.mrf.mxu1 }
 0x7ca   : > { %v3303_v44 = vadd.f32 %v3302_v9, %v3205_v34 }
 0x7cb   : > { %v8163_v7 = vpop.f32.mrf.mxu0 }
 0x7cc   : > { %v3223_v27 = vadd.f32 %v8163_v7, %v3114_v14  ;;  %v3628_v14 = vpack.c.bf16 %v7396_v12, %v7396_v12 }
 0x7cd   : > { %v3216_v18 = vpop.f32.mrf.mxu0 }
 0x7ce   : > { %v3217_v36 = vadd.f32 %v3216_v18, %v3104_v26 }
 0x7cf   : > { %v8177_v19 = vpop.f32.mrf.mxu1 }
 0x7d0   : > { %v3324_v41 = vadd.f32 %v8177_v19, %v3223_v27 }
 0x7d1   : > { %v3316_v56 = vpop.f32.mrf.mxu1  ;;  %v8188_v22 = vpop.f32.mrf.mxu0 }
 0x7d2   : > { %v3317_v46 = vadd.f32 %v3316_v56, %v3217_v36  ;;  %v3409_v58 = vadd.f32 %v8188_v22, %v3310_v39  ;;  %v3781_v39 = vld [vmem:[#allocation11 + $0x40] sm:$0xff] }
 0x7d3   : > { %v3400_v31 = vpop.f32.mrf.mxu0  ;;  %v8202_v32 = vpop.f32.mrf.mxu1 }
 0x7d4   : > { %v3401_v45 = vadd.f32 %v3400_v31, %v3303_v44  ;;  %v3514_v63 = vadd.f32 %v8202_v32, %v3409_v58  ;;  %v7407_v44 = vld [vmem:[%s9740_s7 + $0x48] sm:$0xff] }
 0x7d5   : > { %v3507_v37 = vpop.f32.mrf.mxu1 }
 0x7d6   : > { %v8191_v38 = vpop.f32.mrf.mxu0  ;;  %v3508_v61 = vadd.f32 %v3507_v37, %v3401_v45  ;;  %v3817_v45 = vsel %vm809_vm0, %v3781_v39, 0 }
 0x7d7   : > { %v8205_v43 = vpop.f32.mrf.mxu1  ;;  %v3425_v47 = vadd.f32 %v8191_v38, %v3324_v41  ;;  %v7409_v41 = vld [vmem:[%s9740_s7 + $0x58] sm:$0xff] }
 0x7d8   : > { %v3416_v42 = vpop.f32.mrf.mxu0 }
 0x7d9   : > { %v3417_v52 = vadd.f32 %v3416_v42, %v3317_v46  ;;  %v3519_v53 = vpop.f32.mrf.mxu1  ;;  %v3526_v59 = vadd.f32 %v8205_v43, %v3425_v47  ;;  %v3733_v42 = vpack.c.bf16 %v7398_v40, %v7398_v40  ;;  %v10295_v43 = vand.u32 4294901760, %v7409_v41 }
 0x7da   : > { %v8216_v50 = vpop.f32.mrf.mxu0 }
 0x7db   : > { %v3520_v51 = vadd.f32 %v3519_v53, %v3417_v52  ;;  %v10270_v2 = vadd.f32 %v8216_v50, %v3514_v63  ;;  %v3738_v46 = vsel %vm2234_vm3, %v3733_v42, 0  ;;  %8240 = vmatprep.subr.mxu0 %v10295_v43  ;;  %v10304_v50 = vand.u32 4294901760, %v7407_v44  ;;  %v3782_v52 = vld [vmem:[#allocation11 + $0x48] sm:$0xff] }
 0x7dc   : > { %v3600_v57 = vpop.f32.mrf.mxu0  ;;  %v10310_v53 = vand.u32 4294901760, %v3817_v45  ;;  %v3963_v58 = vsub.f32 %v7409_v41, %v10295_v43 }
 0x7dd   : > { %v10266_v0 = vadd.f32 %v3600_v57, %v3508_v61  ;;  %v3623_v9 = vmul.f32 0.17677669, %v10270_v2  ;;  %v3820_v57 = vsel %vm809_vm0, %v3782_v52, 0  ;;  %v3783_v61 = vld [vmem:[#allocation11 + $0x50] sm:$0xff] }
 0x7de   : > { %v8219_v60 = vpop.f32.mrf.mxu0 }
 0x7df   : > { %v10264_v48 = vadd.f32 %v8219_v60, %v3526_v59  ;;  %v3622_v6 = vmul.f32 0.17677669, %v10266_v0  ;;  %v10314_v59 = vand.u32 4294901760, %v3820_v57  ;;  %v10317_v60 = vsub.f32 %v3817_v45, %v10310_v53 }
 0x7e0   : > { %v3612_v49 = vpop.f32.mrf.mxu0 }
 0x7e1   : > { %v10268_v1 = vadd.f32 %v3612_v49, %v3520_v51  ;;  %v3625_v3 = vmul.f32 0.17677669, %v10264_v48  ;;  %v3626_v18 = vpack.c.bf16 %v3623_v9, %v3622_v6  ;;  %v3964_v51 = vand.u32 4294901760, %v3963_v58  ;;  %v7406_v6 = vld [vmem:[%s9740_s7 + $0x40] sm:$0xff] }
 0x7e2   : > { %v10320_v49 = vsub.f32 %v3820_v57, %v10314_v59 }
 0x7e3   : > { %v3624_v5 = vmul.f32 0.17677669, %v10268_v1 }
 0x7e5   : > { %v3627_v7 = vpack.c.bf16 %v3625_v3, %v3624_v5  ;;  %v3823_v3 = vsel %vm809_vm0, %v3783_v61, 0  ;;  %v3784_v5 = vld [vmem:[#allocation11 + $0x58] sm:$0xff] }
 0x7e6   : > { %v10328_v9 = vand.u32 4294901760, %v3823_v3  ;;  %v3826_v12 = vsel %vm809_vm0, %v3784_v5, 0 }
 0x7e7   : > { %8221 = vmatpush3.bf16.msra.mxu1 %v3627_v7  ;;  %v3899_v7 = vand.u32 4294901760, %v10317_v60 }
 0x7e8   : > { %8222 = vmatprep.subr.bf16.mxu1 %v11131_v55 }
 0x7eb   : > { %8223 = vmatpush3.bf16.msra.mxu1 %v3626_v18  ;;  %v10331_v18 = vand.u32 4294901760, %v7406_v6 }
 0x7ec   : > { %8234 = vmatprep.subr.bf16.mxu1 %v11131_v55 }
 0x7ee   : > { %8225 = vmatmul.mubr.msk.bf16.vlgmr.msra.gmra.mxu1 %vm809_vm0, %v3628_v14  ;;  %v3965_v14 = vsub.f32 %v3963_v58, %v3964_v51 }
 0x7ef   : > { %8236 = vmatprep.mubr.msk.bf16.mxu1 %vm9398_vm1, %v11131_v55  ;;  %8235 = vmatpush3.bf16.msra.mxu1 %v3738_v46 }
 0x8ae   : > { %v3666_v19 = vpop.f32.mrf.mxu1 }
 0x8af   : > { %v3672_v20 = vpack.c.bf16 %v3666_v19, %v3666_v19  ;;  %v3909_v19 = vand.u32 4294901760, %v10320_v49 }
 0x8b0   : > { %v8226_v21 = vpop.f32.mrf.mxu1 }
 0x8b1   : > { %8231 = vmatmul.mubr.msk.bf16.vlgmr.msra.gmra.mxu0 %vm809_vm0, %v3672_v20  ;;  %v3900_v21 = vsub.f32 %v10317_v60, %v3899_v7 }
 0x8b2   : > { %v3669_v54 = vpop.f32.mrf.mxu1  ;;  %8241 = vmatpush3.msra.mxu0 %v10295_v43 }
 0x8b3   : > { %v3977_v54 = vsub.f32 %v7407_v44, %v10304_v50 }
 0x8b4   : > { %v8227_v56 = vpop.f32.mrf.mxu1 }
 0x8b5   : > { %v10340_v56 = vsub.f32 %v3823_v3, %v10328_v9 }
 0x971   : > { %v10283_v22 = vpop.f32.mrf.mxu0 }
 0x972   : > { %v3720_v23 = vadd.f32 %v10283_v22, %v10017_v29  ;;  %v7408_v29 = vld [vmem:[%s9740_s7 + $0x50] sm:$0xff] }
 0x973   : > { %v8232_v25 = vpop.f32.mrf.mxu0  ;;  %v10300_v47 = vand.u32 4294901760, %v7408_v29 }
 0x974   : > { %v3721_v26 = vsel %vm2217_vm2, %v3720_v23, -inf  ;;  %v3966_v25 = vand.u32 4294901760, %v3965_v14 }
 0x975   : > { %3722 = vmax.xlane.f32.xlu1 %v3721_v26  ;;  %v3717_v27 = vpop.f32.mrf.mxu0  ;;  %8242 = vmatprep.subr.mxu0 %v10300_v47  ;;  %v10323_v63 = vsub.f32 %v7408_v29, %v10300_v47  ;;  %v3910_v26 = vsub.f32 %v10320_v49, %v3909_v19 }
 0x976   : > { %8243 = vmatpush3.msra.mxu0 %v10300_v47  ;;  %8254 = vmatprep.subr.mxu1 %v3966_v25 }
 0x977   : > { %v8233_v31 = vpop.f32.mrf.mxu0  ;;  %8244 = vmatprep.subr.mxu0 %v10304_v50  ;;  %v3971_v20 = vand.u32 4294901760, %v10323_v63  ;;  %v3911_v40 = vand.u32 4294901760, %v3910_v26  ;;  %v3786_v26 = vld [vmem:[#allocation13 + $0x40] sm:$0xff] }
 0x978   : > { %8245 = vmatpush3.msra.mxu0 %v10304_v50  ;;  %v3984_v31 = vsub.f32 %v7406_v6, %v10331_v18 }
 0x979   : > { %8246 = vmatprep.subr.mxu0 %v10331_v18  ;;  %v3972_v27 = vsub.f32 %v10323_v63, %v3971_v20 }
 0x97a   : > { %8247 = vmatpush3.msra.mxu0 %v10331_v18  ;;  %v3985_v41 = vand.u32 4294901760, %v3984_v31 }
 0x97b   : > { %8268 = vmatprep.subr.mxu0 %v3963_v58 }
 0x97c   : > { %v3986_v46 = vsub.f32 %v3984_v31, %v3985_v41 }
 0x97e   : > { %v3987_v5 = vand.u32 4294901760, %v3986_v46 }
 0x9fe   : > { %v3723_v32 = vpop.xlane.xlu1 %3722 }
 0x9ff   : > { %v3724_v34 = vsub.f32 %v3720_v23, %v3723_v32  ;;  %v10342_v23 = vand.u32 4294901760, %v3826_v12  ;;  %v3901_v32 = vand.u32 4294901760, %v3900_v21  ;;  %v3787_v21 = vld [vmem:[#allocation13 + $0x48] sm:$0xff] }
 0xa01   : > { %v3725_v36 = vmul.f32 1.442695, %v3724_v34  ;;  %v3978_v34 = vand.u32 4294901760, %v3977_v54  ;;  %8248 = vmatprep.mubr.f32.mxu0 %v3901_v32 }
 0xa02   : > { %8249 = vmatmul.mubr.f32.vlgmr.msra.gmra.mxu0 %v3911_v40 }
 0xa03   : > { %8848 = vpow2.f32 %v3725_v36  ;;  %v3919_v36 = vand.u32 4294901760, %v10340_v56  ;;  %v3979_v29 = vsub.f32 %v3977_v54, %v3978_v34  ;;  %8269 = vmatpush3.msra.mxu0 %v3963_v58 }
 0xa04   : > { %8270 = vmatprep.subr.mxu0 %v10323_v63 }
 0xa05   : > { %v3920_v42 = vsub.f32 %v10340_v56, %v3919_v36  ;;  %8271 = vmatpush3.msra.mxu0 %v10323_v63  ;;  %v3973_v63 = vand.u32 4294901760, %v3972_v27  ;;  %v3980_v3 = vand.u32 4294901760, %v3979_v29  ;;  %v3789_v27 = vld [vmem:[#allocation13 + $0x58] sm:$0xff] }
 0xa06   : > { %8272 = vmatprep.subr.mxu0 %v3977_v54 }
 0xa07   : > { %v3921_v39 = vand.u32 4294901760, %v3920_v42  ;;  %8273 = vmatpush3.msra.mxu0 %v3977_v54 }
 0xa08   : > { %8274 = vmatprep.subr.mxu0 %v3984_v31 }
 0xa09   : > { %8251 = vmatprep.mubr.f32.mxu0 %v3921_v39  ;;  %8275 = vmatpush3.msra.mxu0 %v3984_v31 }
 0xa0a   : > { %8296 = vmatprep.subr.mxu0 %v3964_v51 }
 0xa10   : > { %v10288_v37 = vpop.eup %8848 }
 0xa11   : > { %v3727_v38 = vsel %vm2217_vm2, %v10288_v37, 0.0 }
 0xa12   : > { %3728 = vadd.xlane.f32.xlu1 %v3727_v38  ;;  %v10353_v38 = vsub.f32 %v3826_v12, %v10342_v23 }
 0xa14   : > { %v3929_v44 = vand.u32 4294901760, %v10353_v38 }
 0xa16   : > { %v3930_v45 = vsub.f32 %v10353_v38, %v3929_v44 }
 0xa18   : > { %v3931_v52 = vand.u32 4294901760, %v3930_v45 }
 0xa1a   : > { %8252 = vmatmul.mubr.f32.gmra.mxu0 %v3931_v52 }
 0xa1b   : > { %8276 = vmatprep.mubr.f32.mxu0 %v10317_v60 }
 0xa1e   : > { %8277 = vmatmul.mubr.f32.vlgmr.msra.gmra.mxu0 %v10320_v49 }
 0xa1f   : > { %8297 = vmatpush3.msra.mxu0 %v3964_v51  ;;  %8279 = vmatprep.mubr.f32.mxu0 %v10340_v56 }
 0xa20   : > { %8298 = vmatprep.subr.mxu0 %v3971_v20 }
 0xa21   : > { %8299 = vmatpush3.msra.mxu0 %v3971_v20 }
 0xa22   : > { %8280 = vmatmul.mubr.f32.gmra.mxu0 %v10353_v38  ;;  %8300 = vmatprep.subr.mxu0 %v3978_v34 }
 0xa23   : > { %8301 = vmatpush3.msra.mxu0 %v3978_v34  ;;  %8304 = vmatprep.mubr.f32.mxu0 %v10310_v53 }
 0xa24   : > { %8302 = vmatprep.subr.mxu0 %v3985_v41 }
 0xa25   : > { %8303 = vmatpush3.msra.mxu0 %v3985_v41  ;;  %v3788_v41 = vld [vmem:[#allocation13 + $0x50] sm:$0xff] }
 0xa26   : > { %8305 = vmatmul.mubr.f32.vlgmr.msra.gmra.mxu0 %v10314_v59 }
 0xa27   : > { %8307 = vmatprep.mubr.f32.mxu0 %v10328_v9 }
 0xa2a   : > { %8308 = vmatmul.mubr.f32.gmra.mxu0 %v10342_v23 }
 0xa9b   : > { %v3729_v57 = vpop.xlane.xlu1 %3728 }
 0xa9c   : > { %8850 = vrcp.f32 %v3729_v57 }
 0xaa9   : > { %v8851_v58 = vpop.eup %8850 }
 0xaaa   : > { %v3731_v61 = vmul.f32 %v8851_v58, %v10288_v37  ;;  %v3796_v37 = vld [vmem:[#allocation16 + $0x40] sm:$0xff] }
 0xaac   : > { %v3732_v51 = vpack.c.bf16 %v3731_v61, %v3731_v61 }
 0xaae   : > { %8237 = vmatmul.mubr.msk.bf16.vlgmr.msra.gmra.mxu1 %vm2217_vm2, %v3732_v51 }
 0xaaf   : > { %8255 = vmatpush3.msra.mxu1 %v3966_v25  ;;  %8262 = vmatprep.mubr.f32.mxu1 %v10310_v53 }
 0xab0   : > { %8256 = vmatprep.subr.mxu1 %v3973_v63 }
 0xab1   : > { %8257 = vmatpush3.msra.mxu1 %v3973_v63 }
 0xab2   : > { %8258 = vmatprep.subr.mxu1 %v3980_v3 }
 0xab3   : > { %8259 = vmatpush3.msra.mxu1 %v3980_v3 }
 0xab4   : > { %8260 = vmatprep.subr.mxu1 %v3987_v5 }
 0xab5   : > { %8261 = vmatpush3.msra.mxu1 %v3987_v5 }
 0xab6   : > { %8263 = vmatmul.mubr.f32.vlgmr.msra.gmra.mxu1 %v10314_v59  ;;  %8282 = vmatprep.subr.mxu1 %v10295_v43 }
 0xab7   : > { %8283 = vmatpush3.msra.mxu1 %v10295_v43  ;;  %8265 = vmatprep.mubr.f32.mxu1 %v10328_v9 }
 0xab8   : > { %8284 = vmatprep.subr.mxu1 %v10300_v47 }
 0xab9   : > { %8285 = vmatpush3.msra.mxu1 %v10300_v47 }
 0xaba   : > { %8266 = vmatmul.mubr.f32.gmra.mxu1 %v10342_v23  ;;  %8286 = vmatprep.subr.mxu1 %v10304_v50 }
 0xabb   : > { %8287 = vmatpush3.msra.mxu1 %v10304_v50  ;;  %8290 = vmatprep.mubr.f32.mxu1 %v3899_v7 }
 0xabc   : > { %8288 = vmatprep.subr.mxu1 %v10331_v18 }
 0xabd   : > { %8289 = vmatpush3.msra.mxu1 %v10331_v18 }
 0xabe   : > { %8291 = vmatmul.mubr.f32.vlgmr.msra.gmra.mxu1 %v3909_v19  ;;  %8310 = vmatprep.subr.mxu1 %v10295_v43 }
 0xabf   : > { %8311 = vmatpush3.msra.mxu1 %v10295_v43  ;;  %8293 = vmatprep.mubr.f32.mxu1 %v3919_v36  ;;  %v4499_v43 = vsel %vm809_vm0, %v3796_v37, 0 }
 0xac0   : > { %8312 = vmatprep.subr.mxu1 %v10300_v47 }
 0xac1   : > { %8313 = vmatpush3.msra.mxu1 %v10300_v47  ;;  %v10407_v47 = vand.u32 4294901760, %v4499_v43 }
 0xac2   : > { %8294 = vmatmul.mubr.f32.gmra.mxu1 %v3929_v44  ;;  %8314 = vmatprep.subr.mxu1 %v10304_v50 }
 0xac3   : > { %8315 = vmatpush3.msra.mxu1 %v10304_v50  ;;  %8318 = vmatprep.mubr.f32.mxu1 %v10310_v53  ;;  %v10410_v60 = vsub.f32 %v4499_v43, %v10407_v47 }
 0xac4   : > { %8316 = vmatprep.subr.mxu1 %v10331_v18 }
 0xac5   : > { %8317 = vmatpush3.msra.mxu1 %v10331_v18  ;;  %v4581_v50 = vand.u32 4294901760, %v10410_v60 }
 0xac6   : > { %8319 = vmatmul.mubr.f32.vlgmr.msra.gmra.mxu1 %v10314_v59  ;;  %v8250_v59 = vpop.f32.mrf.mxu0 }
 0xac7   : > { %8321 = vmatprep.mubr.f32.mxu1 %v10328_v9  ;;  %v4582_v53 = vsub.f32 %v10410_v60, %v4581_v50  ;;  %v3914_v25 = vadd.f32 %v8250_v59, %v3787_v21 }
 0xac8   : > { %v3903_v6 = vpop.f32.mrf.mxu0 }
 0xac9   : > { %v4583_v49 = vand.u32 4294901760, %v4582_v53  ;;  %v3904_v36 = vadd.f32 %v3903_v6, %v3786_v26 }
 0xaca   : > { %8322 = vmatmul.mubr.f32.gmra.mxu1 %v10342_v23 }
 0xacb   : > { %8346 = vmatprep.mubr.f32.mxu1 %v10407_v47  ;;  %8332 = vmatprep.mubr.f32.mxu0 %v4583_v49 }
 0xada   : > { %v8253_v7 = vpop.f32.mrf.mxu0 }
 0xadb   : > { %v3934_v38 = vadd.f32 %v8253_v7, %v3789_v27 }
 0xadc   : > { %v3923_v9 = vpop.f32.mrf.mxu0 }
 0xadd   : > { %v3924_v39 = vadd.f32 %v3923_v9, %v3788_v41 }
 0xade   : > { %v8278_v12 = vpop.f32.mrf.mxu0 }
 0xae0   : > { %v4122_v19 = vpop.f32.mrf.mxu0 }
 0xae2   : > { %v8281_v56 = vpop.f32.mrf.mxu0 }
 0xae4   : > { %v4136_v32 = vpop.f32.mrf.mxu0 }
 0xae6   : > { %v8306_v42 = vpop.f32.mrf.mxu0 }
 0xae8   : > { %v4327_v58 = vpop.f32.mrf.mxu0 }
 0xaea   : > { %v8309_v53 = vpop.f32.mrf.mxu0 }
 0xaec   : > { %v4339_v9 = vpop.f32.mrf.mxu0 }
 0xb6e   : > { %v10417_v18 = vpop.f32.mrf.mxu1 }
 0xb70   : > { %v8238_v14 = vpop.f32.mrf.mxu1 }
 0xb72   : > { %v3777_v20 = vpop.f32.mrf.mxu1 }
 0xb74   : > { %v8239_v54 = vpop.f32.mrf.mxu1 }
 0xb76   : > { %v8264_v23 = vpop.f32.mrf.mxu1 }
 0xb77   : > { %v4031_v40 = vadd.f32 %v8264_v23, %v3914_v25 }
 0xb78   : > { %v4024_v31 = vpop.f32.mrf.mxu1 }
 0xb79   : > { %v4025_v44 = vadd.f32 %v4024_v31, %v3904_v36  ;;  %v4130_v45 = vadd.f32 %v8278_v12, %v4031_v40 }
 0xb7a   : > { %v8267_v34 = vpop.f32.mrf.mxu1 }
 0xb7b   : > { %v4043_v52 = vadd.f32 %v8267_v34, %v3934_v38  ;;  %v4123_v61 = vadd.f32 %v4122_v19, %v4025_v44 }
 0xb7c   : > { %v4036_v29 = vpop.f32.mrf.mxu1 }
 0xb7d   : > { %v4037_v51 = vadd.f32 %v4036_v29, %v3924_v39  ;;  %v4144_v5 = vadd.f32 %v8281_v56, %v4043_v52 }
 0xb7e   : > { %v8292_v46 = vpop.f32.mrf.mxu1 }
 0xb7f   : > { %v4229_v63 = vadd.f32 %v8292_v46, %v4130_v45  ;;  %v4137_v59 = vadd.f32 %v4136_v32, %v4037_v51 }
 0xb80   : > { %v4220_v57 = vpop.f32.mrf.mxu1 }
 0xb81   : > { %v4221_v37 = vadd.f32 %v4220_v57, %v4123_v61  ;;  %v4334_v49 = vadd.f32 %v8306_v42, %v4229_v63 }
 0xb82   : > { %v8295_v3 = vpop.f32.mrf.mxu1 }
 0xb83   : > { %v4245_v6 = vadd.f32 %v8295_v3, %v4144_v5  ;;  %v4328_v14 = vadd.f32 %v4327_v58, %v4221_v37 }
 0xb84   : > { %v4236_v43 = vpop.f32.mrf.mxu1 }
 0xb85   : > { %v4237_v20 = vadd.f32 %v4236_v43, %v4137_v59  ;;  %v4346_v54 = vadd.f32 %v8309_v53, %v4245_v6 }
 0xb86   : > { %v8320_v7 = vpop.f32.mrf.mxu1 }
 0xb87   : > { %v4427_v21 = vadd.f32 %v8320_v7, %v4334_v49  ;;  %v4340_v26 = vadd.f32 %v4339_v9, %v4237_v20  ;;  %v3792_v20 = vld [vmem:[#allocation14 + $0x48] sm:$0xff] }
 0xb88   : > { %v4420_v12 = vpop.f32.mrf.mxu1 }
 0xb89   : > { %v7414_v23 = vmul.f32 -1.442695, %v4427_v21  ;;  %v4421_v25 = vadd.f32 %v4420_v12, %v4328_v14  ;;  %v3791_v12 = vld [vmem:[#allocation14 + $0x40] sm:$0xff] }
 0xb8a   : > { %v8323_v19 = vpop.f32.mrf.mxu1 }
 0xb8b   : > { %8852 = vpow2.f32 %v7414_v23  ;;  %v7413_v27 = vmul.f32 -1.442695, %v4421_v25  ;;  %v4439_v56 = vadd.f32 %v8323_v19, %v4346_v54  ;;  %v3794_v19 = vld [vmem:[#allocation14 + $0x58] sm:$0xff] }
 0xb8c   : > { %v4432_v31 = vpop.f32.mrf.mxu1 }
 0xb8d   : > { %8854 = vpow2.f32 %v7413_v27  ;;  %v7416_v34 = vmul.f32 -1.442695, %v4439_v56  ;;  %v4433_v32 = vadd.f32 %v4432_v31, %v4340_v26 }
 0xb8f   : > { %8856 = vpow2.f32 %v7416_v34  ;;  %v7415_v36 = vmul.f32 -1.442695, %v4433_v32  ;;  %v3793_v34 = vld [vmem:[#allocation14 + $0x50] sm:$0xff] }
 0xb91   : > { %8858 = vpow2.f32 %v7415_v36 }
 0xb98   : > { %v8853_v38 = vpop.eup %8852 }
 0xb99   : > { %v4455_v40 = vadd.f32 1.0, %v8853_v38 }
 0xb9a   : > { %v8855_v41 = vpop.eup %8854 }
 0xb9b   : > { %8860 = vrcp.f32 %v4455_v40  ;;  %v4454_v29 = vadd.f32 1.0, %v8855_v41 }
 0xb9c   : > { %v8857_v42 = vpop.eup %8856 }
 0xb9d   : > { %8862 = vrcp.f32 %v4454_v29  ;;  %v4457_v44 = vadd.f32 1.0, %v8857_v42  ;;  %v3797_v29 = vld [vmem:[#allocation16 + $0x48] sm:$0xff] }
 0xb9e   : > { %v8859_v46 = vpop.eup %8858 }
 0xb9f   : > { %8864 = vrcp.f32 %v4457_v44  ;;  %v4456_v39 = vadd.f32 1.0, %v8859_v46  ;;  %v4502_v44 = vsel %vm809_vm0, %v3797_v29, 0  ;;  %v3798_v46 = vld [vmem:[#allocation16 + $0x50] sm:$0xff] }
 0xba1   : > { %8866 = vrcp.f32 %v4456_v39  ;;  %v3799_v39 = vld [vmem:[#allocation16 + $0x58] sm:$0xff] }
 0xba8   : > { %v8861_v45 = vpop.eup %8860 }
 0xba9   : > { %v4467_v52 = vmul.f32 %v8861_v45, %v4427_v21  ;;  %v10432_v45 = vand.u32 4294901760, %v4502_v44 }
 0xbaa   : > { %v8863_v57 = vpop.eup %8862 }
 0xbab   : > { %v4471_v58 = vmul.f32 %v4467_v52, %v4427_v21  ;;  %v4466_v61 = vmul.f32 %v8863_v57, %v4421_v25  ;;  %v4505_v52 = vsel %vm809_vm0, %v3798_v46, 0  ;;  %v4508_v57 = vsel %vm809_vm0, %v3799_v39, 0 }
 0xbac   : > { %v8865_v51 = vpop.eup %8864 }
 0xbad   : > { %v10419_v63 = vadd.f32 1e-09, %v4471_v58  ;;  %v4470_v3 = vmul.f32 %v4466_v61, %v4421_v25  ;;  %v4469_v5 = vmul.f32 %v8865_v51, %v4439_v56  ;;  %v10436_v58 = vand.u32 4294901760, %v4505_v52 }
 0xbae   : > { %v8867_v37 = vpop.eup %8866  ;;  %v10439_v51 = vsub.f32 %v4502_v44, %v10432_v45 }
 0xbaf   : > { %8868 = vlog2.f32 %v10419_v63  ;;  %v10422_v43 = vadd.f32 1e-09, %v4470_v3  ;;  %v4473_v53 = vmul.f32 %v4469_v5, %v4439_v56  ;;  %v4468_v59 = vmul.f32 %v8867_v37, %v4433_v32 }
 0xbb0   : > { %v10441_v3 = vand.u32 4294901760, %v4508_v57 }
 0xbb1   : > { %8870 = vlog2.f32 %v10422_v43  ;;  %v10425_v49 = vadd.f32 1e-09, %v4473_v53  ;;  %v4472_v6 = vmul.f32 %v4468_v59, %v4433_v32  ;;  %v10446_v53 = vsub.f32 %v4505_v52, %v10436_v58 }
 0xbb3   : > { %8872 = vlog2.f32 %v10425_v49  ;;  %v10428_v7 = vadd.f32 1e-09, %v4472_v6 }
 0xbb5   : > { %8874 = vlog2.f32 %v10428_v7 }
 0xbbc   : > { %v8869_v14 = vpop.eup %8868 }
 0xbbd   : > { %v4481_v21 = vmul.f32 0.6931472, %v8869_v14  ;;  %v4591_v14 = vand.u32 4294901760, %v10439_v51 }
 0xbbe   : > { %v8871_v9 = vpop.eup %8870 }
 0xbbf   : > { %v4487_v54 = vmul.f32 %v4481_v21, %v3792_v20  ;;  %v4479_v23 = vmul.f32 0.6931472, %v8871_v9  ;;  %v10454_v21 = vsub.f32 %v4508_v57, %v10441_v3 }
 0xbc0   : > { %v8873_v25 = vpop.eup %8872 }
 0xbc1   : > { %v4492_v26 = vmul.f32 1.442695, %v4487_v54  ;;  %v4486_v27 = vmul.f32 %v4479_v23, %v3791_v12  ;;  %v4485_v56 = vmul.f32 0.6931472, %v8873_v25  ;;  %v4601_v25 = vand.u32 4294901760, %v10446_v53 }
 0xbc2   : > { %v8875_v31 = vpop.eup %8874 }
 0xbc3   : > { %8876 = vpow2.f32 %v4492_v26  ;;  %v4490_v32 = vmul.f32 1.442695, %v4486_v27  ;;  %v4489_v36 = vmul.f32 %v4485_v56, %v3794_v19  ;;  %v4483_v38 = vmul.f32 0.6931472, %v8875_v31 }
 0xbc4   : > { %v4592_v19 = vsub.f32 %v10439_v51, %v4591_v14  ;;  %v4611_v31 = vand.u32 4294901760, %v10454_v21 }
 0xbc5   : > { %8878 = vpow2.f32 %v4490_v32  ;;  %v4496_v40 = vmul.f32 1.442695, %v4489_v36  ;;  %v4488_v41 = vmul.f32 %v4483_v38, %v3793_v34  ;;  %v4602_v38 = vsub.f32 %v10446_v53, %v4601_v25 }
 0xbc6   : > { %v4612_v44 = vsub.f32 %v10454_v21, %v4611_v31 }
 0xbc7   : > { %8880 = vpow2.f32 %v4496_v40  ;;  %v4494_v42 = vmul.f32 1.442695, %v4488_v41  ;;  %v4593_v40 = vand.u32 4294901760, %v4592_v19  ;;  %v4603_v52 = vand.u32 4294901760, %v4602_v38  ;;  %v3803_v19 = vld [vmem:[#allocation17 + $0x50] sm:$0xff] }
 0xbc9   : > { %8882 = vpow2.f32 %v4494_v42 }
 0xbd0   : > { %v8877_v61 = vpop.eup %8876 }
 0xbd1   : > { %v10443_v37 = vand.u32 4294901760, %v8877_v61 }
 0xbd2   : > { %v8879_v5 = vpop.eup %8878 }
 0xbd3   : > { %v10448_v6 = vand.u32 4294901760, %v8879_v5  ;;  %v4659_v12 = vsub.f32 %v8877_v61, %v10443_v37  ;;  %v4613_v61 = vand.u32 4294901760, %v4612_v44 }
 0xbd4   : > { %v8881_v59 = vpop.eup %8880 }
 0xbd5   : > { %v10451_v20 = vand.u32 4294901760, %v8881_v59  ;;  %v4666_v26 = vsub.f32 %v8879_v5, %v10448_v6  ;;  %v4660_v34 = vand.u32 4294901760, %v4659_v12 }
 0xbd6   : > { %v8883_v9 = vpop.eup %8882 }
 0xbd7   : > { %8324 = vmatprep.subr.mxu0 %v10451_v20  ;;  %v10458_v54 = vand.u32 4294901760, %v8883_v9  ;;  %v4645_v23 = vsub.f32 %v8881_v59, %v10451_v20  ;;  %v4667_v41 = vand.u32 4294901760, %v4666_v26  ;;  %v4661_v46 = vsub.f32 %v4659_v12, %v4660_v34 }
 0xbd8   : > { %8325 = vmatpush3.msra.mxu0 %v10451_v20 }
 0xbd9   : > { %8326 = vmatprep.subr.mxu0 %v10458_v54  ;;  %v4646_v27 = vand.u32 4294901760, %v4645_v23  ;;  %v4652_v56 = vsub.f32 %v8883_v9, %v10458_v54  ;;  %v4668_v57 = vsub.f32 %v4666_v26, %v4667_v41  ;;  %v4662_v5 = vand.u32 4294901760, %v4661_v46  ;;  %v3804_v9 = vld [vmem:[#allocation17 + $0x58] sm:$0xff] }
 0xbda   : > { %8327 = vmatpush3.msra.mxu0 %v10458_v54 }
 0xbdb   : > { %8328 = vmatprep.subr.mxu0 %v10443_v37  ;;  %v4647_v32 = vsub.f32 %v4645_v23, %v4646_v27  ;;  %v4653_v36 = vand.u32 4294901760, %v4652_v56  ;;  %v4669_v59 = vand.u32 4294901760, %v4668_v57 }
 0xbdc   : > { %8329 = vmatpush3.msra.mxu0 %v10443_v37 }
 0xbdd   : > { %8330 = vmatprep.subr.mxu0 %v10448_v6  ;;  %v4648_v29 = vand.u32 4294901760, %v4647_v32  ;;  %v4654_v42 = vsub.f32 %v4652_v56, %v4653_v36 }
 0xbde   : > { %8331 = vmatpush3.msra.mxu0 %v10448_v6 }
 0xbdf   : > { %8338 = vmatprep.subr.mxu1 %v4648_v29  ;;  %8352 = vmatprep.subr.mxu0 %v4645_v23  ;;  %v4655_v39 = vand.u32 4294901760, %v4654_v42 }
 0xbe0   : > { %8333 = vmatmul.mubr.f32.vlgmr.msra.gmra.mxu0 %v4593_v40  ;;  %8339 = vmatpush3.msra.mxu1 %v4648_v29 }
 0xbe1   : > { %8353 = vmatpush3.msra.mxu0 %v4645_v23  ;;  %8340 = vmatprep.subr.mxu1 %v4655_v39  ;;  %v3802_v23 = vld [vmem:[#allocation17 + $0x48] sm:$0xff] }
 0xbe2   : > { %8354 = vmatprep.subr.mxu0 %v4652_v56  ;;  %8341 = vmatpush3.msra.mxu1 %v4655_v39 }
 0xbe3   : > { %8355 = vmatpush3.msra.mxu0 %v4652_v56  ;;  %8335 = vmatprep.mubr.f32.mxu0 %v4603_v52 }
 0xbe4   : > { %8342 = vmatprep.subr.mxu1 %v4662_v5  ;;  %8356 = vmatprep.subr.mxu0 %v4659_v12 }
 0xbe5   : > { %8336 = vmatmul.mubr.f32.gmra.mxu0 %v4613_v61  ;;  %8343 = vmatpush3.msra.mxu1 %v4662_v5 }
 0xbe6   : > { %8357 = vmatpush3.msra.mxu0 %v4659_v12  ;;  %8344 = vmatprep.subr.mxu1 %v4669_v59 }
 0xbe7   : > { %8358 = vmatprep.subr.mxu0 %v4666_v26  ;;  %8345 = vmatpush3.msra.mxu1 %v4669_v59 }
 0xbe8   : > { %8359 = vmatpush3.msra.mxu0 %v4666_v26  ;;  %8347 = vmatmul.mubr.f32.vlgmr.msra.gmra.mxu1 %v10432_v45 }
 0xbe9   : > { %8360 = vmatprep.mubr.f32.mxu0 %v10410_v60  ;;  %8366 = vmatprep.subr.mxu1 %v10451_v20  ;;  %v7411_v60 = vld [vmem:[%s9729_s12 + $0x10] sm:$0xff] }
 0xbea   : > { %8380 = vmatprep.subr.mxu0 %v4646_v27  ;;  %8361 = vmatmul.mubr.f32.vlgmr.msra.gmra.mxu0 %v10439_v51 }
 0xbeb   : > { %8367 = vmatpush3.msra.mxu1 %v10451_v20  ;;  %8381 = vmatpush3.msra.mxu0 %v4646_v27 }
 0xbec   : > { %8368 = vmatprep.subr.mxu1 %v10458_v54  ;;  %8382 = vmatprep.subr.mxu0 %v4653_v36 }
 0xbed   : > { %8349 = vmatprep.mubr.f32.mxu1 %v10436_v58  ;;  %8369 = vmatpush3.msra.mxu1 %v10458_v54 }
 0xbee   : > { %8383 = vmatpush3.msra.mxu0 %v4653_v36  ;;  %8350 = vmatmul.mubr.f32.gmra.mxu1 %v10441_v3 }
 0xbef   : > { %8370 = vmatprep.subr.mxu1 %v10443_v37  ;;  %8384 = vmatprep.subr.mxu0 %v4660_v34 }
 0xbf0   : > { %8363 = vmatprep.mubr.f32.mxu0 %v10446_v53  ;;  %8371 = vmatpush3.msra.mxu1 %v10443_v37 }
 0xbf1   : > { %8385 = vmatpush3.msra.mxu0 %v4660_v34  ;;  %8372 = vmatprep.subr.mxu1 %v10448_v6 }
 0xbf2   : > { %8364 = vmatmul.mubr.f32.gmra.mxu0 %v10454_v21  ;;  %8386 = vmatprep.subr.mxu0 %v4667_v41 }
 0xbf3   : > { %8373 = vmatpush3.msra.mxu1 %v10448_v6  ;;  %8374 = vmatprep.mubr.f32.mxu1 %v4581_v50 }
 0xbf4   : > { %8387 = vmatpush3.msra.mxu0 %v4667_v41  ;;  %8375 = vmatmul.mubr.f32.vlgmr.msra.gmra.mxu1 %v4591_v14 }
 0xbf5   : > { %8394 = vmatprep.subr.mxu1 %v10451_v20  ;;  %8388 = vmatprep.mubr.f32.mxu0 %v10407_v47 }
 0xbf6   : > { %8395 = vmatpush3.msra.mxu1 %v10451_v20  ;;  %8389 = vmatmul.mubr.f32.vlgmr.msra.gmra.mxu0 %v10432_v45 }
 0xbf7   : > { %8396 = vmatprep.subr.mxu1 %v10458_v54  ;;  %8377 = vmatprep.mubr.f32.mxu1 %v4601_v25  ;;  %v3801_v25 = vld [vmem:[#allocation17 + $0x40] sm:$0xff] }
 0xbf8   : > { %8397 = vmatpush3.msra.mxu1 %v10458_v54  ;;  %8391 = vmatprep.mubr.f32.mxu0 %v10436_v58 }
 0xbf9   : > { %8378 = vmatmul.mubr.f32.gmra.mxu1 %v4611_v31  ;;  %8398 = vmatprep.subr.mxu1 %v10443_v37 }
 0xbfa   : > { %8399 = vmatpush3.msra.mxu1 %v10443_v37  ;;  %8392 = vmatmul.mubr.f32.gmra.mxu0 %v10441_v3 }
 0xbfb   : > { %8400 = vmatprep.subr.mxu1 %v10448_v6  ;;  %8402 = vmatprep.mubr.f32.mxu1 %v10407_v47  ;;  %v5175_v47 = vpack.c.bf16 %v7411_v60, %v7411_v60 }
 0xbfc   : > { %8401 = vmatpush3.msra.mxu1 %v10448_v6  ;;  %8408 = vmatprep.subr.bf16.mxu0 %v11131_v55 }
 0xbfd   : > { %8403 = vmatmul.mubr.f32.vlgmr.msra.gmra.mxu1 %v10432_v45  ;;  %8412 = vmatprep.mubr.msk.bf16.mxu0 %vm9398_vm1, %v11131_v55  ;;  %v5180_v50 = vsel %vm809_vm0, %v5175_v47, 0 }
 0xbfe   : > { %8405 = vmatprep.mubr.f32.mxu1 %v10436_v58  ;;  %8416 = vmatprep.subr.bf16.mxu1 %v11131_v55 }
 0xbff   : > { %8417 = vmatpush3.bf16.xpose.msra.mxu1 %v5180_v50 }
 0xc01   : > { %8406 = vmatmul.mubr.f32.gmra.mxu1 %v10441_v3 }
 0xc02   : > { %8418 = vmatprep.mubr.msk.bf16.mxu1 %vm9398_vm1, %v11131_v55 }
 0xca0   : > { %v8334_v51 = vpop.f32.mrf.mxu0 }
 0xca1   : > { %v4596_v56 = vadd.f32 %v8334_v51, %v3802_v23 }
 0xca2   : > { %v4585_v37 = vpop.f32.mrf.mxu0 }
 0xca3   : > { %v4586_v31 = vadd.f32 %v4585_v37, %v3801_v25 }
 0xca5   : > { %v8337_v45 = vpop.f32.mrf.mxu0 }
 0xca6   : > { %v4616_v3 = vadd.f32 %v8337_v45, %v3804_v9 }
 0xca7   : > { %v4605_v53 = vpop.f32.mrf.mxu0 }
 0xca8   : > { %v8348_v6 = vpop.f32.mrf.mxu1  ;;  %v4606_v34 = vadd.f32 %v4605_v53, %v3803_v19 }
 0xca9   : > { %v4713_v44 = vadd.f32 %v8348_v6, %v4596_v56  ;;  %v7410_v56 = vld [vmem:[%s9718_s4 + $0x10] sm:$0xff] }
 0xcaa   : > { %v4706_v14 = vpop.f32.mrf.mxu1  ;;  %v8362_v20 = vpop.f32.mrf.mxu0 }
 0xcab   : > { %v4707_v40 = vadd.f32 %v4706_v14, %v4586_v31  ;;  %v4812_v60 = vadd.f32 %v8362_v20, %v4713_v44 }
 0xcac   : > { %v4804_v21 = vpop.f32.mrf.mxu0 }
 0xcad   : > { %v4805_v57 = vadd.f32 %v4804_v21, %v4707_v40 }
 0xcae   : > { %v8351_v58 = vpop.f32.mrf.mxu1 }
 0xcaf   : > { %v4725_v32 = vadd.f32 %v8351_v58, %v4616_v3 }
 0xcb0   : > { %v4718_v12 = vpop.f32.mrf.mxu1 }
 0xcb1   : > { %v4719_v41 = vadd.f32 %v4718_v12, %v4606_v34  ;;  %v5130_v34 = vpack.c.bf16 %v7410_v56, %v7410_v56 }
 0xcb2   : > { %v8365_v54 = vpop.f32.mrf.mxu0 }
 0xcb3   : > { %v4826_v46 = vadd.f32 %v8365_v54, %v4725_v32 }
 0xcb4   : > { %v4818_v26 = vpop.f32.mrf.mxu0  ;;  %v8376_v27 = vpop.f32.mrf.mxu1 }
 0xcb5   : > { %v4819_v61 = vadd.f32 %v4818_v26, %v4719_v41  ;;  %v4911_v45 = vadd.f32 %v8376_v27, %v4812_v60 }
 0xcb6   : > { %v4902_v36 = vpop.f32.mrf.mxu1  ;;  %v8390_v38 = vpop.f32.mrf.mxu0 }
 0xcb7   : > { %v4903_v47 = vadd.f32 %v4902_v36, %v4805_v57  ;;  %v5016_v3 = vadd.f32 %v8390_v38, %v4911_v45 }
 0xcb8   : > { %v5009_v29 = vpop.f32.mrf.mxu0 }
 0xcb9   : > { %v8379_v42 = vpop.f32.mrf.mxu1  ;;  %v5010_v58 = vadd.f32 %v5009_v29, %v4903_v47 }
 0xcba   : > { %v8393_v52 = vpop.f32.mrf.mxu0  ;;  %v4927_v5 = vadd.f32 %v8379_v42, %v4826_v46  ;;  %v10549_v42 = vld [vmem:[#allocation10] sm:$0xff] }
 0xcbb   : > { %v4918_v39 = vpop.f32.mrf.mxu1 }
 0xcbc   : > { %v4919_v50 = vadd.f32 %v4918_v39, %v4819_v61  ;;  %v5021_v51 = vpop.f32.mrf.mxu0  ;;  %v5028_v53 = vadd.f32 %v8393_v52, %v4927_v5 }
 0xcbd   : > { %v8404_v59 = vpop.f32.mrf.mxu1 }
 0xcbe   : > { %v5022_v9 = vadd.f32 %v5021_v51, %v4919_v50  ;;  %v10534_v23 = vadd.f32 %v8404_v59, %v5016_v3  ;;  %v7412_v50 = vld [vmem:[%s9737_s16 + $0x10] sm:$0xff]  ;;  %v7423_v51 = vld [vmem:[%s9740_s7 + $0x78] sm:$0xff]  ;;  %v5283_v3 = vld [vmem:[#allocation11 + $0x60] sm:$0xff] }
 0xcbf   : > { %v5102_v37 = vpop.f32.mrf.mxu1  ;;  %v5235_v45 = vpack.c.bf16 %v7412_v50, %v7412_v50 }
 0xcc0   : > { %v10530_v54 = vadd.f32 %v5102_v37, %v5010_v58  ;;  %v5125_v27 = vmul.f32 0.17677669, %v10534_v23  ;;  %v7422_v37 = vld [vmem:[%s9740_s7 + $0x70] sm:$0xff] }
 0xcc1   : > { %v8407_v14 = vpop.f32.mrf.mxu1  ;;  %v5240_v58 = vsel %vm2234_vm3, %v5235_v45, 0 }
 0xcc2   : > { %v10528_v12 = vadd.f32 %v8407_v14, %v5028_v53  ;;  %v5124_v19 = vmul.f32 0.17677669, %v10530_v54  ;;  %v10561_v53 = vand.u32 4294901760, %v7423_v51  ;;  %v7421_v14 = vld [vmem:[%s9740_s7 + $0x68] sm:$0xff] }
 0xcc3   : > { %v5114_v6 = vpop.f32.mrf.mxu1 }
 0xcc4   : > { %v10532_v21 = vadd.f32 %v5114_v6, %v5022_v9  ;;  %v5127_v20 = vmul.f32 0.17677669, %v10528_v12  ;;  %v5128_v31 = vpack.c.bf16 %v5125_v27, %v5124_v19  ;;  %8428 = vmatprep.subr.mxu1 %v10561_v53  ;;  %v10566_v9 = vand.u32 4294901760, %v7422_v37 }
 0xcc5   : > { %v10570_v6 = vand.u32 4294901760, %v7421_v14  ;;  %v5465_v27 = vsub.f32 %v7423_v51, %v10561_v53 }
 0xcc6   : > { %11201 = vst [vmem:[#allocation48_spill] sm:$0xff] %v10532_v21  ;;  %v5126_v25 = vmul.f32 0.17677669, %v10532_v21 }
 0xcc7   : > { %v5479_v50 = vsub.f32 %v7421_v14, %v10570_v6 }
 0xcc8   : > { %v5129_v26 = vpack.c.bf16 %v5127_v20, %v5126_v25  ;;  %v5319_v20 = vsel %vm809_vm0, %v5283_v3, 0  ;;  %v5284_v25 = vld [vmem:[#allocation11 + $0x68] sm:$0xff] }
 0xcc9   : > { %v10576_v19 = vand.u32 4294901760, %v5319_v20  ;;  %v5480_v14 = vand.u32 4294901760, %v5479_v50 }
 0xcca   : > { %8409 = vmatpush3.bf16.msra.mxu0 %v5129_v26  ;;  %v5322_v26 = vsel %vm809_vm0, %v5284_v25, 0 }
 0xccb   : > { %8410 = vmatprep.subr.bf16.mxu0 %v11131_v55  ;;  %v10580_v56 = vand.u32 4294901760, %v5322_v26 }
 0xcce   : > { %8411 = vmatpush3.bf16.msra.mxu0 %v5128_v31  ;;  %v10583_v31 = vsub.f32 %v5319_v20, %v10576_v19 }
 0xccf   : > { %8422 = vmatprep.subr.bf16.mxu0 %v11131_v55 }
 0xcd1   : > { %8413 = vmatmul.mubr.msk.bf16.vlgmr.msra.gmra.mxu0 %vm809_vm0, %v5130_v34  ;;  %v5285_v34 = vld [vmem:[#allocation11 + $0x70] sm:$0xff] }
 0xcd2   : > { %8424 = vmatprep.mubr.msk.bf16.mxu0 %vm9398_vm1, %v11131_v55  ;;  %8423 = vmatpush3.bf16.msra.mxu0 %v5240_v58 }
 0xd91   : > { %v5168_v32 = vpop.f32.mrf.mxu0 }
 0xd92   : > { %v5174_v36 = vpack.c.bf16 %v5168_v32, %v5168_v32  ;;  %v5466_v32 = vand.u32 4294901760, %v5465_v27 }
 0xd93   : > { %v8414_v38 = vpop.f32.mrf.mxu0 }
 0xd94   : > { %8419 = vmatmul.mubr.msk.bf16.vlgmr.msra.gmra.mxu1 %vm809_vm0, %v5174_v36  ;;  %v10586_v36 = vsub.f32 %v5322_v26, %v10580_v56  ;;  %v10589_v38 = vsub.f32 %v7422_v37, %v10566_v9 }
 0xd95   : > { %v5171_v40 = vpop.f32.mrf.mxu0  ;;  %8429 = vmatpush3.msra.mxu1 %v10561_v53 }
 0xd96   : > { %8430 = vmatprep.subr.mxu1 %v10566_v9  ;;  %v5325_v40 = vsel %vm809_vm0, %v5285_v34, 0 }
 0xd97   : > { %v8415_v41 = vpop.f32.mrf.mxu0  ;;  %8431 = vmatpush3.msra.mxu1 %v10566_v9 }
 0xd98   : > { %8432 = vmatprep.subr.mxu1 %v10570_v6  ;;  %v5286_v41 = vld [vmem:[#allocation11 + $0x78] sm:$0xff] }
 0xd99   : > { %8433 = vmatpush3.msra.mxu1 %v10570_v6 }
 0xe54   : > { %v10547_v29 = vpop.f32.mrf.mxu1 }
 0xe55   : > { %11202 = vst [vmem:[#allocation49_spill] sm:$0xff] %v10547_v29  ;;  %v5222_v44 = vadd.f32 %v10549_v42, %v10547_v29 }
 0xe56   : > { %v8420_v46 = vpop.f32.mrf.mxu1 }
 0xe57   : > { %v5223_v39 = vsel %vm2217_vm2, %v5222_v44, -inf  ;;  %v5401_v46 = vand.u32 4294901760, %v10583_v31 }
 0xe58   : > { %5224 = vmax.xlane.f32.xlu0 %v5223_v39  ;;  %v5219_v52 = vpop.f32.mrf.mxu1  ;;  %v10594_v39 = vand.u32 4294901760, %v5325_v40 }
 0xe59   : > { %v5328_v52 = vsel %vm809_vm0, %v5286_v41, 0 }
 0xe5a   : > { %v8421_v57 = vpop.f32.mrf.mxu1  ;;  %v10606_v51 = vsub.f32 %v5325_v40, %v10594_v39  ;;  %v10608_v37 = vand.u32 4294901760, %v5328_v52 }
 0xe5c   : > { %v5421_v26 = vand.u32 4294901760, %v10606_v51  ;;  %v10619_v34 = vsub.f32 %v5328_v52, %v10608_v37 }
 0xe5e   : > { %v5422_v55 = vsub.f32 %v10606_v51, %v5421_v26 }
 0xee1   : > { %v5225_v61 = vpop.xlane.xlu0 %5224 }
 0xee2   : > { %v5226_v5 = vsub.f32 %v5222_v44, %v5225_v61  ;;  %v7420_v44 = vld [vmem:[%s9740_s7 + $0x60] sm:$0xff]  ;;  %v5467_v61 = vsub.f32 %v5465_v27, %v5466_v32  ;;  %s9405_s7 = smov [#allocation20]  }
 0xee3   : > { %v10597_v57 = vand.u32 4294901760, %v7420_v44 }
 0xee4   : > { %v5227_v59 = vmul.f32 1.442695, %v5226_v5  ;;  %v11133_v5 = vand.u32 4294901760, %v10586_v36  ;;  %v5468_v45 = vand.u32 4294901760, %v5467_v61  ;;  %v5481_v61 = vsub.f32 %v5479_v50, %v5480_v14 }
 0xee5   : > { %8434 = vmatprep.subr.mxu1 %v10597_v57  ;;  %v5486_v20 = vsub.f32 %v7420_v44, %v10597_v57  ;;  %v5431_v44 = vand.u32 4294901760, %v10619_v34 }
 0xee6   : > { %8884 = vpow2.f32 %v5227_v59  ;;  %v5473_v59 = vand.u32 4294901760, %v10589_v38  ;;  %v5412_v58 = vsub.f32 %v10586_v36, %v11133_v5  ;;  %8435 = vmatpush3.msra.mxu1 %v10597_v57  ;;  %8442 = vmatprep.subr.mxu0 %v5468_v45  ;;  %v5423_v5 = vand.u32 4294901760, %v5422_v55 }
 0xee7   : > { %8456 = vmatprep.subr.mxu1 %v5465_v27  ;;  %v5487_v41 = vand.u32 4294901760, %v5486_v20  ;;  %v5432_v52 = vsub.f32 %v10619_v34, %v5431_v44 }
 0xee8   : > { %v5474_v3 = vsub.f32 %v10589_v38, %v5473_v59  ;;  %v5413_v40 = vand.u32 4294901760, %v5412_v58 }
 0xee9   : > { %v5433_v58 = vand.u32 4294901760, %v5432_v52 }
 0xef3   : > { %v10554_v60 = vpop.eup %8884 }
 0xef4   : > { %v5229_v47 = vsel %vm2217_vm2, %v10554_v60, 0.0 }
 0xef5   : > { %5230 = vadd.xlane.f32.xlu1 %v5229_v47  ;;  %v5402_v47 = vsub.f32 %v10583_v31, %v5401_v46 }
 0xef7   : > { %v5403_v25 = vand.u32 4294901760, %v5402_v47  ;;  %v5488_v47 = vsub.f32 %v5486_v20, %v5487_v41 }
 0xef9   : > { %8436 = vmatprep.mubr.f32.mxu1 %v5403_v25 }
 0xefa   : > { %8437 = vmatmul.mubr.f32.vlgmr.msra.gmra.mxu1 %v5413_v40 }
 0xefb   : > { %8457 = vmatpush3.msra.mxu1 %v5465_v27  ;;  %8439 = vmatprep.mubr.f32.mxu1 %v5423_v5  ;;  %v5475_v5 = vand.u32 4294901760, %v5474_v3 }
 0xefc   : > { %8458 = vmatprep.subr.mxu1 %v10589_v38 }
 0xefd   : > { %8459 = vmatpush3.msra.mxu1 %v10589_v38 }
 0xefe   : > { %8460 = vmatprep.subr.mxu1 %v5479_v50  ;;  %8440 = vmatmul.mubr.f32.gmra.mxu1 %v5433_v58 }
 0xeff   : > { %8461 = vmatpush3.msra.mxu1 %v5479_v50  ;;  %8464 = vmatprep.mubr.f32.mxu1 %v10583_v31  ;;  %v5489_v50 = vand.u32 4294901760, %v5488_v47 }
 0xf00   : > { %8462 = vmatprep.subr.mxu1 %v5486_v20 }
 0xf01   : > { %8463 = vmatpush3.msra.mxu1 %v5486_v20 }
 0xf02   : > { %8465 = vmatmul.mubr.f32.vlgmr.msra.gmra.mxu1 %v10586_v36  ;;  %8484 = vmatprep.subr.mxu1 %v5466_v32 }
 0xf03   : > { %8485 = vmatpush3.msra.mxu1 %v5466_v32  ;;  %8467 = vmatprep.mubr.f32.mxu1 %v10606_v51 }
 0xf04   : > { %8486 = vmatprep.subr.mxu1 %v5473_v59 }
 0xf05   : > { %8487 = vmatpush3.msra.mxu1 %v5473_v59  ;;  %v5482_v59 = vand.u32 4294901760, %v5481_v61  ;;  %v5288_v61 = vld [vmem:[#allocation13 + $0x60] sm:$0xff] }
 0xf06   : > { %8468 = vmatmul.mubr.f32.gmra.mxu1 %v10619_v34  ;;  %8488 = vmatprep.subr.mxu1 %v5480_v14 }
 0xf07   : > { %8489 = vmatpush3.msra.mxu1 %v5480_v14  ;;  %8492 = vmatprep.mubr.f32.mxu1 %v10576_v19  ;;  %v5289_v14 = vld [vmem:[#allocation13 + $0x68] sm:$0xff] }
 0xf08   : > { %8490 = vmatprep.subr.mxu1 %v5487_v41 }
 0xf09   : > { %8491 = vmatpush3.msra.mxu1 %v5487_v41 }
 0xf0a   : > { %8493 = vmatmul.mubr.f32.vlgmr.msra.gmra.mxu1 %v10580_v56 }
 0xf0b   : > { %8495 = vmatprep.mubr.f32.mxu1 %v10594_v39 }
 0xf0e   : > { %8496 = vmatmul.mubr.f32.gmra.mxu1 %v10608_v37 }
 0xf7e   : > { %v5231_v55 = vpop.xlane.xlu1 %5230 }
 0xf7f   : > { %8886 = vrcp.f32 %v5231_v55 }
 0xf8c   : > { %v8887_v27 = vpop.eup %8886 }
 0xf8d   : > { %v5233_v32 = vmul.f32 %v8887_v27, %v10554_v60  ;;  %v11203_v60 = vand.u32 4294901760, %v10586_v36 }
 0xf8f   : > { %v5234_v38 = vpack.c.bf16 %v5233_v32, %v5233_v32 }
 0xf91   : > { %8425 = vmatmul.mubr.msk.bf16.vlgmr.msra.gmra.mxu0 %vm2217_vm2, %v5234_v38  ;;  %v5290_v38 = vld [vmem:[#allocation13 + $0x70] sm:$0xff] }
 0xf92   : > { %8443 = vmatpush3.msra.mxu0 %v5468_v45  ;;  %8450 = vmatprep.mubr.f32.mxu0 %v10576_v19 }
 0xf93   : > { %8444 = vmatprep.subr.mxu0 %v5475_v5 }
 0xf94   : > { %8445 = vmatpush3.msra.mxu0 %v5475_v5 }
 0xf95   : > { %8446 = vmatprep.subr.mxu0 %v5482_v59 }
 0xf96   : > { %8447 = vmatpush3.msra.mxu0 %v5482_v59 }
 0xf97   : > { %8448 = vmatprep.subr.mxu0 %v5489_v50 }
 0xf98   : > { %8449 = vmatpush3.msra.mxu0 %v5489_v50 }
 0xf99   : > { %8451 = vmatmul.mubr.f32.vlgmr.msra.gmra.mxu0 %v10580_v56  ;;  %8470 = vmatprep.subr.mxu0 %v10561_v53 }
 0xf9a   : > { %8471 = vmatpush3.msra.mxu0 %v10561_v53  ;;  %8453 = vmatprep.mubr.f32.mxu0 %v10594_v39 }
 0xf9b   : > { %8472 = vmatprep.subr.mxu0 %v10566_v9 }
 0xf9c   : > { %8473 = vmatpush3.msra.mxu0 %v10566_v9 }
 0xf9d   : > { %8454 = vmatmul.mubr.f32.gmra.mxu0 %v10608_v37  ;;  %8474 = vmatprep.subr.mxu0 %v10570_v6 }
 0xf9e   : > { %8475 = vmatpush3.msra.mxu0 %v10570_v6  ;;  %8478 = vmatprep.mubr.f32.mxu0 %v5401_v46 }
 0xf9f   : > { %8476 = vmatprep.subr.mxu0 %v10597_v57 }
 0xfa0   : > { %8477 = vmatpush3.msra.mxu0 %v10597_v57 }
 0xfa1   : > { %8479 = vmatmul.mubr.f32.vlgmr.msra.gmra.mxu0 %v11203_v60  ;;  %8498 = vmatprep.subr.mxu0 %v10561_v53 }
 0xfa2   : > { %8499 = vmatpush3.msra.mxu0 %v10561_v53  ;;  %8481 = vmatprep.mubr.f32.mxu0 %v5421_v26  ;;  %v5298_v53 = vld [vmem:[#allocation16 + $0x60] sm:$0xff] }
 0xfa3   : > { %8500 = vmatprep.subr.mxu0 %v10566_v9 }
 0xfa4   : > { %8501 = vmatpush3.msra.mxu0 %v10566_v9  ;;  %v6001_v9 = vsel %vm809_vm0, %v5298_v53, 0 }
 0xfa5   : > { %8482 = vmatmul.mubr.f32.gmra.mxu0 %v5431_v44  ;;  %8502 = vmatprep.subr.mxu0 %v10570_v6  ;;  %v10673_v31 = vand.u32 4294901760, %v6001_v9  ;;  %v5291_v44 = vld [vmem:[#allocation13 + $0x78] sm:$0xff] }
 0xfa6   : > { %8503 = vmatpush3.msra.mxu0 %v10570_v6  ;;  %8506 = vmatprep.mubr.f32.mxu0 %v10576_v19 }
 0xfa7   : > { %8504 = vmatprep.subr.mxu0 %v10597_v57  ;;  %v10676_v36 = vsub.f32 %v6001_v9, %v10673_v31 }
 0xfa8   : > { %8505 = vmatpush3.msra.mxu0 %v10597_v57 }
 0xfa9   : > { %8507 = vmatmul.mubr.f32.vlgmr.msra.gmra.mxu0 %v10580_v56  ;;  %v11134_v6 = vand.u32 4294901760, %v10676_v36 }
 0xfaa   : > { %8509 = vmatprep.mubr.f32.mxu0 %v10594_v39 }
 0xfab   : > { %v6084_v19 = vsub.f32 %v10676_v36, %v11134_v6 }
 0xfad   : > { %8510 = vmatmul.mubr.f32.gmra.mxu0 %v10608_v37  ;;  %v6085_v46 = vand.u32 4294901760, %v6084_v19 }
 0xfae   : > { %8534 = vmatprep.mubr.f32.mxu0 %v10673_v31 }
 0xfaf   : > { %8520 = vmatprep.mubr.f32.mxu1 %v6085_v46 }
 0xfba   : > { %v8438_v56 = vpop.f32.mrf.mxu1 }
 0xfbb   : > { %v5416_v41 = vadd.f32 %v8438_v56, %v5289_v14 }
 0xfbc   : > { %v5405_v39 = vpop.f32.mrf.mxu1 }
 0xfbd   : > { %v5406_v55 = vadd.f32 %v5405_v39, %v5288_v61 }
 0xfbe   : > { %v8441_v57 = vpop.f32.mrf.mxu1 }
 0xfbf   : > { %v5436_v27 = vadd.f32 %v8441_v57, %v5291_v44 }
 0xfc0   : > { %v5425_v51 = vpop.f32.mrf.mxu1 }
 0xfc1   : > { %v5426_v53 = vadd.f32 %v5425_v51, %v5290_v38 }
 0xfc2   : > { %v8466_v37 = vpop.f32.mrf.mxu1 }
 0xfc4   : > { %v5624_v20 = vpop.f32.mrf.mxu1 }
 0xfc6   : > { %v8469_v34 = vpop.f32.mrf.mxu1 }
 0xfc8   : > { %v5638_v52 = vpop.f32.mrf.mxu1 }
 0xfca   : > { %v8494_v59 = vpop.f32.mrf.mxu1 }
0x1051   : > { %v10683_v45 = vpop.f32.mrf.mxu0 }
0x1053   : > { %v8426_v3 = vpop.f32.mrf.mxu0 }
0x1054   : > { %v5829_v3 = vpop.f32.mrf.mxu1 }
0x1055   : > { %v5279_v25 = vpop.f32.mrf.mxu0 }
0x1056   : > { %v8497_v39 = vpop.f32.mrf.mxu1 }
0x1057   : > { %v8427_v26 = vpop.f32.mrf.mxu0 }
0x1058   : > { %v5841_v51 = vpop.f32.mrf.mxu1 }
0x1059   : > { %v8452_v40 = vpop.f32.mrf.mxu0 }
0x105a   : > { %v5533_v32 = vadd.f32 %v8452_v40, %v5416_v41 }
0x105b   : > { %v5526_v47 = vpop.f32.mrf.mxu0 }
0x105c   : > { %v5527_v50 = vadd.f32 %v5526_v47, %v5406_v55  ;;  %v5632_v9 = vadd.f32 %v8466_v37, %v5533_v32 }
0x105d   : > { %v8455_v58 = vpop.f32.mrf.mxu0 }
0x105e   : > { %v5545_v19 = vadd.f32 %v8455_v58, %v5436_v27  ;;  %v5625_v25 = vadd.f32 %v5624_v20, %v5527_v50 }
0x105f   : > { %v5538_v5 = vpop.f32.mrf.mxu0 }
0x1060   : > { %v5539_v56 = vadd.f32 %v5538_v5, %v5426_v53  ;;  %v5646_v6 = vadd.f32 %v8469_v34, %v5545_v19 }
0x1061   : > { %v8480_v60 = vpop.f32.mrf.mxu0 }
0x1062   : > { %v5731_v14 = vadd.f32 %v8480_v60, %v5632_v9  ;;  %v5639_v57 = vadd.f32 %v5638_v52, %v5539_v56 }
0x1063   : > { %v5722_v46 = vpop.f32.mrf.mxu0 }
0x1064   : > { %v5723_v30 = vadd.f32 %v5722_v46, %v5625_v25  ;;  %v5836_v40 = vadd.f32 %v8494_v59, %v5731_v14 }
0x1065   : > { %v8483_v26 = vpop.f32.mrf.mxu0 }
0x1066   : > { %v5747_v41 = vadd.f32 %v8483_v26, %v5646_v6  ;;  %v5830_v44 = vadd.f32 %v5829_v3, %v5723_v30 }
0x1067   : > { %v5738_v16 = vpop.f32.mrf.mxu0 }
0x1068   : > { %v5739_v47 = vadd.f32 %v5738_v16, %v5639_v57  ;;  %v5848_v58 = vadd.f32 %v8497_v39, %v5747_v41 }
0x1069   : > { %v8508_v61 = vpop.f32.mrf.mxu0 }
0x106a   : > { %v5929_v55 = vadd.f32 %v8508_v61, %v5836_v40  ;;  %v5842_v38 = vadd.f32 %v5841_v51, %v5739_v47 }
0x106b   : > { %v5922_v37 = vpop.f32.mrf.mxu0 }
0x106c   : > { %v7428_v27 = vmul.f32 -1.442695, %v5929_v55  ;;  %v5923_v32 = vadd.f32 %v5922_v37, %v5830_v44 }
0x106d   : > { %v8511_v20 = vpop.f32.mrf.mxu0 }
0x106e   : > { %8888 = vpow2.f32 %v7428_v27  ;;  %v7427_v5 = vmul.f32 -1.442695, %v5923_v32  ;;  %v5941_v34 = vadd.f32 %v8511_v20, %v5848_v58  ;;  %v5294_v20 = vld [vmem:[#allocation14 + $0x68] sm:$0xff] }
0x106f   : > { %v5934_v50 = vpop.f32.mrf.mxu0 }
0x1070   : > { %8890 = vpow2.f32 %v7427_v5  ;;  %v7430_v60 = vmul.f32 -1.442695, %v5941_v34  ;;  %v5935_v52 = vadd.f32 %v5934_v50, %v5842_v38  ;;  %v5293_v50 = vld [vmem:[#allocation14 + $0x60] sm:$0xff] }
0x1072   : > { %8892 = vpow2.f32 %v7430_v60  ;;  %v7429_v6 = vmul.f32 -1.442695, %v5935_v52 }
0x1074   : > { %8894 = vpow2.f32 %v7429_v6 }
0x107b   : > { %v8889_v30 = vpop.eup %8888 }
0x107c   : > { %v5957_v16 = vadd.f32 1.0, %v8889_v30  ;;  %v5296_v30 = vld [vmem:[#allocation14 + $0x78] sm:$0xff] }
0x107d   : > { %v8891_v59 = vpop.eup %8890 }
0x107e   : > { %8896 = vrcp.f32 %v5957_v16  ;;  %v5956_v53 = vadd.f32 1.0, %v8891_v59 }
0x107f   : > { %v8893_v9 = vpop.eup %8892 }
0x1080   : > { %8898 = vrcp.f32 %v5956_v53  ;;  %v5959_v19 = vadd.f32 1.0, %v8893_v9 }
0x1081   : > { %v8895_v46 = vpop.eup %8894 }
0x1082   : > { %8900 = vrcp.f32 %v5959_v19  ;;  %v5958_v3 = vadd.f32 1.0, %v8895_v46 }
0x1084   : > { %8902 = vrcp.f32 %v5958_v3 }
0x108b   : > { %v8897_v25 = vpop.eup %8896 }
0x108c   : > { %v5969_v56 = vmul.f32 %v8897_v25, %v5929_v55 }
0x108d   : > { %v8899_v14 = vpop.eup %8898 }
0x108e   : > { %v5973_v26 = vmul.f32 %v5969_v56, %v5929_v55  ;;  %v5968_v39 = vmul.f32 %v8899_v14, %v5923_v32  ;;  %v5299_v14 = vld [vmem:[#allocation16 + $0x68] sm:$0xff] }
0x108f   : > { %v8901_v57 = vpop.eup %8900 }
0x1090   : > { %v10685_v40 = vadd.f32 1e-09, %v5973_v26  ;;  %v5972_v41 = vmul.f32 %v5968_v39, %v5923_v32  ;;  %v5971_v61 = vmul.f32 %v8901_v57, %v5941_v34  ;;  %v6004_v39 = vsel %vm809_vm0, %v5299_v14, 0  ;;  %v5300_v57 = vld [vmem:[#allocation16 + $0x70] sm:$0xff] }
0x1091   : > { %v8903_v44 = vpop.eup %8902 }
0x1092   : > { %8904 = vlog2.f32 %v10685_v40  ;;  %v10688_v47 = vadd.f32 1e-09, %v5972_v41  ;;  %v5975_v51 = vmul.f32 %v5971_v61, %v5941_v34  ;;  %v5970_v37 = vmul.f32 %v8903_v44, %v5935_v52  ;;  %v5301_v41 = vld [vmem:[#allocation16 + $0x78] sm:$0xff] }
0x1093   : > { %v10698_v61 = vand.u32 4294901760, %v6004_v39  ;;  %v6007_v44 = vsel %vm809_vm0, %v5300_v57, 0 }
0x1094   : > { %8906 = vlog2.f32 %v10688_v47  ;;  %v10691_v58 = vadd.f32 1e-09, %v5975_v51  ;;  %v5974_v27 = vmul.f32 %v5970_v37, %v5935_v52  ;;  %v5295_v52 = vld [vmem:[#allocation14 + $0x70] sm:$0xff]  ;;  %v6010_v51 = vsel %vm809_vm0, %v5301_v41, 0 }
0x1095   : > { %v10702_v37 = vand.u32 4294901760, %v6007_v44 }
0x1096   : > { %8908 = vlog2.f32 %v10691_v58  ;;  %v10694_v55 = vadd.f32 1e-09, %v5974_v27 }
0x1098   : > { %8910 = vlog2.f32 %v10694_v55 }
0x109f   : > { %v8905_v32 = vpop.eup %8904 }
0x10a0   : > { %v5983_v38 = vmul.f32 0.6931472, %v8905_v32  ;;  %v10705_v32 = vsub.f32 %v6004_v39, %v10698_v61 }
0x10a1   : > { %v8907_v5 = vpop.eup %8906 }
0x10a2   : > { %v5989_v60 = vmul.f32 %v5983_v38, %v5294_v20  ;;  %v5981_v6 = vmul.f32 0.6931472, %v8907_v5  ;;  %v10707_v20 = vand.u32 4294901760, %v6010_v51 }
0x10a3   : > { %v8909_v34 = vpop.eup %8908 }
0x10a4   : > { %v5994_v16 = vmul.f32 1.442695, %v5989_v60  ;;  %v5988_v59 = vmul.f32 %v5981_v6, %v5293_v50  ;;  %v5987_v53 = vmul.f32 0.6931472, %v8909_v34  ;;  %v10712_v50 = vsub.f32 %v6007_v44, %v10702_v37 }
0x10a5   : > { %v8911_v9 = vpop.eup %8910  ;;  %v11137_v34 = vand.u32 4294901760, %v10705_v32 }
0x10a6   : > { %8912 = vpow2.f32 %v5994_v16  ;;  %v5992_v19 = vmul.f32 1.442695, %v5988_v59  ;;  %v5991_v46 = vmul.f32 %v5987_v53, %v5296_v30  ;;  %v5985_v3 = vmul.f32 0.6931472, %v8911_v9 }
0x10a7   : > { %v10720_v16 = vsub.f32 %v6010_v51, %v10707_v20 }
0x10a8   : > { %8914 = vpow2.f32 %v5992_v19  ;;  %v5998_v25 = vmul.f32 1.442695, %v5991_v46  ;;  %v5990_v56 = vmul.f32 %v5985_v3, %v5295_v52  ;;  %v11139_v19 = vand.u32 4294901760, %v10712_v50 }
0x10a9   : > { %v6094_v46 = vsub.f32 %v10705_v32, %v11137_v34  ;;  %v11140_v14 = vand.u32 4294901760, %v10720_v16 }
0x10aa   : > { %8916 = vpow2.f32 %v5998_v25  ;;  %v5996_v26 = vmul.f32 1.442695, %v5990_v56  ;;  %v6104_v41 = vsub.f32 %v10712_v50, %v11139_v19 }
0x10ab   : > { %v6095_v44 = vand.u32 4294901760, %v6094_v46 }
0x10ac   : > { %8918 = vpow2.f32 %v5996_v26  ;;  %v6105_v15 = vand.u32 4294901760, %v6104_v41  ;;  %v5305_v41 = vld [vmem:[#allocation17 + $0x70] sm:$0xff] }
0x10b3   : > { %v8913_v27 = vpop.eup %8912 }
0x10b4   : > { %v10709_v5 = vand.u32 4294901760, %v8913_v27 }
0x10b5   : > { %v8915_v38 = vpop.eup %8914 }
0x10b6   : > { %v10714_v6 = vand.u32 4294901760, %v8915_v38  ;;  %v6161_v53 = vsub.f32 %v8913_v27, %v10709_v5 }
0x10b7   : > { %v8917_v60 = vpop.eup %8916 }
0x10b8   : > { %v10717_v30 = vand.u32 4294901760, %v8917_v60  ;;  %v6168_v3 = vsub.f32 %v8915_v38, %v10714_v6  ;;  %v6162_v26 = vand.u32 4294901760, %v6161_v53 }
0x10b9   : > { %v8919_v59 = vpop.eup %8918 }
0x10ba   : > { %8512 = vmatprep.subr.mxu1 %v10717_v30  ;;  %v10724_v9 = vand.u32 4294901760, %v8919_v59  ;;  %v6147_v52 = vsub.f32 %v8917_v60, %v10717_v30  ;;  %v6169_v51 = vand.u32 4294901760, %v6168_v3  ;;  %v6114_v60 = vsub.f32 %v10720_v16, %v11140_v14 }
0x10bb   : > { %8513 = vmatpush3.msra.mxu1 %v10717_v30 }
0x10bc   : > { %8514 = vmatprep.subr.mxu1 %v10724_v9  ;;  %v6148_v25 = vand.u32 4294901760, %v6147_v52  ;;  %v6154_v56 = vsub.f32 %v8919_v59, %v10724_v9  ;;  %v6163_v59 = vsub.f32 %v6161_v53, %v6162_v26  ;;  %v6170_v19 = vsub.f32 %v6168_v3, %v6169_v51 }
0x10bd   : > { %8515 = vmatpush3.msra.mxu1 %v10724_v9  ;;  %v6115_v46 = vand.u32 4294901760, %v6114_v60 }
0x10be   : > { %8516 = vmatprep.subr.mxu1 %v10709_v5  ;;  %v6149_v39 = vsub.f32 %v6147_v52, %v6148_v25  ;;  %v6155_v57 = vand.u32 4294901760, %v6154_v56  ;;  %v6171_v14 = vand.u32 4294901760, %v6170_v19 }
0x10bf   : > { %8517 = vmatpush3.msra.mxu1 %v10709_v5 }
0x10c0   : > { %8518 = vmatprep.subr.mxu1 %v10714_v6  ;;  %v6150_v27 = vand.u32 4294901760, %v6149_v39  ;;  %v6156_v38 = vsub.f32 %v6154_v56, %v6155_v57  ;;  %v6164_v39 = vand.u32 4294901760, %v6163_v59 }
0x10c1   : > { %8519 = vmatpush3.msra.mxu1 %v10714_v6 }
0x10c2   : > { %8526 = vmatprep.subr.mxu0 %v6150_v27  ;;  %8540 = vmatprep.subr.mxu1 %v6147_v52  ;;  %v6157_v34 = vand.u32 4294901760, %v6156_v38 }
0x10c3   : > { %8521 = vmatmul.mubr.f32.vlgmr.msra.gmra.mxu1 %v6095_v44  ;;  %8527 = vmatpush3.msra.mxu0 %v6150_v27 }
0x10c4   : > { %8541 = vmatpush3.msra.mxu1 %v6147_v52  ;;  %8528 = vmatprep.subr.mxu0 %v6157_v34 }
0x10c5   : > { %8542 = vmatprep.subr.mxu1 %v6154_v56  ;;  %8529 = vmatpush3.msra.mxu0 %v6157_v34  ;;  %v11205_v34 = vand.u32 4294901760, %v10705_v32 }
0x10c6   : > { %8543 = vmatpush3.msra.mxu1 %v6154_v56  ;;  %8523 = vmatprep.mubr.f32.mxu1 %v6105_v15  ;;  %v11204_v15 = vand.u32 4294901760, %v10676_v36 }
0x10c7   : > { %8530 = vmatprep.subr.mxu0 %v6164_v39  ;;  %8544 = vmatprep.subr.mxu1 %v6161_v53 }
0x10c8   : > { %8524 = vmatmul.mubr.f32.gmra.mxu1 %v6115_v46  ;;  %8531 = vmatpush3.msra.mxu0 %v6164_v39 }
0x10c9   : > { %8545 = vmatpush3.msra.mxu1 %v6161_v53  ;;  %8532 = vmatprep.subr.mxu0 %v6171_v14  ;;  %v11206_v53 = vand.u32 4294901760, %v10712_v50 }
0x10ca   : > { %8546 = vmatprep.subr.mxu1 %v6168_v3  ;;  %8533 = vmatpush3.msra.mxu0 %v6171_v14 }
0x10cb   : > { %8547 = vmatpush3.msra.mxu1 %v6168_v3  ;;  %8535 = vmatmul.mubr.f32.vlgmr.msra.gmra.mxu0 %v10698_v61 }
0x10cc   : > { %8548 = vmatprep.mubr.f32.mxu1 %v10676_v36  ;;  %8554 = vmatprep.subr.mxu0 %v10717_v30  ;;  %v11207_v36 = vand.u32 4294901760, %v10720_v16 }
0x10cd   : > { %8568 = vmatprep.subr.mxu1 %v6148_v25  ;;  %8549 = vmatmul.mubr.f32.vlgmr.msra.gmra.mxu1 %v10705_v32  ;;  %v11208_v32 = vmov 0.0  }
0x10ce   : > { %8555 = vmatpush3.msra.mxu0 %v10717_v30  ;;  %8569 = vmatpush3.msra.mxu1 %v6148_v25  ;;  %v5306_v25 = vld [vmem:[#allocation17 + $0x78] sm:$0xff] }
0x10cf   : > { %8556 = vmatprep.subr.mxu0 %v10724_v9  ;;  %8570 = vmatprep.subr.mxu1 %v6155_v57 }
0x10d0   : > { %8537 = vmatprep.mubr.f32.mxu0 %v10702_v37  ;;  %8557 = vmatpush3.msra.mxu0 %v10724_v9 }
0x10d1   : > { %8571 = vmatpush3.msra.mxu1 %v6155_v57  ;;  %8538 = vmatmul.mubr.f32.gmra.mxu0 %v10707_v20  ;;  %v5303_v57 = vld [vmem:[#allocation17 + $0x60] sm:$0xff] }
0x10d2   : > { %8558 = vmatprep.subr.mxu0 %v10709_v5  ;;  %8572 = vmatprep.subr.mxu1 %v6162_v26 }
0x10d3   : > { %8551 = vmatprep.mubr.f32.mxu1 %v10712_v50  ;;  %8559 = vmatpush3.msra.mxu0 %v10709_v5 }
0x10d4   : > { %8573 = vmatpush3.msra.mxu1 %v6162_v26  ;;  %8560 = vmatprep.subr.mxu0 %v10714_v6  ;;  %v5304_v26 = vld [vmem:[#allocation17 + $0x68] sm:$0xff] }
0x10d5   : > { %8552 = vmatmul.mubr.f32.gmra.mxu1 %v10720_v16  ;;  %8574 = vmatprep.subr.mxu1 %v6169_v51 }
0x10d6   : > { %8561 = vmatpush3.msra.mxu0 %v10714_v6  ;;  %8562 = vmatprep.mubr.f32.mxu0 %v11204_v15 }
0x10d7   : > { %8575 = vmatpush3.msra.mxu1 %v6169_v51  ;;  %8563 = vmatmul.mubr.f32.vlgmr.msra.gmra.mxu0 %v11205_v34 }
0x10d8   : > { %8582 = vmatprep.subr.mxu0 %v10717_v30  ;;  %8576 = vmatprep.mubr.f32.mxu1 %v10673_v31 }
0x10d9   : > { %8583 = vmatpush3.msra.mxu0 %v10717_v30  ;;  %8577 = vmatmul.mubr.f32.vlgmr.msra.gmra.mxu1 %v10698_v61 }
0x10da   : > { %8584 = vmatprep.subr.mxu0 %v10724_v9  ;;  %8565 = vmatprep.mubr.f32.mxu0 %v11206_v53 }
0x10db   : > { %8585 = vmatpush3.msra.mxu0 %v10724_v9  ;;  %8579 = vmatprep.mubr.f32.mxu1 %v10702_v37 }
0x10dc   : > { %8566 = vmatmul.mubr.f32.gmra.mxu0 %v11207_v36  ;;  %8586 = vmatprep.subr.mxu0 %v10709_v5 }
0x10dd   : > { %8587 = vmatpush3.msra.mxu0 %v10709_v5  ;;  %8580 = vmatmul.mubr.f32.gmra.mxu1 %v10707_v20  ;;  %v7425_v5 = vld [vmem:[%s9729_s12 + $0x18] sm:$0xff]  ;;  %s11219_s12 = sld [smem:[#allocation56_spill]] }
0x10de   : > { %8588 = vmatprep.subr.mxu0 %v10714_v6  ;;  %8590 = vmatprep.mubr.f32.mxu0 %v10673_v31  ;;  %v6677_v31 = vpack.c.bf16 %v7425_v5, %v7425_v5 }
0x10df   : > { %8589 = vmatpush3.msra.mxu0 %v10714_v6  ;;  %8596 = vmatprep.subr.bf16.mxu1 %v11208_v32 }
0x10e0   : > { %8591 = vmatmul.mubr.f32.vlgmr.msra.gmra.mxu0 %v10698_v61  ;;  %8600 = vmatprep.mubr.msk.bf16.mxu1 %vm9398_vm1, %v11208_v32  ;;  %v6682_v50 = vsel %vm809_vm0, %v6677_v31, 0 }
0x10e1   : > { %8593 = vmatprep.mubr.f32.mxu0 %v10702_v37  ;;  %8604 = vmatprep.subr.bf16.mxu0 %v11208_v32 }
0x10e2   : > { %8605 = vmatpush3.bf16.xpose.msra.mxu0 %v6682_v50 }
0x10e3   : > { %s10941_s24 = scalar_lea.hbm %s11219_s12, %s11146_s20 }
0x10e4   : > { %8594 = vmatmul.mubr.f32.gmra.mxu0 %v10707_v20 }
0x10e5   : > { %8606 = vmatprep.mubr.msk.bf16.mxu0 %vm9398_vm1, %v11208_v32 }
0x1183   : > { %v8522_v6 = vpop.f32.mrf.mxu1 }
0x1184   : > { %v6098_v27 = vadd.f32 %v8522_v6, %v5304_v26 }
0x1185   : > { %v6087_v30 = vpop.f32.mrf.mxu1 }
0x1186   : > { %v6088_v38 = vadd.f32 %v6087_v30, %v5303_v57 }
0x1188   : > { %v8525_v61 = vpop.f32.mrf.mxu1 }
0x1189   : > { %v6118_v20 = vadd.f32 %v8525_v61, %v5306_v25 }
0x118a   : > { %v6107_v16 = vpop.f32.mrf.mxu1 }
0x118b   : > { %v8536_v9 = vpop.f32.mrf.mxu0  ;;  %v6108_v60 = vadd.f32 %v6107_v16, %v5305_v41 }
0x118c   : > { %v6215_v5 = vadd.f32 %v8536_v9, %v6098_v27 }
0x118d   : > { %v6208_v52 = vpop.f32.mrf.mxu0  ;;  %v8550_v19 = vpop.f32.mrf.mxu1 }
0x118e   : > { %v6209_v15 = vadd.f32 %v6208_v52, %v6088_v38  ;;  %v6314_v29 = vadd.f32 %v8550_v19, %v6215_v5 }
0x118f   : > { %v6306_v3 = vpop.f32.mrf.mxu1 }
0x1190   : > { %v6307_v25 = vadd.f32 %v6306_v3, %v6209_v15 }
0x1191   : > { %v8539_v37 = vpop.f32.mrf.mxu0 }
0x1192   : > { %v6227_v59 = vadd.f32 %v8539_v37, %v6118_v20 }
0x1193   : > { %v6220_v56 = vpop.f32.mrf.mxu0 }
0x1194   : > { %v6221_v34 = vadd.f32 %v6220_v56, %v6108_v60 }
0x1195   : > { %v8553_v14 = vpop.f32.mrf.mxu1 }
0x1196   : > { %v6328_v31 = vadd.f32 %v8553_v14, %v6227_v59 }
0x1197   : > { %v6320_v44 = vpop.f32.mrf.mxu1  ;;  %v8564_v51 = vpop.f32.mrf.mxu0 }
0x1198   : > { %v6321_v13 = vadd.f32 %v6320_v44, %v6221_v34  ;;  %v6413_v37 = vadd.f32 %v8564_v51, %v6314_v29 }
0x1199   : > { %v6404_v46 = vpop.f32.mrf.mxu0  ;;  %v8578_v39 = vpop.f32.mrf.mxu1 }
0x119a   : > { %v6405_v21 = vadd.f32 %v6404_v46, %v6307_v25  ;;  %v6518_v14 = vadd.f32 %v8578_v39, %v6413_v37  ;;  %v7426_v37 = vld [vmem:[%s9737_s16 + $0x18] sm:$0xff]  ;;  %s6954_s16 = scalar_lea.sflag [#allocation21], %s9725_s15 }
0x119b   : > { %v6511_v53 = vpop.f32.mrf.mxu1 }
0x119c   : > { %v8567_v36 = vpop.f32.mrf.mxu0  ;;  %v6512_v56 = vadd.f32 %v6511_v53, %v6405_v21  ;;  %v7424_v21 = vld [vmem:[%s9718_s4 + $0x18] sm:$0xff] }
0x119d   : > { %v8581_v61 = vpop.f32.mrf.mxu1  ;;  %v6429_v8 = vadd.f32 %v8567_v36, %v6328_v31  ;;  %v6632_v38 = vpack.c.bf16 %v7424_v21, %v7424_v21 }
0x119e   : > { %v6420_v50 = vpop.f32.mrf.mxu0 }
0x119f   : > { %v6421_v6 = vadd.f32 %v6420_v50, %v6321_v13  ;;  %v6523_v30 = vpop.f32.mrf.mxu1  ;;  %v6530_v20 = vadd.f32 %v8581_v61, %v6429_v8 }
0x11a0   : > { %v8592_v4 = vpop.f32.mrf.mxu0 }
0x11a1   : > { %v6524_v26 = vadd.f32 %v6523_v30, %v6421_v6  ;;  %v6611_v44 = vadd.f32 %v8592_v4, %v6518_v14 }
0x11a2   : > { %v6604_v16 = vpop.f32.mrf.mxu0 }
0x11a3   : > { %v10796_v41 = vadd.f32 %v6604_v16, %v6512_v56  ;;  %v6627_v51 = vmul.f32 0.17677669, %v6611_v44 }
0x11a4   : > { %v8595_v52 = vpop.f32.mrf.mxu0 }
0x11a5   : > { %v10794_v57 = vadd.f32 %v8595_v52, %v6530_v20  ;;  %v6626_v29 = vmul.f32 0.17677669, %v10796_v41  ;;  %v6737_v20 = vpack.c.bf16 %v7426_v37, %v7426_v37 }
0x11a6   : > { %v6616_v9 = vpop.f32.mrf.mxu0 }
0x11a7   : > { %v10798_v3 = vadd.f32 %v6616_v9, %v6524_v26  ;;  %v6629_v19 = vmul.f32 0.17677669, %v10794_v57  ;;  %v6630_v27 = vpack.c.bf16 %v6627_v51, %v6626_v29  ;;  %v6742_v56 = vsel %vm2234_vm3, %v6737_v20, 0  ;;  %v11212_v51 = vld [vmem:[#allocation43_spill] sm:$0xff] }
0x11a9   : > { %v6628_v13 = vmul.f32 0.17677669, %v10798_v3 }
0x11ab   : > { %v6631_v8 = vpack.c.bf16 %v6629_v19, %v6628_v13 }
0x11ad   : > { %8597 = vmatpush3.bf16.msra.mxu1 %v6631_v8 }
0x11ae   : > { %8598 = vmatprep.subr.bf16.mxu1 %v11208_v32 }
0x11b1   : > { %8599 = vmatpush3.bf16.msra.mxu1 %v6630_v27 }
0x11b2   : > { %8610 = vmatprep.subr.bf16.mxu1 %v11208_v32 }
0x11b4   : > { %8601 = vmatmul.mubr.msk.bf16.vlgmr.msra.gmra.mxu1 %vm809_vm0, %v6632_v38 }
0x11b5   : > { %8612 = vmatprep.mubr.msk.bf16.mxu1 %vm9398_vm1, %v11208_v32  ;;  %8611 = vmatpush3.bf16.msra.mxu1 %v6742_v56 }
0x1274   : > { %v6670_v4 = vpop.f32.mrf.mxu1 }
0x1275   : > { %v6676_v60 = vpack.c.bf16 %v6670_v4, %v6670_v4 }
0x1276   : > { %v8602_v59 = vpop.f32.mrf.mxu1 }
0x1277   : > { %8607 = vmatmul.mubr.msk.bf16.vlgmr.msra.gmra.mxu0 %vm809_vm0, %v6676_v60  ;;  %v11213_v60 = vld [vmem:[#allocation44_spill] sm:$0xff] }
0x1278   : > { %v6673_v46 = vpop.f32.mrf.mxu1 }
0x127a   : > { %v8603_v39 = vpop.f32.mrf.mxu1 }
0x1337   : > { %v10810_v15 = vpop.f32.mrf.mxu0 }
0x1338   : > { %v6724_v34 = vadd.f32 %v10549_v42, %v10810_v15 }
0x1339   : > { %v8608_v53 = vpop.f32.mrf.mxu0 }
0x133a   : > { %v6725_v36 = vsel %vm2217_vm2, %v6724_v34, -inf }
0x133b   : > { %6726 = vmax.xlane.f32.xlu0 %v6725_v36  ;;  %v6721_v5 = vpop.f32.mrf.mxu0 }
0x133c   : > { %v11214_v5 = vld [vmem:[#allocation45_spill] sm:$0xff] }
0x133d   : > { %v8609_v31 = vpop.f32.mrf.mxu0 }
0x1351   : > { %6785 = vrot.lane.b32.xlu0 %v10417_v18, %s9399_s14 }
0x1355   : > { %6812 = vrot.lane.b32.xlu0 %v10161_v33, %s9399_s14 }
0x1359   : > { %6824 = vrot.lane.b32.xlu0 %v10419_v63, %s9400_s22 }
0x135d   : > { %6828 = vrot.lane.b32.xlu0 %v10425_v49, %s9400_s22 }
0x1361   : > { %6872 = vrot.lane.b32.xlu0 %v10270_v2, %s9399_s14 }
0x1365   : > { %6876 = vrot.lane.b32.xlu0 %v10264_v48, %s9399_s14 }
0x1369   : > { %6789 = vrot.lane.b32.xlu0 %v10683_v45, %s9400_s22 }
0x136d   : > { %6840 = vrot.lane.b32.xlu0 %v10685_v40, %s11148_s18 }
0x1371   : > { %6844 = vrot.lane.b32.xlu0 %v10691_v58, %s11148_s18 }
0x1375   : > { %6888 = vrot.lane.b32.xlu0 %v10534_v23, %s9400_s22 }
0x1379   : > { %6892 = vrot.lane.b32.xlu0 %v10528_v12, %s9400_s22 }
0x137d   : > { %6904 = vrot.lane.b32.xlu0 %v6611_v44, %s11148_s18 }
0x13c4   : > { %v6727_v33 = vpop.xlane.xlu0 %6726 }
0x13c5   : > { %v6728_v48 = vsub.f32 %v6724_v34, %v6727_v33 }
0x13c7   : > { %v6729_v2 = vmul.f32 1.442695, %v6728_v48 }
0x13c8   : > { %v6786_v18 = vpop.permute.xlu0 %6785 }
0x13c9   : > { %8920 = vpow2.f32 %v6729_v2  ;;  %v6796_v12 = vsel %vm809_vm0, %v10153_v62, %v6786_v18  ;;  %v11215_v18 = vld [vmem:[#allocation46_spill] sm:$0xff] }
0x13cc   : > { %v6813_v63 = vpop.permute.xlu0 %6812 }
0x13cd   : > { %v6853_v25 = vsel %vm809_vm0, %v9895_v11, %v6813_v63 }
0x13d0   : > { %v6825_v49 = vpop.permute.xlu0 %6824 }
0x13d4   : > { %v6829_v42 = vpop.permute.xlu0 %6828 }
0x13d5   : > { %v6857_v6 = vsel %vm6797_vm4, %v6853_v25, %v6829_v42 }
0x13d6   : > { %v8921_v45 = vpop.eup %8920 }
0x13d7   : > { %v6731_v40 = vsel %vm2217_vm2, %v8921_v45, 0.0 }
0x13d8   : > { %6732 = vadd.xlane.f32.xlu1 %v6731_v40  ;;  %v6873_v58 = vpop.permute.xlu0 %6872  ;;  %v11218_v40 = vld [vmem:[#allocation47_spill] sm:$0xff] }
0x13dc   : > { %v6877_v23 = vpop.permute.xlu0 %6876 }
0x13dd   : > { %v6917_v11 = vsel %vm809_vm0, %v9998_v10, %v6877_v23  ;;  %v11209_v10 = vld [vmem:[#allocation48_spill] sm:$0xff] }
0x13e0   : > { %v6790_v32 = vpop.permute.xlu0 %6789 }
0x13e1   : > { %v10842_v50 = vsel %vm6797_vm4, %v6796_v12, %v6790_v32 }
0x13e4   : > { %v6841_v61 = vpop.permute.xlu0 %6840 }
0x13e8   : > { %v6845_v30 = vpop.permute.xlu0 %6844 }
0x13e9   : > { %v6861_v16 = vsel %vm6799_vm5, %v6857_v6, %v6845_v30  ;;  %6806 = vrot.lane.b32.xlu1 %v10158_v28, %s9399_s14  ;;  %v6915_v28 = vsel %vm809_vm0, %v10004_v17, %v6873_v58  ;;  %v11210_v17 = vld [vmem:[#allocation49_spill] sm:$0xff] }
0x13ea   : > { %6865 = vst [vmem:[%s10851_s25 + $0x18] sm:$0xff] %v6861_v16 }
0x13ec   : > { %v6889_v62 = vpop.permute.xlu0 %6888 }
0x13ed   : > { %6808 = vrot.lane.b32.xlu1 %v10155_v24, %s9399_s14  ;;  %v6919_v24 = vsel %vm6797_vm4, %v6915_v28, %v6889_v62 }
0x13f0   : > { %v6893_v52 = vpop.permute.xlu0 %6892 }
0x13f1   : > { %v10861_v26 = vsel %vm6797_vm4, %v6917_v11, %v6893_v52  ;;  %6810 = vrot.lane.b32.xlu1 %v10164_v35, %s9399_s14 }
0x13f4   : > { %v6905_v9 = vpop.permute.xlu0 %6904 }
0x13f5   : > { %v6923_v14 = vsel %vm6799_vm5, %v6919_v24, %v6905_v9  ;;  %6822 = vrot.lane.b32.xlu1 %v10422_v43, %s9400_s22 }
0x13f6   : > { %6927 = vst [vmem:[%s10872_s27 + $0x8] sm:$0xff] %v6923_v14 }
0x13f9   : > { %6826 = vrot.lane.b32.xlu1 %v10428_v7, %s9400_s22 }
0x13fd   : > { %6870 = vrot.lane.b32.xlu1 %v10266_v0, %s9399_s14 }
0x1401   : > { %6874 = vrot.lane.b32.xlu1 %v10268_v1, %s9399_s14  ;;  %s9197_s14 = sshll.u32 %s9405_s7, 4  ;;  %s9198_s14 = int_to_ptr.vmem [resolvable:$false] %s9197_s14 }
0x1402   : > { %p9200_p1 = scmp.lt.s32.totalorder %s10933_s1, %s9198_s14 }
0x1405   : > { %6931 = vrot.lane.b32.xlu1 %v10283_v22, %s9402_s0  ;;  %v11211_v22 = vld [vmem:[#allocation42_spill] sm:$0xff] }
0x1409   : > { %6838 = vrot.lane.b32.xlu1 %v10688_v47, %s11148_s18 }
0x140d   : > { %6842 = vrot.lane.b32.xlu1 %v10694_v55, %s11148_s18 }
0x1411   : > { %6886 = vrot.lane.b32.xlu1 %v10530_v54, %s9400_s22 }
0x1415   : > { %6890 = vrot.lane.b32.xlu1 %v11209_v10, %s9400_s22  ;;  %s9199_s22 = scalar_lea.vmem %s9198_s14, 1024 }
0x1416   : > { %p9201_p4 = scmp.lt.s32.totalorder %s9199_s22, %s9193_s5 }
0x1418   : > { %p9202_p2 = por %p9201_p4, %p9200_p1 }
0x1419   : > { %6935 = vrot.lane.b32.xlu1 %v11210_v17, %s9403_s28 }
0x141a   : > { %p9203_p5 = pnand %p9202_p2, %p9196_p7 }
0x141d   : > { %6902 = vrot.lane.b32.xlu1 %v10796_v41, %s11148_s18 }
0x1421   : > { %6906 = vrot.lane.b32.xlu1 %v10798_v3, %s11148_s18 }
0x1425   : > { %6939 = vrot.lane.b32.xlu1 %v10810_v15, %s9404_s17 }
0x1461   : > { %v6733_v35 = vpop.xlane.xlu1 %6732 }
0x1462   : > { %8922 = vrcp.f32 %v6733_v35 }
0x1465   : > { %v6807_v0 = vpop.permute.xlu1 %6806 }
0x1466   : > { %v6850_v21 = vsel %vm809_vm0, %v11212_v51, %v6807_v0 }
0x1469   : > { %v6809_v1 = vpop.permute.xlu1 %6808 }
0x146a   : > { %v6851_v43 = vsel %vm809_vm0, %v11211_v22, %v6809_v1 }
0x146b   : > { %v6855_v7 = vsel %vm6797_vm4, %v6851_v43, %v6825_v49 }
0x146c   : > { %v6859_v54 = vsel %vm6799_vm5, %v6855_v7, %v6841_v61 }
0x146d   : > { %6863 = vst [vmem:[%s10851_s25 + $0x8] sm:$0xff] %v6859_v54  ;;  %v6811_v47 = vpop.permute.xlu1 %6810 }
0x146e   : > { %v6852_v59 = vsel %vm809_vm0, %v11213_v60, %v6811_v47 }
0x146f   : > { %v8923_v55 = vpop.eup %8922 }
0x1470   : > { %v6735_v41 = vmul.f32 %v8923_v55, %v8921_v45 }
0x1471   : > { %v6823_v3 = vpop.permute.xlu1 %6822 }
0x1472   : > { %v6736_v44 = vpack.c.bf16 %v6735_v41, %v6735_v41  ;;  %v6854_v27 = vsel %vm6797_vm4, %v6850_v21, %v6823_v3 }
0x1474   : > { %8613 = vmatmul.mubr.msk.bf16.vlgmr.msra.gmra.mxu1 %vm2217_vm2, %v6736_v44 }
0x1475   : > { %v6827_v19 = vpop.permute.xlu1 %6826 }
0x1476   : > { %v6856_v46 = vsel %vm6797_vm4, %v6852_v59, %v6827_v19 }
0x1479   : > { %v6871_v13 = vpop.permute.xlu1 %6870 }
0x147a   : > { %v6914_v31 = vsel %vm809_vm0, %v11214_v5, %v6871_v13 }
0x147d   : > { %v6875_v29 = vpop.permute.xlu1 %6874 }
0x147e   : > { %v6916_v63 = vsel %vm809_vm0, %v11215_v18, %v6875_v29 }
0x1481   : > { %v6932_v8 = vpop.permute.xlu1 %6931 }
0x1482   : > { %v6942_v58 = vsel %vm2217_vm2, %v11218_v40, %v6932_v8 }
0x1485   : > { %v6839_v38 = vpop.permute.xlu1 %6838 }
0x1486   : > { %v6858_v4 = vsel %vm6799_vm5, %v6854_v27, %v6839_v38 }
0x1487   : > { %6862 = vst [vmem:[%s10851_s25] sm:$0xff] %v6858_v4 }
0x1489   : > { %v6843_v39 = vpop.permute.xlu1 %6842 }
0x148a   : > { %v6860_v15 = vsel %vm6799_vm5, %v6856_v46, %v6843_v39 }
0x148b   : > { %6864 = vst [vmem:[%s10851_s25 + $0x10] sm:$0xff] %v6860_v15 }
0x148d   : > { %v6887_v34 = vpop.permute.xlu1 %6886 }
0x148e   : > { %v6918_v33 = vsel %vm6797_vm4, %v6914_v31, %v6887_v34 }
0x1491   : > { %v6891_v53 = vpop.permute.xlu1 %6890 }
0x1492   : > { %v6920_v49 = vsel %vm6797_vm4, %v6916_v63, %v6891_v53 }
0x1495   : > { %v6936_v36 = vpop.permute.xlu1 %6935 }
0x1496   : > { %v6944_v23 = vsel %vm6943_vm6, %v6942_v58, %v6936_v36 }
0x1499   : > { %v6903_v48 = vpop.permute.xlu1 %6902 }
0x149a   : > { %v6922_v2 = vsel %vm6799_vm5, %v6918_v33, %v6903_v48 }
0x149b   : > { %6926 = vst [vmem:[%s10872_s27] sm:$0xff] %v6922_v2 }
0x149d   : > { %v6907_v42 = vpop.permute.xlu1 %6906 }
0x149e   : > { %v6924_v45 = vsel %vm6799_vm5, %v6920_v49, %v6907_v42 }
0x149f   : > { %6928 = vst [vmem:[%s10872_s27 + $0x10] sm:$0xff] %v6924_v45 }
0x14a1   : > { %v6940_v12 = vpop.permute.xlu1 %6939 }
0x14a2   : > { %v6946_v32 = vsel %vm6945_vm7, %v6944_v23, %v6940_v12 }
0x14a3   : > { %6947 = vst.msk [vmem:[%s10928_s10] sm:$0xff] %vm809_vm0, %v6946_v32 }
0x14a4   : > { %9206 = shalt.err (!%p9203_p5)
}
0x14a5   : > { %s9207_s25 = scalar_lea.hbm %s10941_s24, 512  ;;  %s9211_s4 = scalar_lea.hbm %s11219_s12, 1024 }
0x14a6   : > { %p9208_p3 = scmp.ne.s32.totalorder %s10941_s24, %s9207_s25  ;;  %p9212_p13 = scmp.lt.s32.totalorder %s10941_s24, %s11219_s12 }
0x14a7   : > { %p9213_p11 = scmp.lt.s32.totalorder %s9211_s4, %s9207_s25 }
0x14a8   : > { %p9209_p6 = pnand %p9208_p3, %p9587_p12 }
0x14a9   : > { %p9214_p8 = por %p9213_p11, %p9212_p13 }
0x14aa   : > { %p9210_p0 = pneg %p9209_p6 }
0x14ac   : > { %p9215_p9 = pnand %p9214_p8, %p9210_p0 }
0x14ae   : > { %9218 = shalt.err (!%p9215_p9)
}
0x14af   : > { %s9406_s5 = smov 128   ;;  %s7438_s14 = sshll.u32 %s11216_s13, 7 }
0x14b0   : > { %8649 = dma.vmem_to_hbm [thread:$0]  (%p9587_p12), %s10933_s1, 512, %s10941_s24, %s6954_s16, %s9406_s5, %s9406_s5, %s9402_s0  }
0x14b1   : > { %s11220_s28 = sld [smem:[#allocation58_spill]]  ;;  %s7026_s19 = sshll.u32 %s10928_s10, 4  ;;  %s7027_s19 = int_to_ptr.vmem [resolvable:$true] %s7026_s19 }
0x14b2   : > { %s6964_s7 = scalar_lea.sflag [#allocation24], %s9711_s23  ;;  %s9219_s20 = scalar_lea.vmem %s7027_s19, 128 }
0x14b3   : > { %p9220_p10 = scmp.ne.s32.totalorder %s7027_s19, %s9219_s20  ;;  %s9407_s11 = smov [#allocation23]  }
0x14b4   : > { %s9223_s18 = sshll.u32 %s9407_s11, 4  ;;  %s9224_s18 = int_to_ptr.vmem [resolvable:$false] %s9223_s18 }
0x14b5   : > { %p9221_p7 = pnand %p9220_p10, %p9587_p12  ;;  %s9225_s1 = scalar_lea.vmem %s9224_s18, 256 }
0x14b6   : > { %p9226_p4 = scmp.lt.s32.totalorder %s7027_s19, %s9224_s18  ;;  %p9227_p2 = scmp.lt.s32.totalorder %s9225_s1, %s9219_s20 }
0x14b7   : > { %s11221_s17 = smov %s11220_s28  ;;  %s10975_s4 = scalar_lea.hbm %s11220_s28, %s7438_s14 }
0x14b8   : > { %p9222_p1 = pneg %p9221_p7  ;;  %p9228_p5 = por %p9227_p2, %p9226_p4 }
0x14ba   : > { %p9229_p3 = pnand %p9228_p5, %p9222_p1 }
0x1534   : > { %v6778_v61 = vpop.f32.mrf.mxu1 }
0x1535   : > { %9232 = shalt.err (!%p9229_p3)
}
0x1536   : > { %s9233_s10 = scalar_lea.hbm %s10975_s4, 128  ;;  %s9237_s11 = scalar_lea.hbm %s11221_s17, 256 }
0x1537   : > { %p9234_p6 = scmp.ne.s32.totalorder %s10975_s4, %s9233_s10  ;;  %p9238_p11 = scmp.lt.s32.totalorder %s10975_s4, %s11221_s17 }
0x1538   : > { %p9239_p8 = scmp.lt.s32.totalorder %s9237_s11, %s9233_s10 }
0x1539   : > { %p9235_p0 = pnand %p9234_p6, %p9587_p12 }
0x153a   : > { %p9240_p9 = por %p9239_p8, %p9238_p11 }
0x153b   : > { %p9236_p13 = pneg %p9235_p0 }
0x153d   : > { %p9241_p10 = pnand %p9240_p9, %p9236_p13 }
0x153f   : > { %9244 = shalt.err (!%p9241_p10)
}
0x1540   : > { %8651 = dma.vmem_to_hbm [thread:$0]  (%p9587_p12), %s7027_s19, 128, %s10975_s4, %s6964_s7   ;;  %v8614_v25 = vpop.f32.mrf.mxu1 }
0x1541   : > { %s11222_s18 = smov 96   ;;  %s11223_s20 = sshll.u32 %s9711_s23, 3 }
0x1542   : > { %6793 = vrot.lane.b32.xlu0 %v6778_v61, %s11222_s18  ;;  %v6781_v6 = vpop.f32.mrf.mxu1  ;;  %s749_s1 = scalar_lea.vmem [#allocation19], %s11223_s20  ;;  %s11224_s11 = sld [smem:[#allocation55_spill]] }
0x1543   : > { %s6978_s10 = sshll.u32 %s749_s1, 4  ;;  %s7009_s4 = sshll.u32 %s10872_s27, 4  ;;  %s11007_s10 = int_to_ptr.vmem [resolvable:$true] %s6978_s10  ;;  %s11035_s4 = int_to_ptr.vmem [resolvable:$true] %s7009_s4 }
0x1544   : > { %v8615_v30 = vpop.f32.mrf.mxu1  ;;  %s6949_s19 = scalar_lea.sflag [#allocation4], %s9711_s23  ;;  %s9245_s7 = scalar_lea.vmem %s11007_s10, 128 }
0x1545   : > { %p9246_p7 = scmp.ne.s32.totalorder %s11007_s10, %s9245_s7  ;;  %s9408_s28 = smov [#allocation19]  }
0x1546   : > { %6908 = vrot.lane.b32.xlu0 %v10794_v57, %s11222_s18  ;;  %s9249_s18 = sshll.u32 %s9408_s28, 4  ;;  %s9250_s18 = int_to_ptr.vmem [resolvable:$false] %s9249_s18 }
0x1547   : > { %p9247_p1 = pnand %p9246_p7, %p9587_p12  ;;  %p9252_p2 = scmp.lt.s32.totalorder %s11007_s10, %s9250_s18 }
0x1548   : > { %s11005_s25 = scalar_lea.hbm %s11224_s11, %s7438_s14  ;;  %s9251_s14 = scalar_lea.vmem %s9250_s18, 256 }
0x1549   : > { %p9248_p4 = pneg %p9247_p1  ;;  %p9253_p5 = scmp.lt.s32.totalorder %s9251_s14, %s9245_s7 }
0x154b   : > { %p9254_p3 = por %p9253_p5, %p9252_p2 }
0x154d   : > { %p9255_p6 = pnand %p9254_p3, %p9248_p4 }
0x15b4   : > { %v6794_v16 = vpop.permute.xlu0 %6793 }
0x15b5   : > { %v6800_v57 = vsel %vm6799_vm5, %v10842_v50, %v6794_v16 }
0x15b6   : > { %6801 = vst [vmem:[%s749_s1] sm:$0xff] %v6800_v57 }
0x15b7   : > { %9258 = shalt.err (!%p9255_p6)
}
0x15b8   : > { %s9259_s20 = scalar_lea.hbm %s11005_s25, 128  ;;  %s9263_s24 = scalar_lea.hbm %s11224_s11, 256 }
0x15b9   : > { %p9260_p0 = scmp.ne.s32.totalorder %s11005_s25, %s9259_s20  ;;  %p9264_p8 = scmp.lt.s32.totalorder %s11005_s25, %s11224_s11 }
0x15ba   : > { %p9265_p9 = scmp.lt.s32.totalorder %s9263_s24, %s9259_s20 }
0x15bb   : > { %p9261_p13 = pnand %p9260_p0, %p9587_p12 }
0x15bc   : > { %p9266_p10 = por %p9265_p9, %p9264_p8 }
0x15bd   : > { %p9262_p11 = pneg %p9261_p13 }
0x15bf   : > { %p9267_p7 = pnand %p9266_p10, %p9262_p11 }
0x15c1   : > { %9270 = shalt.err (!%p9267_p7)
}
0x15c2   : > { %8648 = dma.vmem_to_hbm [thread:$0]  (%p9587_p12), %s11007_s10, 128, %s11005_s25, %s6949_s19   ;;  %v6909_v50 = vpop.permute.xlu0 %6908 }
0x15c3   : > { %s11225_s7 = sshll.u32 %s11216_s13, 9  ;;  %s11226_s20 = sld [smem:[#allocation57_spill]]  ;;  %v6925_v62 = vsel %vm6799_vm5, %v10861_v26, %v6909_v50 }
0x15c4   : > { %6929 = vst [vmem:[%s10872_s27 + $0x18] sm:$0xff] %v6925_v62  ;;  %s9271_s1 = scalar_lea.vmem %s11035_s4, 512  ;;  %s9409_s10 = smov [#allocation22]  }
0x15c5   : > { %p9272_p1 = scmp.ne.s32.totalorder %s11035_s4, %s9271_s1  ;;  %s9275_s25 = sshll.u32 %s9409_s10, 4  ;;  %s9276_s25 = int_to_ptr.vmem [resolvable:$false] %s9275_s25 }
0x15c6   : > { %s9277_s19 = scalar_lea.vmem %s9276_s25, 1024  ;;  %p9278_p5 = scmp.lt.s32.totalorder %s11035_s4, %s9276_s25 }
0x15c7   : > { %p9273_p4 = pnand %p9272_p1, %p9587_p12  ;;  %p9279_p3 = scmp.lt.s32.totalorder %s9277_s19, %s9271_s1 }
0x15c9   : > { %s11042_s23 = scalar_lea.hbm %s11226_s20, %s11225_s7  ;;  %p9274_p2 = pneg %p9273_p4 }
0x15ca   : > { %p9280_p6 = por %p9279_p3, %p9278_p5 }
0x15cc   : > { %p9281_p0 = pnand %p9280_p6, %p9274_p2 }
0x15ce   : > { %9284 = shalt.err (!%p9281_p0)
}
0x15cf   : > { %s9285_s13 = scalar_lea.hbm %s11042_s23, 512  ;;  %s9289_s22 = scalar_lea.hbm %s11226_s20, 1024 }
0x15d0   : > { %p9286_p13 = scmp.ne.s32.totalorder %s11042_s23, %s9285_s13  ;;  %p9290_p9 = scmp.lt.s32.totalorder %s11042_s23, %s11226_s20 }
0x15d1   : > { %p9291_p10 = scmp.lt.s32.totalorder %s9289_s22, %s9285_s13 }
0x15d2   : > { %p9287_p11 = pnand %p9286_p13, %p9587_p12 }
0x15d3   : > { %p9292_p7 = por %p9291_p10, %p9290_p9 }
0x15d4   : > { %p9288_p8 = pneg %p9287_p11 }
0x15d6   : > { %p9293_p1 = pnand %p9292_p7, %p9288_p8 }
0x15d8   : > { %9296 = shalt.err (!%p9293_p1)
}
0x15d9   : > { %8650 = dma.vmem_to_hbm [thread:$0]  (%p9587_p12), %s11035_s4, 512, %s11042_s23, %s6954_s16, %s9406_s5, %s9406_s5, %s9402_s0  }
0x15da PF: > { %s11227_s18 = sld [smem:[#allocation35_spill]]  ;;  %p11230_p2 = scmp.ge.s32.totalorder %s9383_s30, 2 }
0x15db   : > { %s11228_s14 = sld [smem:[#allocation41_spill]] }
0x15e0   : > { %s7038_s1 = sand.u32 1, %s11227_s18  }
0x15e1   : > { %p11229_p4 = scmp.ne.s32.totalorder %s11228_s14, 0  ;;  %s7039_s10 = scalar_lea.sflag [#allocation4], %s7038_s1 }
0x15e3   : > { %p8689_p5 = pnand %p11230_p2, %p11229_p4 }
0x15e5   : > { %p8690_p3 = pneg %p8689_p5 }
0x15e7   : > { %9350 = dma.done.wait (%p8690_p3), %s7039_s10, 128  }
0x15e8   : > { %9352 = vsyncadd (%p8690_p3), %s7039_s10, 4294967168  ;;  %s11231_s21 = sadd.s32 4294967294, %s9383_s30  }
0x15e9   : > { %s7047_s25 = sand.u32 1, %s11231_s21  }
0x15ea   : > { %s7048_s19 = scalar_lea.sflag [#allocation21], %s7047_s25 }
0x15eb   : > { %9354 = dma.done.wait (%p8690_p3), %s7048_s19, 1024  }
0x15ec   : > { %9356 = vsyncadd (%p8690_p3), %s7048_s19, 4294966272  ;;  %s7066_s15 = scalar_lea.sflag [#allocation24], %s7038_s1 }
0x15ed   : > { %9358 = dma.done.wait (%p8690_p3), %s7066_s15, 128  }
0x15ee   : > { %9360 = vsyncadd (%p8690_p3), %s7066_s15, 4294967168  ;;  %s45_s30 = sadd.s32 1, %s9383_s30   ;;  %s11232_s0 = sld [smem:[#allocation36_spill]] }
0x15ef   : > { %p42_p12 = scmp.ge.s32.totalorder %s45_s30, 4   ;;  %s11233_s27 = sld [smem:[#allocation40_spill]] }
0x15f0   : > { %s11234_s16 = sld [smem:[#allocation38_spill]]  ;;  %s11235_s25 = smov %s9367_s26 }
0x15f1   : > { %s11237_s28 = smov %s9379_s29 }
0x15f2   :  { %44 = sbr.rel (!%p42_p12) target bundleno = 27 (0x1b), region = 247 }
0x15f4   : > { %s11236_s26 = smov %s11232_s0 }
0x15f6   : > { %s11238_s29 = smov %s11234_s16 }
0x15f7   :  { %7071 = vsyncpa [#allocation3], 1 }
0x15f8   :  { %7073 = vsyncpa [#allocation3 + $0x1], 1 }
0x15f9   :  { %7074 = vsyncpa [#allocation6], 1 }
0x15fa   :  { %7076 = vsyncpa [#allocation6 + $0x1], 1 }
0x15fb   :  { %7077 = vsyncpa [#allocation9], 1 }
0x15fc   :  { %7079 = vsyncpa [#allocation9 + $0x1], 1 }
0x15fd   :  { %7080 = vsyncpa [#allocation12], 1 }
0x15fe   :  { %7081 = vsyncpa [#allocation15], 1 }
0x15ff   :  { %7082 = vsyncpa [#allocation18], 1 }
0x1600   :  { %7083 = vsyncpa [#allocation4], 1 }
0x1601   :  { %7085 = vsyncpa [#allocation4 + $0x1], 1 }
0x1602   :  { %7086 = vsyncpa [#allocation21], 1 }
0x1603   :  { %7088 = vsyncpa [#allocation21 + $0x1], 1 }
0x1604   :  { %7089 = vsyncpa [#allocation24], 1 }
0x1605   :  { %7091 = vsyncpa [#allocation24 + $0x1], 1 }

</bundles_post_ra>
